<compile_context>
chip_gen: v6e
topology: v6e:2x2x1
jax: 0.10.0
libtpu: 0.0.40
codegen_flags: <defaults>
</compile_context>

<pallas_src>
import math
from functools import partial, lru_cache

import numpy as np
import jax
import jax.numpy as jnp
from jax import lax
from jax.experimental import pallas as pl
from jax.experimental.pallas import tpu as pltpu


# ----------------------------------------------------------------------------
# Host-side glue: equidistant edge sampling (matches the PyTorch reference).
# TODO(synk): the edge-walk sampling uses data-dependent while-loops / scalar
#             reads and has no clean Pallas equivalent; it stays host-side.
# ----------------------------------------------------------------------------
def _euclidean_distance(a, b):
    return math.sqrt(float(((a - b) ** 2).sum()))


def _get_cumulative_distance(A, nodes):
    tot = 0.0
    for i in range(A.shape[0]):
        for j in range(i):
            if A[i, j] == 1.0:
                tot += _euclidean_distance(nodes[i], nodes[j])
    return tot


def _get_points(next_step, step, a, b):
    l = _euclidean_distance(a, b)
    m = float((b[1] - a[1]) / (b[0] - a[0]))
    sign_x = -1 if b[0] < a[0] else 1
    sign_y = -1 if b[1] < a[1] else 1
    pts = []
    used = 0.0
    while next_step <= l:
        used += next_step
        l -= next_step
        dx = sign_x * next_step / math.sqrt(1 + m ** 2)
        dy = m * dx if abs(dx) > 1e-06 else sign_y * next_step
        a[0] += dx
        a[1] += dy
        pts.append((float(a[0]), float(a[1])))
        next_step = step
    next_step = step - l
    return next_step, used, pts


def get_point_cloud(A, nodes, n_points):
    A = np.asarray(A, dtype=np.float32)
    nodes = np.asarray(nodes, dtype=np.float32)
    n_divisions = n_points - 1 + 0.01
    total_len = _get_cumulative_distance(A, nodes)
    step = total_len / n_divisions
    points = []
    next_step = 0.0
    used_len = 0.0
    last_node = None
    for i in range(A.shape[0]):
        for j in range(i):
            if A[i, j] == 1.0:
                next_step, used, pts = _get_points(
                    next_step, step, nodes[j].copy(), nodes[i].copy())
                used_len += used
                points += pts
                last_node = nodes[i].copy()
    if 0 < len(points) < n_points:
        while len(points) < n_points:
            points.append((float(last_node[0]), float(last_node[1])))
    if len(points) == 0:
        return np.zeros((100, 2), dtype=np.float32)
    return np.asarray(points, dtype=np.float32)


# ----------------------------------------------------------------------------
# Pallas kernel: log-domain Sinkhorn distance between two 2-D point clouds.
#   x_ref : (PP1, 2)   padded point cloud 1 (rows past n_x are zeros)
#   yt_ref: (2, PP2)   padded, transposed point cloud 2 (cols past n_y are zeros)
# Outputs: transport cost (1,1) in SMEM, coupling pi (PP1, PP2) in VMEM.
# ----------------------------------------------------------------------------
def _sinkhorn_kernel(x_ref, yt_ref, cost_ref, pi_ref, *,
                     eps, n_blocks, block_iters, thresh, n_x, n_y):
    x = x_ref[...].astype(jnp.float32)       # (PP1, 2)
    yt = yt_ref[...].astype(jnp.float32)     # (2, PP2)
    PP1 = x.shape[0]
    PP2 = yt.shape[1]

    # ---- loop-invariant setup ------------------------------------------------
    # Cost matrix C[i, j] = |x_i - y_j|^2  (p = 2; abs is redundant for p=2).
    x0 = x[:, 0:1]
    x1 = x[:, 1:2]
    y0 = yt[0:1, :]
    y1 = yt[1:2, :]
    d0 = x0 - y0
    d1 = x1 - y1
    C = d0 * d0 + d1 * d1                    # (PP1, PP2)
    Cs = C * jnp.float32(-1.0 / eps)         # hoisted: -C / eps  (<= 0)

    # Validity masks.  The column/row masks live in MXU weight matrices so the
    # logsumexp sums run on the MXU and padded entries contribute exactly 0.
    ones_col = (lax.broadcasted_iota(jnp.int32, (PP2, PP2), 0) < n_y).astype(jnp.float32)
    ones_row = (lax.broadcasted_iota(jnp.int32, (PP1, PP1), 1) < n_x).astype(jnp.float32)
    rmask = (lax.broadcasted_iota(jnp.int32, (PP1, 1), 0) < n_x).astype(jnp.float32)
    cmask = (lax.broadcasted_iota(jnp.int32, (1, PP2), 1) < n_y).astype(jnp.float32)

    log_mu = jnp.log(jnp.float32(1.0 / n_x) + 1e-8)
    log_nu = jnp.log(jnp.float32(1.0 / n_y) + 1e-8)
    tiny = jnp.float32(1e-37)                # guard log() against total underflow

    def one_iter(f, g):
        # u-update.  No max stabilizer: Cs <= 0 and after every normalization
        # each entry of Cs+f+g is <= log_mu / log_nu < 0, so exp never overflows.
        E = jnp.exp(Cs + f + g)                                             # (PP1, PP2)
        s = jnp.dot(E, ones_col, preferred_element_type=jnp.float32)[:, :1]  # masked row sums
        f = f + rmask * (log_mu - jnp.log(jnp.maximum(s, tiny)))
        # v-update (column logsumexp over valid rows).
        E2 = jnp.exp(Cs + f + g)
        s2 = jnp.dot(ones_row, E2, preferred_element_type=jnp.float32)[:1, :]  # masked col sums
        g = g + cmask * (log_nu - jnp.log(jnp.maximum(s2, tiny)))
        return f, g

    def cond(carry):
        _, _, err, blk = carry
        return jnp.logical_and(blk < n_blocks, err >= jnp.float32(thresh))

    def body(carry):
        f, g, _, blk = carry
        # Unrolled straight-line block of Sinkhorn iterations; the scalar
        # convergence check (vector->scalar sync + branch) runs once per block.
        for _ in range(block_iters - 1):
            f, g = one_iter(f, g)
        f_prev = f
        f, g = one_iter(f, g)
        # Reference break criterion: err = sum_i |u_new - u| with u = eps * f.
        # Padded-row deltas are exactly 0 (delta was multiplied by rmask).
        err = jnp.float32(eps) * jnp.sum(jnp.abs(f - f_prev))
        return (f, g, err, blk + 1)

    f0 = jnp.zeros((PP1, 1), jnp.float32)    # f = u / eps
    g0 = jnp.zeros((1, PP2), jnp.float32)    # g = v / eps
    init = (f0, g0, jnp.float32(jnp.inf), jnp.int32(0))
    f, g, _, _ = lax.while_loop(cond, body, init)

    # Coupling; padded rows/cols are zeroed so the transport-cost sum is exact.
    pi = jnp.exp(Cs + f + g) * rmask * cmask
    pi_ref[...] = pi
    cost_ref[0, 0] = jnp.sum(pi * C)


def _round_up(v, m):
    return ((v + m - 1) // m) * m


@lru_cache(maxsize=None)
def _build_sinkhorn(P1, P2, eps, max_iter, thresh):
    """Build (and cache) a jitted wrapper around the Pallas Sinkhorn kernel for
    a fixed pair of point-cloud sizes."""
    # Pad both point counts to 128 so every elementwise op, reduction and MXU dot
    # works on full (8,128)-aligned / 128x128 tiles.
    PP1 = max(128, _round_up(P1, 128))
    PP2 = max(128, _round_up(P2, 128))

    block_iters = 4
    n_blocks = -(-int(max_iter) // block_iters)   # ceil(max_iter / block_iters)

    kernel = partial(_sinkhorn_kernel, eps=float(eps), n_blocks=int(n_blocks),
                     block_iters=int(block_iters), thresh=float(thresh),
                     n_x=int(P1), n_y=int(P2))

    call = pl.pallas_call(
        kernel,
        in_specs=[
            pl.BlockSpec(memory_space=pltpu.MemorySpace.VMEM),
            pl.BlockSpec(memory_space=pltpu.MemorySpace.VMEM),
        ],
        out_specs=(
            pl.BlockSpec(memory_space=pltpu.MemorySpace.SMEM),
            pl.BlockSpec(memory_space=pltpu.MemorySpace.VMEM),
        ),
        out_shape=(
            jax.ShapeDtypeStruct((1, 1), jnp.float32),
            jax.ShapeDtypeStruct((PP1, PP2), jnp.float32),
        ),
    )

    @jax.jit
    def run(x, y):
        x = x.astype(jnp.float32)
        y = y.astype(jnp.float32)
        xp = jnp.zeros((PP1, 2), jnp.float32).at[:P1, :].set(x)
        ytp = jnp.zeros((2, PP2), jnp.float32).at[:, :P2].set(y.T)
        cost, pi = call(xp, ytp)
        # Loop-invariant cost matrix: cheap plain-XLA recompute (the kernel no
        # longer writes it back behind up to max_iter iterations).
        C = jnp.sum((x[:, None, :] - y[None, :, :]) ** 2, axis=-1)
        return cost[0, 0], pi[:P1, :P2], C

    return run


def sinkhorn_pallas(x, y, eps, max_iter, thresh=0.1):
    """x: (P1, 2), y: (P2, 2) float32 point clouds -> (cost, pi, C)."""
    x = jnp.asarray(x, jnp.float32)
    y = jnp.asarray(y, jnp.float32)
    run = _build_sinkhorn(int(x.shape[0]), int(y.shape[0]),
                          float(eps), int(max_iter), float(thresh))
    return run(x, y)


# ----------------------------------------------------------------------------
# StreetMoverDistance module equivalent (no learnable parameters).
# ----------------------------------------------------------------------------
class StreetMoverDistance:
    def __init__(self, eps, max_iter, reduction="none"):
        self.eps = eps
        self.max_iter = max_iter
        self.reduction = reduction  # cost is a scalar (batch 1); reductions are identity

    def __call__(self, y_A, y_nodes, output_A, output_nodes, n_points=100):
        y_pc = get_point_cloud(y_A, y_nodes, n_points)
        output_pc = get_point_cloud(output_A, output_nodes, n_points)
        sink_dist, P, C = sinkhorn_pallas(y_pc, output_pc,
                                          self.eps, self.max_iter)
        return (jnp.asarray(y_pc), jnp.asarray(output_pc)), (sink_dist, P, C)


# ----------------------------------------------------------------------------
# Pure-numpy reference (mirrors the PyTorch SinkhornDistance) for validation.
# ----------------------------------------------------------------------------
def _sinkhorn_reference(x, y, eps, max_iter, thresh=0.1):
    x = np.asarray(x, np.float64)
    y = np.asarray(y, np.float64)
    P1, P2 = x.shape[0], y.shape[0]
    C = ((x[:, None, :] - y[None, :, :]) ** 2).sum(-1)
    mu = np.full(P1, 1.0 / P1)
    nu = np.full(P2, 1.0 / P2)
    u = np.zeros(P1)
    v = np.zeros(P2)

    def M(u, v):
        return (-C + u[:, None] + v[None, :]) / eps

    def lse(A):
        m = A.max(axis=-1, keepdims=True)
        return (m + np.log(np.exp(A - m).sum(axis=-1, keepdims=True)))[..., 0]

    for _ in range(max_iter):
        u1 = u
        u = eps * (np.log(mu + 1e-8) - lse(M(u, v))) + u
        v = eps * (np.log(nu + 1e-8) - lse(M(u, v).T)) + v
        if np.abs(u - u1).sum() < thresh:
            break
    pi = np.exp(M(u, v))
    cost = float((pi * C).sum())
    return cost, pi, C


if __name__ == "__main__":
    key = jax.random.PRNGKey(0)
    k1, k2 = jax.random.split(key)

    # Small deterministic planar graphs: a 5-node path and a 6-node path.
    y_nodes = np.asarray(jax.random.uniform(k1, (5, 2), dtype=jnp.float32))
    out_nodes = np.asarray(jax.random.uniform(k2, (6, 2), dtype=jnp.float32))

    y_A = np.zeros((5, 5), dtype=np.float32)
    for i in range(1, 5):
        y_A[i, i - 1] = 1.0
    out_A = np.zeros((6, 6), dtype=np.float32)
    for i in range(1, 6):
        out_A[i, i - 1] = 1.0

    smd = StreetMoverDistance(eps=0.1, max_iter=100, reduction="none")
    (y_pc, out_pc), (sink_dist, P, C) = smd(y_A, y_nodes, out_A, out_nodes,
                                            n_points=100)
    jax.block_until_ready((sink_dist, P, C))

    P1, P2 = y_pc.shape[0], out_pc.shape[0]
    assert y_pc.shape[1] == 2 and out_pc.shape[1] == 2
    assert P.shape == (P1, P2) and C.shape == (P1, P2)
    cost_val = float(sink_dist)
    assert np.isfinite(cost_val)
    assert np.all(np.isfinite(np.asarray(P))) and np.all(np.isfinite(np.asarray(C)))

    # Coupling columns should sum to ~nu after the final v-update -> total mass ~1.
    assert abs(float(np.asarray(P).sum()) - 1.0) < 1e-3

    # Loose parity check against the reference algorithm.
    cost_ref, _, C_ref = _sinkhorn_reference(np.asarray(y_pc), np.asarray(out_pc),
                                             eps=0.1, max_iter=100)
    assert abs(cost_val - cost_ref) < 1e-2 * max(1.0, abs(cost_ref))
    assert np.max(np.abs(np.asarray(C) - C_ref)) < 1e-4

    print("KERNEL_OK")
</pallas_src>

<mosaic_0001>
module attributes {stable_mosaic.version = 11 : i64} {
  func.func @_sinkhorn_kernel(%arg0: memref<128x2xf32, #tpu.memory_space<vmem>>, %arg1: memref<2x128xf32, #tpu.memory_space<vmem>>, %arg2: memref<1x1xf32, #tpu.memory_space<smem>>, %arg3: memref<128x128xf32, #tpu.memory_space<vmem>>) attributes {dimension_semantics = [], scalar_prefetch = 0 : i64, scratch_operands = 0 : i64, tpu.core_type = #tpu.core_type<tc>} {
    %c0 = arith.constant 0 : index
    %c0_0 = arith.constant 0 : index
    %0 = vector.load %arg0[%c0, %c0_0] : memref<128x2xf32, #tpu.memory_space<vmem>>, vector<128x2xf32>
    %c0_1 = arith.constant 0 : index
    %c0_2 = arith.constant 0 : index
    %1 = vector.load %arg1[%c0_1, %c0_2] : memref<2x128xf32, #tpu.memory_space<vmem>>, vector<2x128xf32>
    %2 = vector.extract_strided_slice %0 {offsets = [0, 0], sizes = [128, 1], strides = [1, 1]} : vector<128x2xf32> to vector<128x1xf32>
    %3 = vector.extract_strided_slice %0 {offsets = [0, 1], sizes = [128, 1], strides = [1, 1]} : vector<128x2xf32> to vector<128x1xf32>
    %4 = vector.extract_strided_slice %1 {offsets = [0, 0], sizes = [1, 128], strides = [1, 1]} : vector<2x128xf32> to vector<1x128xf32>
    %5 = vector.extract_strided_slice %1 {offsets = [1, 0], sizes = [1, 128], strides = [1, 1]} : vector<2x128xf32> to vector<1x128xf32>
    %6 = vector.broadcast %2 : vector<128x1xf32> to vector<128x128xf32>
    %7 = vector.broadcast %4 : vector<1x128xf32> to vector<128x128xf32>
    %8 = arith.subf %6, %7 : vector<128x128xf32>
    %9 = vector.broadcast %3 : vector<128x1xf32> to vector<128x128xf32>
    %10 = vector.broadcast %5 : vector<1x128xf32> to vector<128x128xf32>
    %11 = arith.subf %9, %10 : vector<128x128xf32>
    %12 = arith.mulf %8, %8 : vector<128x128xf32>
    %13 = arith.mulf %11, %11 : vector<128x128xf32>
    %14 = arith.addf %12, %13 : vector<128x128xf32>
    %cst = arith.constant -1.000000e+01 : f32
    %15 = vector.broadcast %cst : f32 to vector<128x128xf32>
    %16 = arith.mulf %14, %15 : vector<128x128xf32>
    %17 = tpu.iota {dimensions = array<i32: 0>} : vector<128x128xi32>
    %c100_i32 = arith.constant 100 : i32
    %18 = vector.broadcast %c100_i32 : i32 to vector<128x128xi32>
    %19 = arith.cmpi slt, %17, %18 : vector<128x128xi32>
    %20 = arith.extui %19 : vector<128x128xi1> to vector<128x128xi32>
    %21 = arith.sitofp %20 : vector<128x128xi32> to vector<128x128xf32>
    %22 = tpu.iota {dimensions = array<i32: 1>} : vector<128x128xi32>
    %c100_i32_3 = arith.constant 100 : i32
    %23 = vector.broadcast %c100_i32_3 : i32 to vector<128x128xi32>
    %24 = arith.cmpi slt, %22, %23 : vector<128x128xi32>
    %25 = arith.extui %24 : vector<128x128xi1> to vector<128x128xi32>
    %26 = arith.sitofp %25 : vector<128x128xi32> to vector<128x128xf32>
    %27 = tpu.iota {dimensions = array<i32: 0>} : vector<128x1xi32>
    %c100_i32_4 = arith.constant 100 : i32
    %28 = vector.broadcast %c100_i32_4 : i32 to vector<128x1xi32>
    %29 = arith.cmpi slt, %27, %28 : vector<128x1xi32>
    %30 = arith.extui %29 : vector<128x1xi1> to vector<128x1xi32>
    %31 = arith.sitofp %30 : vector<128x1xi32> to vector<128x1xf32>
    %32 = tpu.iota {dimensions = array<i32: 1>} : vector<1x128xi32>
    %c100_i32_5 = arith.constant 100 : i32
    %33 = vector.broadcast %c100_i32_5 : i32 to vector<1x128xi32>
    %34 = arith.cmpi slt, %32, %33 : vector<1x128xi32>
    %35 = arith.extui %34 : vector<1x128xi1> to vector<1x128xi32>
    %36 = arith.sitofp %35 : vector<1x128xi32> to vector<1x128xf32>
    %cst_6 = arith.constant 0.00999999977 : f32
    %cst_7 = arith.constant 9.99999993E-9 : f32
    %37 = arith.addf %cst_6, %cst_7 : f32
    %38 = math.log %37 : f32
    %cst_8 = arith.constant 0.00999999977 : f32
    %cst_9 = arith.constant 9.99999993E-9 : f32
    %39 = arith.addf %cst_8, %cst_9 : f32
    %40 = math.log %39 : f32
    %cst_10 = arith.constant 0.000000e+00 : f32
    %41 = vector.broadcast %cst_10 : f32 to vector<128x1xf32>
    %cst_11 = arith.constant 0.000000e+00 : f32
    %42 = vector.broadcast %cst_11 : f32 to vector<1x128xf32>
    %cst_12 = arith.constant 9.99999991E-38 : f32
    %cst_13 = arith.constant 0x7F800000 : f32
    %c0_i32 = arith.constant 0 : i32
    %43:4 = scf.while (%arg4 = %41, %arg5 = %42, %arg6 = %cst_13, %arg7 = %c0_i32) : (vector<128x1xf32>, vector<1x128xf32>, f32, i32) -> (vector<128x1xf32>, vector<1x128xf32>, f32, i32) {
      %c25_i32 = arith.constant 25 : i32
      %60 = arith.cmpi slt, %arg7, %c25_i32 : i32
      %cst_19 = arith.constant 1.000000e-01 : f32
      %61 = arith.cmpf oge, %arg6, %cst_19 : f32
      %62 = arith.andi %60, %61 : i1
      scf.condition(%62) %arg4, %arg5, %arg6, %arg7 : vector<128x1xf32>, vector<1x128xf32>, f32, i32
    } do {
    ^bb0(%arg4: vector<128x1xf32>, %arg5: vector<1x128xf32>, %arg6: f32, %arg7: i32):
      %60 = vector.broadcast %arg4 : vector<128x1xf32> to vector<128x128xf32>
      %61 = arith.addf %16, %60 : vector<128x128xf32>
      %62 = vector.broadcast %arg5 : vector<1x128xf32> to vector<128x128xf32>
      %63 = arith.addf %61, %62 : vector<128x128xf32>
      %64 = math.exp %63 : vector<128x128xf32>
      %cst_19 = arith.constant dense<0.000000e+00> : vector<128x128xf32>
      %65 = tpu.matmul %64, %21, %cst_19 {dimension_numbers = #tpu.dot_dimension_numbers<[1], [0], [0], [1], [0, 0, 1, 1], [], []>} : vector<128x128xf32>, vector<128x128xf32>, vector<128x128xf32> -> vector<128x128xf32>
      %66 = vector.extract_strided_slice %65 {offsets = [0, 0], sizes = [128, 1], strides = [1, 1]} : vector<128x128xf32> to vector<128x1xf32>
      %67 = vector.broadcast %cst_12 : f32 to vector<128x1xf32>
      %68 = arith.maximumf %66, %67 : vector<128x1xf32>
      %69 = math.log %68 : vector<128x1xf32>
      %70 = vector.broadcast %38 : f32 to vector<128x1xf32>
      %71 = arith.subf %70, %69 : vector<128x1xf32>
      %72 = arith.mulf %31, %71 : vector<128x1xf32>
      %73 = arith.addf %arg4, %72 : vector<128x1xf32>
      %74 = vector.broadcast %73 : vector<128x1xf32> to vector<128x128xf32>
      %75 = arith.addf %16, %74 : vector<128x128xf32>
      %76 = vector.broadcast %arg5 : vector<1x128xf32> to vector<128x128xf32>
      %77 = arith.addf %75, %76 : vector<128x128xf32>
      %78 = math.exp %77 : vector<128x128xf32>
      %cst_20 = arith.constant dense<0.000000e+00> : vector<128x128xf32>
      %79 = tpu.matmul %26, %78, %cst_20 {dimension_numbers = #tpu.dot_dimension_numbers<[1], [0], [0], [1], [0, 0, 1, 1], [], []>} : vector<128x128xf32>, vector<128x128xf32>, vector<128x128xf32> -> vector<128x128xf32>
      %80 = vector.extract_strided_slice %79 {offsets = [0, 0], sizes = [1, 128], strides = [1, 1]} : vector<128x128xf32> to vector<1x128xf32>
      %81 = vector.broadcast %cst_12 : f32 to vector<1x128xf32>
      %82 = arith.maximumf %80, %81 : vector<1x128xf32>
      %83 = math.log %82 : vector<1x128xf32>
      %84 = vector.broadcast %40 : f32 to vector<1x128xf32>
      %85 = arith.subf %84, %83 : vector<1x128xf32>
      %86 = arith.mulf %36, %85 : vector<1x128xf32>
      %87 = arith.addf %arg5, %86 : vector<1x128xf32>
      %88 = vector.broadcast %73 : vector<128x1xf32> to vector<128x128xf32>
      %89 = arith.addf %16, %88 : vector<128x128xf32>
      %90 = vector.broadcast %87 : vector<1x128xf32> to vector<128x128xf32>
      %91 = arith.addf %89, %90 : vector<128x128xf32>
      %92 = math.exp %91 : vector<128x128xf32>
      %cst_21 = arith.constant dense<0.000000e+00> : vector<128x128xf32>
      %93 = tpu.matmul %92, %21, %cst_21 {dimension_numbers = #tpu.dot_dimension_numbers<[1], [0], [0], [1], [0, 0, 1, 1], [], []>} : vector<128x128xf32>, vector<128x128xf32>, vector<128x128xf32> -> vector<128x128xf32>
      %94 = vector.extract_strided_slice %93 {offsets = [0, 0], sizes = [128, 1], strides = [1, 1]} : vector<128x128xf32> to vector<128x1xf32>
      %95 = vector.broadcast %cst_12 : f32 to vector<128x1xf32>
      %96 = arith.maximumf %94, %95 : vector<128x1xf32>
      %97 = math.log %96 : vector<128x1xf32>
      %98 = vector.broadcast %38 : f32 to vector<128x1xf32>
      %99 = arith.subf %98, %97 : vector<128x1xf32>
      %100 = arith.mulf %31, %99 : vector<128x1xf32>
      %101 = arith.addf %73, %100 : vector<128x1xf32>
      %102 = vector.broadcast %101 : vector<128x1xf32> to vector<128x128xf32>
      %103 = arith.addf %16, %102 : vector<128x128xf32>
      %104 = vector.broadcast %87 : vector<1x128xf32> to vector<128x128xf32>
      %105 = arith.addf %103, %104 : vector<128x128xf32>
      %106 = math.exp %105 : vector<128x128xf32>
      %cst_22 = arith.constant dense<0.000000e+00> : vector<128x128xf32>
      %107 = tpu.matmul %26, %106, %cst_22 {dimension_numbers = #tpu.dot_dimension_numbers<[1], [0], [0], [1], [0, 0, 1, 1], [], []>} : vector<128x128xf32>, vector<128x128xf32>, vector<128x128xf32> -> vector<128x128xf32>
      %108 = vector.extract_strided_slice %107 {offsets = [0, 0], sizes = [1, 128], strides = [1, 1]} : vector<128x128xf32> to vector<1x128xf32>
      %109 = vector.broadcast %cst_12 : f32 to vector<1x128xf32>
      %110 = arith.maximumf %108, %109 : vector<1x128xf32>
      %111 = math.log %110 : vector<1x128xf32>
      %112 = vector.broadcast %40 : f32 to vector<1x128xf32>
      %113 = arith.subf %112, %111 : vector<1x128xf32>
      %114 = arith.mulf %36, %113 : vector<1x128xf32>
      %115 = arith.addf %87, %114 : vector<1x128xf32>
      %116 = vector.broadcast %101 : vector<128x1xf32> to vector<128x128xf32>
      %117 = arith.addf %16, %116 : vector<128x128xf32>
      %118 = vector.broadcast %115 : vector<1x128xf32> to vector<128x128xf32>
      %119 = arith.addf %117, %118 : vector<128x128xf32>
      %120 = math.exp %119 : vector<128x128xf32>
      %cst_23 = arith.constant dense<0.000000e+00> : vector<128x128xf32>
      %121 = tpu.matmul %120, %21, %cst_23 {dimension_numbers = #tpu.dot_dimension_numbers<[1], [0], [0], [1], [0, 0, 1, 1], [], []>} : vector<128x128xf32>, vector<128x128xf32>, vector<128x128xf32> -> vector<128x128xf32>
      %122 = vector.extract_strided_slice %121 {offsets = [0, 0], sizes = [128, 1], strides = [1, 1]} : vector<128x128xf32> to vector<128x1xf32>
      %123 = vector.broadcast %cst_12 : f32 to vector<128x1xf32>
      %124 = arith.maximumf %122, %123 : vector<128x1xf32>
      %125 = math.log %124 : vector<128x1xf32>
      %126 = vector.broadcast %38 : f32 to vector<128x1xf32>
      %127 = arith.subf %126, %125 : vector<128x1xf32>
      %128 = arith.mulf %31, %127 : vector<128x1xf32>
      %129 = arith.addf %101, %128 : vector<128x1xf32>
      %130 = vector.broadcast %129 : vector<128x1xf32> to vector<128x128xf32>
      %131 = arith.addf %16, %130 : vector<128x128xf32>
      %132 = vector.broadcast %115 : vector<1x128xf32> to vector<128x128xf32>
      %133 = arith.addf %131, %132 : vector<128x128xf32>
      %134 = math.exp %133 : vector<128x128xf32>
      %cst_24 = arith.constant dense<0.000000e+00> : vector<128x128xf32>
      %135 = tpu.matmul %26, %134, %cst_24 {dimension_numbers = #tpu.dot_dimension_numbers<[1], [0], [0], [1], [0, 0, 1, 1], [], []>} : vector<128x128xf32>, vector<128x128xf32>, vector<128x128xf32> -> vector<128x128xf32>
      %136 = vector.extract_strided_slice %135 {offsets = [0, 0], sizes = [1, 128], strides = [1, 1]} : vector<128x128xf32> to vector<1x128xf32>
      %137 = vector.broadcast %cst_12 : f32 to vector<1x128xf32>
      %138 = arith.maximumf %136, %137 : vector<1x128xf32>
      %139 = math.log %138 : vector<1x128xf32>
      %140 = vector.broadcast %40 : f32 to vector<1x128xf32>
      %141 = arith.subf %140, %139 : vector<1x128xf32>
      %142 = arith.mulf %36, %141 : vector<1x128xf32>
      %143 = arith.addf %115, %142 : vector<1x128xf32>
      %144 = vector.broadcast %129 : vector<128x1xf32> to vector<128x128xf32>
      %145 = arith.addf %16, %144 : vector<128x128xf32>
      %146 = vector.broadcast %143 : vector<1x128xf32> to vector<128x128xf32>
      %147 = arith.addf %145, %146 : vector<128x128xf32>
      %148 = math.exp %147 : vector<128x128xf32>
      %cst_25 = arith.constant dense<0.000000e+00> : vector<128x128xf32>
      %149 = tpu.matmul %148, %21, %cst_25 {dimension_numbers = #tpu.dot_dimension_numbers<[1], [0], [0], [1], [0, 0, 1, 1], [], []>} : vector<128x128xf32>, vector<128x128xf32>, vector<128x128xf32> -> vector<128x128xf32>
      %150 = vector.extract_strided_slice %149 {offsets = [0, 0], sizes = [128, 1], strides = [1, 1]} : vector<128x128xf32> to vector<128x1xf32>
      %151 = vector.broadcast %cst_12 : f32 to vector<128x1xf32>
      %152 = arith.maximumf %150, %151 : vector<128x1xf32>
      %153 = math.log %152 : vector<128x1xf32>
      %154 = vector.broadcast %38 : f32 to vector<128x1xf32>
      %155 = arith.subf %154, %153 : vector<128x1xf32>
      %156 = arith.mulf %31, %155 : vector<128x1xf32>
      %157 = arith.addf %129, %156 : vector<128x1xf32>
      %158 = vector.broadcast %157 : vector<128x1xf32> to vector<128x128xf32>
      %159 = arith.addf %16, %158 : vector<128x128xf32>
      %160 = vector.broadcast %143 : vector<1x128xf32> to vector<128x128xf32>
      %161 = arith.addf %159, %160 : vector<128x128xf32>
      %162 = math.exp %161 : vector<128x128xf32>
      %cst_26 = arith.constant dense<0.000000e+00> : vector<128x128xf32>
      %163 = tpu.matmul %26, %162, %cst_26 {dimension_numbers = #tpu.dot_dimension_numbers<[1], [0], [0], [1], [0, 0, 1, 1], [], []>} : vector<128x128xf32>, vector<128x128xf32>, vector<128x128xf32> -> vector<128x128xf32>
      %164 = vector.extract_strided_slice %163 {offsets = [0, 0], sizes = [1, 128], strides = [1, 1]} : vector<128x128xf32> to vector<1x128xf32>
      %165 = vector.broadcast %cst_12 : f32 to vector<1x128xf32>
      %166 = arith.maximumf %164, %165 : vector<1x128xf32>
      %167 = math.log %166 : vector<1x128xf32>
      %168 = vector.broadcast %40 : f32 to vector<1x128xf32>
      %169 = arith.subf %168, %167 : vector<1x128xf32>
      %170 = arith.mulf %36, %169 : vector<1x128xf32>
      %171 = arith.addf %143, %170 : vector<1x128xf32>
      %172 = arith.subf %157, %129 : vector<128x1xf32>
      %173 = math.absf %172 : vector<128x1xf32>
      %174 = vector.shape_cast %173 : vector<128x1xf32> to vector<1x128x1xf32>
      %cst_27 = arith.constant dense<0.000000e+00> : vector<1xf32>
      %175 = vector.multi_reduction <add>, %174, %cst_27 [1, 2] : vector<1x128x1xf32> to vector<1xf32>
      %176 = vector.shape_cast %175 : vector<1xf32> to vector<1x1x1xf32>
      %177 = vector.extract %176[0, 0, 0] : f32 from vector<1x1x1xf32>
      %cst_28 = arith.constant 1.000000e-01 : f32
      %178 = arith.mulf %cst_28, %177 : f32
      %c1_i32 = arith.constant 1 : i32
      %179 = arith.addi %arg7, %c1_i32 : i32
      scf.yield %157, %171, %178, %179 : vector<128x1xf32>, vector<1x128xf32>, f32, i32
    }
    %44 = vector.broadcast %43#0 : vector<128x1xf32> to vector<128x128xf32>
    %45 = arith.addf %16, %44 : vector<128x128xf32>
    %46 = vector.broadcast %43#1 : vector<1x128xf32> to vector<128x128xf32>
    %47 = arith.addf %45, %46 : vector<128x128xf32>
    %48 = math.exp %47 : vector<128x128xf32>
    %49 = vector.broadcast %31 : vector<128x1xf32> to vector<128x128xf32>
    %50 = arith.mulf %48, %49 : vector<128x128xf32>
    %51 = vector.broadcast %36 : vector<1x128xf32> to vector<128x128xf32>
    %52 = arith.mulf %50, %51 : vector<128x128xf32>
    %c0_14 = arith.constant 0 : index
    %c0_15 = arith.constant 0 : index
    %53 = vector.load %arg3[%c0_14, %c0_15] : memref<128x128xf32, #tpu.memory_space<vmem>>, vector<128x128xf32>
    tpu.vector_store %arg3[%c0_14, %c0_15], %52 {strides = array<i32>} : memref<128x128xf32, #tpu.memory_space<vmem>>, vector<128x128xf32>,
    %54 = arith.mulf %52, %14 : vector<128x128xf32>
    %55 = vector.shape_cast %54 : vector<128x128xf32> to vector<1x128x128xf32>
    %cst_16 = arith.constant dense<0.000000e+00> : vector<1xf32>
    %56 = vector.multi_reduction <add>, %55, %cst_16 [1, 2] : vector<1x128x128xf32> to vector<1xf32>
    %57 = vector.shape_cast %56 : vector<1xf32> to vector<1x1x1xf32>
    %58 = vector.extract %57[0, 0, 0] : f32 from vector<1x1x1xf32>
    %c0_17 = arith.constant 0 : index
    %c0_18 = arith.constant 0 : index
    %59 = memref.load %arg2[%c0_17, %c0_18] : memref<1x1xf32, #tpu.memory_space<smem>>
    memref.store %58, %arg2[%c0_17, %c0_18] : memref<1x1xf32, #tpu.memory_space<smem>>
    return
  }
}

</mosaic_0001>

<bundles_post_ra>
// kernel: run.1
= control target key start
LH: loop header
LB: loop body
LE: loop exit
PB: predicated region body
PF: predicated region fallthrough
CT: control target
= control target key end

     0   :  { %v111_v2 = vlaneseq  ;;  %v6250_v3 = vmov 0   ;;  %v4631_v9 = vmov 0.0   ;;  %s6246_s0 = inlined_call_operand.vmem [shape: f32[128,2], index: 0, kind: input, shape index: {}]   ;;  %s6247_s1 = inlined_call_operand.vmem [shape: f32[2,128], index: 1, kind: input, shape index: {}]   ;;  %s6248_s2 = inlined_call_operand.hbm [shape: f32[1,1], index: 2, kind: output, shape index: {0}]   ;;  %s6249_s3 = inlined_call_operand.vmem [shape: f32[128,128], index: 3, kind: output, shape index: {1}]  }
   0x1   :  { %v16_v0 = vld [vmem:[%s6246_s0 + $0x10] sm:$0xff]  ;;  %v14_v1 = vld [vmem:[%s6246_s0] sm:$0xff]  ;;  %4045 = vset.pattern.permute.xlu1 %v6250_v3  ;;  %4044 = vset.pattern.permute.xlu0 %v6250_v3  ;;  %v17_v6 = vld [vmem:[%s6246_s0 + $0x18] sm:$0xff] }
   0x2   :  { %43 = vperm.xlu1 %4045, %v16_v0   ;;  %33 = vperm.xlu0 %4044, %v14_v1   ;;  %v4664_v4 = vshrl.u32 %v111_v2, 7  ;;  %v4666_v5 = vand.u32 127, %v111_v2  ;;  %v15_v7 = vld [vmem:[%s6246_s0 + $0x8] sm:$0xff] }
   0x4   :  { %6298 = vst [vmem:[#allocation5_spill] sm:$0xff] %v4666_v5  ;;  %v4675_v8 = vadd.s32 96, %v4664_v4  ;;  %vm346_vm0 = vcmp.lt.s32.totalorder %v4666_v5, 100 }
   0x5   :  { %v4680_v10 = vsel %vm346_vm0, 1.0, %v4631_v9 }
   0x6   :  { %6299 = vst [vmem:[#allocation6_spill] sm:$0xff] %v4675_v8 }
   0x7   :  { %9 = vsyncpa [#allocation3], 0  ;;  %48 = vperm.xlu1 %4045, %v17_v6   ;;  %38 = vperm.xlu0 %4044, %v15_v7   ;;  %vm308_vm1 = vcmp.lt.s32.totalorder %v4675_v8, 100  ;;  %v19_v11 = vld [vmem:[%s6246_s0 + $0x28] sm:$0xff]  ;;  %v18_v12 = vld [vmem:[%s6246_s0 + $0x20] sm:$0xff]  ;;  %v4632_v24 = vmov 1  }
   0x8   :  { %v4691_v13 = vsel %vm308_vm1, 1.0, %v4631_v9  ;;  %v21_v14 = vld [vmem:[%s6246_s0 + $0x38] sm:$0xff]  ;;  %v20_v15 = vld [vmem:[%s6246_s0 + $0x30] sm:$0xff]  ;;  %v23_v16 = vld [vmem:[%s6246_s0 + $0x48] sm:$0xff]  ;;  %v4728_v37 = vsub.s32 0, %v4664_v4  ;;  %v197_v41 = vsub.s32 1, %v4664_v4 }
   0x9   :  { %v22_v17 = vld [vmem:[%s6246_s0 + $0x40] sm:$0xff]  ;;  %v25_v18 = vld [vmem:[%s6246_s0 + $0x58] sm:$0xff]  ;;  %v24_v19 = vld [vmem:[%s6246_s0 + $0x50] sm:$0xff] }
   0xa   :  { %v27_v20 = vld [vmem:[%s6246_s0 + $0x68] sm:$0xff]  ;;  %v26_v21 = vld [vmem:[%s6246_s0 + $0x60] sm:$0xff]  ;;  %v29_v22 = vld [vmem:[%s6246_s0 + $0x78] sm:$0xff]  ;;  %6300 = vst [vmem:[#allocation7_spill] sm:$0xff] %v4728_v37 }
   0xb   :  { %58 = vperm.xlu1 %4045, %v19_v11   ;;  %53 = vperm.xlu0 %4044, %v18_v12   ;;  %v28_v23 = vld [vmem:[%s6246_s0 + $0x70] sm:$0xff]  ;;  %v30_v40 = vld [vmem:[%s6247_s1] sm:$0x3]  ;;  %s4865_s1 = smov 0  }
   0xc   :  { %v4739_v42 = vrot.slane %v30_v40, %v4728_v37  ;;  %v4745_v45 = vrot.slane %v30_v40, %v197_v41 }
   0xf   :  { %68 = vperm.xlu1 %4045, %v21_v14   ;;  %63 = vperm.xlu0 %4044, %v20_v15  }
  0x13   :  { %78 = vperm.xlu1 %4045, %v23_v16   ;;  %73 = vperm.xlu0 %4044, %v22_v17  }
  0x17   :  { %88 = vperm.xlu1 %4045, %v25_v18   ;;  %83 = vperm.xlu0 %4044, %v24_v19  }
  0x1b   :  { %98 = vperm.xlu1 %4045, %v27_v20   ;;  %93 = vperm.xlu0 %4044, %v26_v21  }
  0x1f   :  { %108 = vperm.xlu1 %4045, %v29_v22   ;;  %103 = vperm.xlu0 %4044, %v28_v23  }
  0x23   :  { %4047 = vset.pattern.permute.xlu1 %v4632_v24  ;;  %4046 = vset.pattern.permute.xlu0 %v4632_v24 }
  0x24   :  { %136 = vperm.xlu1 %4047, %v15_v7   ;;  %132 = vperm.xlu0 %4046, %v14_v1  }
  0x28   :  { %140 = vperm.xlu1 %4047, %v16_v0   ;;  %144 = vperm.xlu0 %4046, %v17_v6  }
  0x2c   :  { %148 = vperm.xlu1 %4047, %v18_v12   ;;  %152 = vperm.xlu0 %4046, %v19_v11  }
  0x30   :  { %156 = vperm.xlu1 %4047, %v20_v15   ;;  %160 = vperm.xlu0 %4046, %v21_v14  }
  0x34   :  { %164 = vperm.xlu1 %4047, %v22_v17   ;;  %168 = vperm.xlu0 %4046, %v23_v16  }
  0x38   :  { %172 = vperm.xlu1 %4047, %v24_v19   ;;  %176 = vperm.xlu0 %4046, %v25_v18  }
  0x3c   :  { %180 = vperm.xlu1 %4047, %v26_v21   ;;  %184 = vperm.xlu0 %4046, %v27_v20  }
  0x40   :  { %188 = vperm.xlu1 %4047, %v28_v23   ;;  %192 = vperm.xlu0 %4046, %v29_v22  }
  0x7d   :  { %v44_v25 = vpop.permute.xlu1 %43  ;;  %v34_v26 = vpop.permute.xlu0 %33 }
  0x7e   :  { %v115_v46 = vsub.f32 %v34_v26, %v4739_v42  ;;  %v117_v52 = vsub.f32 %v44_v25, %v4739_v42 }
  0x80   :  { %v215_v54 = vmul.f32 %v115_v46, %v115_v46  ;;  %v217_v0 = vmul.f32 %v117_v52, %v117_v52 }
  0x82   :  { %v49_v27 = vpop.permute.xlu1 %48  ;;  %v39_v28 = vpop.permute.xlu0 %38 }
  0x83   :  { %v116_v47 = vsub.f32 %v39_v28, %v4739_v42  ;;  %v118_v53 = vsub.f32 %v49_v27, %v4739_v42 }
  0x85   :  { %v216_v55 = vmul.f32 %v116_v47, %v116_v47  ;;  %v218_v1 = vmul.f32 %v118_v53, %v118_v53 }
  0x86   :  { %v59_v29 = vpop.permute.xlu1 %58  ;;  %v54_v30 = vpop.permute.xlu0 %53 }
  0x87   :  { %v120_v2 = vsub.f32 %v59_v29, %v4739_v42  ;;  %v119_v4 = vsub.f32 %v54_v30, %v4739_v42 }
  0x89   :  { %v220_v19 = vmul.f32 %v120_v2, %v120_v2  ;;  %v219_v20 = vmul.f32 %v119_v4, %v119_v4 }
  0x8a   :  { %v69_v31 = vpop.permute.xlu1 %68  ;;  %v64_v32 = vpop.permute.xlu0 %63 }
  0x8b   :  { %v122_v21 = vsub.f32 %v69_v31, %v4739_v42  ;;  %v121_v22 = vsub.f32 %v64_v32, %v4739_v42 }
  0x8d   :  { %v222_v41 = vmul.f32 %v122_v21, %v122_v21  ;;  %v221_v32 = vmul.f32 %v121_v22, %v121_v22 }
  0x8e   :  { %v79_v33 = vpop.permute.xlu1 %78  ;;  %v74_v34 = vpop.permute.xlu0 %73 }
  0x8f   :  { %v124_v46 = vsub.f32 %v79_v33, %v4739_v42  ;;  %v123_v47 = vsub.f32 %v74_v34, %v4739_v42 }
  0x91   :  { %v223_v34 = vmul.f32 %v123_v47, %v123_v47 }
  0x92   :  { %v4723_v35 = vpop.permute.xlu1 %88  ;;  %v4725_v36 = vpop.permute.xlu0 %83 }
  0x96   :  { %v4730_v38 = vpop.permute.xlu1 %98  ;;  %v4732_v39 = vpop.permute.xlu0 %93 }
  0x9a   :  { %v4741_v43 = vpop.permute.xlu1 %108  ;;  %v4743_v44 = vpop.permute.xlu0 %103 }
  0x9f   :  { %v137_v48 = vpop.permute.xlu1 %136  ;;  %v133_v49 = vpop.permute.xlu0 %132 }
  0xa0   :  { %v200_v50 = vsub.f32 %v137_v48, %v4745_v45  ;;  %v199_v51 = vsub.f32 %v133_v49, %v4745_v45 }
  0xa2   :  { %v232_v56 = vmul.f32 %v200_v50, %v200_v50  ;;  %v231_v57 = vmul.f32 %v199_v51, %v199_v51 }
  0xa3   :  { %v141_v58 = vpop.permute.xlu1 %140  ;;  %v145_v59 = vpop.permute.xlu0 %144 }
  0xa4   :  { %v4753_v60 = vadd.f32 %v232_v56, %v216_v55  ;;  %v4755_v61 = vadd.f32 %v231_v57, %v215_v54  ;;  %v201_v62 = vsub.f32 %v141_v58, %v4745_v45  ;;  %v202_v63 = vsub.f32 %v145_v59, %v4745_v45 }
  0xa5   :  { %v224_v57 = vmul.f32 %v124_v46, %v124_v46  ;;  %v126_v58 = vsub.f32 %v4723_v35, %v4739_v42  ;;  %v125_v59 = vsub.f32 %v4725_v36, %v4739_v42 }
  0xa6   :  { %6301 = vst [vmem:[#allocation8_spill] sm:$0xff] %v4753_v60  ;;  %6302 = vst [vmem:[#allocation9_spill] sm:$0xff] %v4755_v61  ;;  %v4762_v6 = vmul.f32 -10.0, %v4753_v60  ;;  %v4765_v7 = vmul.f32 -10.0, %v4755_v61  ;;  %v233_v9 = vmul.f32 %v201_v62, %v201_v62  ;;  %v234_v11 = vmul.f32 %v202_v63, %v202_v63 }
  0xa7   :  { %v149_v12 = vpop.permute.xlu1 %148  ;;  %v153_v14 = vpop.permute.xlu0 %152  ;;  %v225_v36 = vmul.f32 %v125_v59, %v125_v59 }
  0xa8   :  { %6303 = vst [vmem:[#allocation10_spill] sm:$0xff] %v4762_v6  ;;  %6304 = vst [vmem:[#allocation11_spill] sm:$0xff] %v4765_v7  ;;  %v4767_v15 = vadd.f32 %v233_v9, %v217_v0  ;;  %v4769_v16 = vadd.f32 %v234_v11, %v218_v1  ;;  %v203_v17 = vsub.f32 %v149_v12, %v4745_v45 }
  0xa9   :  { %v204_v18 = vsub.f32 %v153_v14, %v4745_v45  ;;  %v226_v14 = vmul.f32 %v126_v58, %v126_v58 }
  0xaa   :  { %6305 = vst [vmem:[#allocation12_spill] sm:$0xff] %v4767_v15  ;;  %6306 = vst [vmem:[#allocation13_spill] sm:$0xff] %v4769_v16  ;;  %v4776_v23 = vmul.f32 -10.0, %v4767_v15  ;;  %v4779_v24 = vmul.f32 -10.0, %v4769_v16  ;;  %v235_v25 = vmul.f32 %v203_v17, %v203_v17  ;;  %v128_v17 = vsub.f32 %v4730_v38, %v4739_v42 }
  0xab   :  { %v236_v26 = vmul.f32 %v204_v18, %v204_v18  ;;  %v157_v27 = vpop.permute.xlu1 %156  ;;  %v161_v28 = vpop.permute.xlu0 %160  ;;  %v127_v18 = vsub.f32 %v4732_v39, %v4739_v42 }
  0xac   :  { %6307 = vst [vmem:[#allocation14_spill] sm:$0xff] %v4776_v23  ;;  %6308 = vst [vmem:[#allocation15_spill] sm:$0xff] %v4779_v24  ;;  %v4781_v29 = vadd.f32 %v235_v25, %v219_v20  ;;  %v205_v40 = vsub.f32 %v157_v27, %v4745_v45  ;;  %v206_v31 = vsub.f32 %v161_v28, %v4745_v45 }
  0xad   :  { %v4783_v30 = vadd.f32 %v236_v26, %v220_v19  ;;  %v227_v39 = vmul.f32 %v127_v18, %v127_v18  ;;  %v4877_v18 = vmov 0.0  }
  0xae   :  { %6309 = vst [vmem:[#allocation16_spill] sm:$0xff] %v4781_v29  ;;  %v4790_v48 = vmul.f32 -10.0, %v4781_v29  ;;  %v237_v50 = vmul.f32 %v205_v40, %v205_v40  ;;  %v238_v51 = vmul.f32 %v206_v31, %v206_v31  ;;  %v228_v31 = vmul.f32 %v128_v17, %v128_v17 }
  0xaf   :  { %6310 = vst [vmem:[#allocation17_spill] sm:$0xff] %v4783_v30  ;;  %v4793_v49 = vmul.f32 -10.0, %v4783_v30  ;;  %v165_v52 = vpop.permute.xlu1 %164  ;;  %v169_v53 = vpop.permute.xlu0 %168  ;;  %v4875_v17 = vmov 0.0  }
  0xb0   :  { %6311 = vst [vmem:[#allocation18_spill] sm:$0xff] %v4790_v48  ;;  %v4795_v54 = vadd.f32 %v237_v50, %v221_v32  ;;  %v4797_v55 = vadd.f32 %v238_v51, %v222_v41  ;;  %v207_v56 = vsub.f32 %v165_v52, %v4745_v45  ;;  %v208_v33 = vsub.f32 %v169_v53, %v4745_v45 }
  0xb1   :  { %6312 = vst [vmem:[#allocation19_spill] sm:$0xff] %v4793_v49  ;;  %v130_v41 = vsub.f32 %v4741_v43, %v4739_v42  ;;  %v129_v32 = vsub.f32 %v4743_v44, %v4739_v42 }
  0xb2   :  { %6313 = vst [vmem:[#allocation20_spill] sm:$0xff] %v4795_v54  ;;  %6314 = vst [vmem:[#allocation21_spill] sm:$0xff] %v4797_v55  ;;  %v4806_v62 = vmul.f32 -10.0, %v4795_v54  ;;  %v4809_v63 = vmul.f32 -10.0, %v4797_v55  ;;  %v239_v0 = vmul.f32 %v207_v56, %v207_v56  ;;  %v240_v1 = vmul.f32 %v208_v33, %v208_v33 }
  0xb3   :  { %v173_v2 = vpop.permute.xlu1 %172  ;;  %v177_v4 = vpop.permute.xlu0 %176  ;;  %v229_v42 = vmul.f32 %v129_v32, %v129_v32  ;;  %v4897_v32 = vmov 0.0  }
  0xb4   :  { %6315 = vst [vmem:[#allocation22_spill] sm:$0xff] %v4806_v62  ;;  %6316 = vst [vmem:[#allocation23_spill] sm:$0xff] %v4809_v63  ;;  %v4811_v9 = vadd.f32 %v239_v0, %v223_v34  ;;  %v4813_v11 = vadd.f32 %v240_v1, %v224_v57  ;;  %v209_v12 = vsub.f32 %v173_v2, %v4745_v45 }
  0xb5   :  { %v210_v35 = vsub.f32 %v177_v4, %v4745_v45  ;;  %v230_v34 = vmul.f32 %v130_v41, %v130_v41  ;;  %v4895_v41 = vmov 0.0  }
  0xb6   :  { %6317 = vst [vmem:[#allocation24_spill] sm:$0xff] %v4811_v9  ;;  %6318 = vst [vmem:[#allocation25_spill] sm:$0xff] %v4813_v11  ;;  %v4822_v19 = vmul.f32 -10.0, %v4811_v9  ;;  %v4825_v20 = vmul.f32 -10.0, %v4813_v11  ;;  %v241_v21 = vmul.f32 %v209_v12, %v209_v12 }
  0xb7   :  { %v242_v22 = vmul.f32 %v210_v35, %v210_v35  ;;  %v181_v25 = vpop.permute.xlu1 %180  ;;  %v185_v26 = vpop.permute.xlu0 %184  ;;  %v4869_v35 = vmov 0.0  }
  0xb8   :  { %v4827_v27 = vadd.f32 %v241_v21, %v225_v36  ;;  %v211_v40 = vsub.f32 %v181_v25, %v4745_v45  ;;  %v212_v38 = vsub.f32 %v185_v26, %v4745_v45  ;;  %v4873_v36 = vmov 0.0  }
  0xb9   :  { %v4829_v28 = vadd.f32 %v242_v22, %v226_v14  ;;  %v4871_v14 = vmov 0.0   ;;  %v4879_v21 = vmov 0.0   ;;  %v4881_v22 = vmov 0.0  }
  0xba   :  { %6319 = vst [vmem:[#allocation26_spill] sm:$0xff] %v4827_v27  ;;  %v4838_v46 = vmul.f32 -10.0, %v4827_v27  ;;  %v243_v50 = vmul.f32 %v211_v40, %v211_v40  ;;  %v244_v51 = vmul.f32 %v212_v38, %v212_v38  ;;  %v4883_v25 = vmov 0.0  }
  0xbb   :  { %6320 = vst [vmem:[#allocation27_spill] sm:$0xff] %v4829_v28  ;;  %v4841_v47 = vmul.f32 -10.0, %v4829_v28  ;;  %v189_v52 = vpop.permute.xlu1 %188  ;;  %v193_v53 = vpop.permute.xlu0 %192  ;;  %v4885_v26 = vmov 0.0   ;;  %v4887_v40 = vmov 0.0   ;;  %v4889_v38 = vmov 0.0  }
  0xbc   :  { %v4843_v56 = vadd.f32 %v243_v50, %v227_v39  ;;  %v4845_v33 = vadd.f32 %v244_v51, %v228_v31  ;;  %v213_v57 = vsub.f32 %v189_v52, %v4745_v45  ;;  %v214_v43 = vsub.f32 %v193_v53, %v4745_v45 }
  0xbd   :  { %v4867_v45 = vmov 0.0   ;;  %v4891_v31 = vmov 0.0   ;;  %v4893_v39 = vmov 0.0   ;;  %v4899_v50 = vmov 0.0  }
  0xbe   :  { %6321 = vst [vmem:[#allocation28_spill] sm:$0xff] %v4843_v56  ;;  %6322 = vst [vmem:[#allocation29_spill] sm:$0xff] %v4845_v33  ;;  %v4850_v44 = vmul.f32 -10.0, %v4843_v56  ;;  %v4853_v58 = vmul.f32 -10.0, %v4845_v33  ;;  %v245_v59 = vmul.f32 %v213_v57, %v213_v57  ;;  %v246_v0 = vmul.f32 %v214_v43, %v214_v43 }
  0xc0   :  { %v4855_v1 = vadd.f32 %v245_v59, %v229_v42  ;;  %v4857_v2 = vadd.f32 %v246_v0, %v230_v34 }
  0xc2   :  { %6323 = vst [vmem:[#allocation30_spill] sm:$0xff] %v4855_v1  ;;  %6324 = vst [vmem:[#allocation31_spill] sm:$0xff] %v4857_v2  ;;  %v4860_v4 = vmul.f32 -10.0, %v4855_v1  ;;  %v4863_v12 = vmul.f32 -10.0, %v4857_v2 }
  0xc3 LB: > { %v6325_v63 = vld [vmem:[#allocation23_spill] sm:$0xff]  ;;  %v6326_v62 = vld [vmem:[#allocation22_spill] sm:$0xff]  ;;  %6335 = vst [vmem:[#allocation32_spill] sm:$0xff] %v4564_v45  ;;  %v4633_v51 = vmov 0   ;;  %v6254_v52 = vmov 1.0   ;;  %vm2795_vm2 = vcmask 7168   ;;  %v4596_v25 = vphi %v4883_v25, %v6387_v25   ;;  %v4592_v22 = vphi %v4881_v22, %v6386_v22   ;;  %v4588_v21 = vphi %v4879_v21, %v6385_v21   ;;  %v4584_v18 = vphi %v4877_v18, %v6384_v18   ;;  %v4580_v17 = vphi %v4875_v17, %v6383_v17   ;;  %v4576_v36 = vphi %v4873_v36, %v6382_v36   ;;  %v4572_v14 = vphi %v4871_v14, %v6381_v14   ;;  %v4568_v35 = vphi %v4869_v35, %v6380_v35   ;;  %v4564_v45 = vphi %v4867_v45, %v6379_v45   ;;  %s4560_s1 = sphi %s4865_s1, %s2837_s1   ;;  %v4628_v50 = vphi %v4899_v50, %v6395_v50   ;;  %v4624_v32 = vphi %v4897_v32, %v6394_v32   ;;  %v4620_v41 = vphi %v4895_v41, %v6393_v41   ;;  %v4616_v39 = vphi %v4893_v39, %v6392_v39   ;;  %v4612_v31 = vphi %v4891_v31, %v6391_v31   ;;  %v4608_v38 = vphi %v4889_v38, %v6390_v38   ;;  %v4604_v40 = vphi %v4887_v40, %v6389_v40   ;;  %v4600_v26 = vphi %v4885_v26, %v6388_v26  }
  0xc4   : > { %v6327_v49 = vld [vmem:[#allocation19_spill] sm:$0xff]  ;;  %v6328_v48 = vld [vmem:[#allocation18_spill] sm:$0xff]  ;;  %4049 = vset.pattern.permute.xlu1 %v4633_v51  ;;  %4048 = vset.pattern.permute.xlu0 %v4633_v51  ;;  %s2837_s1 = sadd.s32 1, %s4560_s1  }
  0xc5   : > { %v6330_v24 = vld [vmem:[#allocation15_spill] sm:$0xff]  ;;  %v6331_v23 = vld [vmem:[#allocation14_spill] sm:$0xff]  ;;  %377 = vperm.xlu0 %4048, %v4628_v50   ;;  %387 = vperm.xlu1 %4049, %v4620_v41   ;;  %p6040_p0 = scmp.lt.s32.totalorder %s2837_s1, 25 }
  0xc6   : > { %v6332_v6 = vld [vmem:[#allocation10_spill] sm:$0xff]  ;;  %v6333_v7 = vld [vmem:[#allocation11_spill] sm:$0xff]  ;;  %3466 = vmatprep.subr.msk.mxu0 %vm308_vm1, %v6254_v52  ;;  %3548 = vmatprep.mubr.msk.f32.mxu1 %vm346_vm0, %v6254_v52 }
  0xc7   : > { %3467 = vmatpush3.msk.msra.mxu0 %vm308_vm1, %v6254_v52  ;;  %v6336_v37 = vld [vmem:[#allocation7_spill] sm:$0xff] }
  0xc8   : > { %3468 = vmatprep.subr.mxu0 %v6254_v52  ;;  %v5009_v53 = vrot.slane %v4564_v45, %v6336_v37 }
  0xc9   : > { %382 = vperm.xlu0 %4048, %v4624_v32   ;;  %392 = vperm.xlu1 %4049, %v4616_v39  }
  0xca   : > { %3469 = vmatpush3.msra.mxu0 %v6254_v52 }
  0xcb   : > { %3470 = vmatprep.subr.mxu0 %v6254_v52 }
  0xcc   : > { %3471 = vmatpush3.msra.mxu0 %v6254_v52 }
  0xcd   : > { %397 = vperm.xlu0 %4048, %v4612_v31   ;;  %402 = vperm.xlu1 %4049, %v4608_v38  }
  0xce   : > { %3472 = vmatprep.subr.mxu0 %v6254_v52 }
  0xcf   : > { %3473 = vmatpush3.msra.mxu0 %v6254_v52 }
  0xd0   : > { %3474 = vmatprep.subr.mxu0 %v6254_v52 }
  0xd1   : > { %407 = vperm.xlu0 %4048, %v4604_v40   ;;  %412 = vperm.xlu1 %4049, %v4600_v26  }
  0xd2   : > { %3475 = vmatpush3.msra.mxu0 %v6254_v52 }
  0xd3   : > { %3476 = vmatprep.subr.mxu0 %v6254_v52 }
  0xd4   : > { %3477 = vmatpush3.msra.mxu0 %v6254_v52 }
  0xd5   : > { %417 = vperm.xlu0 %4048, %v4596_v25   ;;  %422 = vperm.xlu1 %4049, %v4592_v22  }
  0xd6   : > { %3478 = vmatprep.subr.mxu0 %v6254_v52 }
  0xd7   : > { %3479 = vmatpush3.msra.mxu0 %v6254_v52 }
  0xd8   : > { %3480 = vmatprep.subr.mxu0 %v6254_v52 }
  0xd9   : > { %427 = vperm.xlu0 %4048, %v4588_v21   ;;  %432 = vperm.xlu1 %4049, %v4584_v18  }
  0xda   : > { %3481 = vmatpush3.msra.mxu0 %v6254_v52 }
  0xdb   : > { %3482 = vmatprep.subr.mxu0 %v6254_v52 }
  0xdc   : > { %3483 = vmatpush3.msra.mxu0 %v6254_v52 }
  0xdd   : > { %437 = vperm.xlu0 %4048, %v4580_v17   ;;  %442 = vperm.xlu1 %4049, %v4576_v36  }
  0xde   : > { %3484 = vmatprep.subr.mxu0 %v6254_v52 }
  0xdf   : > { %3485 = vmatpush3.msra.mxu0 %v6254_v52 }
  0xe0   : > { %3486 = vmatprep.subr.mxu0 %v6254_v52 }
  0xe1   : > { %447 = vperm.xlu0 %4048, %v4572_v14   ;;  %452 = vperm.xlu1 %4049, %v4568_v35  }
  0xe2   : > { %3487 = vmatpush3.msra.mxu0 %v6254_v52 }
  0xe3   : > { %3488 = vmatprep.subr.mxu0 %v6254_v52 }
  0xe4   : > { %3489 = vmatpush3.msra.mxu0 %v6254_v52 }
  0xe5   : > { %3490 = vmatprep.subr.mxu0 %v6254_v52 }
  0xe6   : > { %3491 = vmatpush3.msra.mxu0 %v6254_v52 }
  0xe7   : > { %3572 = vmatprep.subr.msk.mxu0 %vm308_vm1, %v6254_v52 }
 0x140   : > { %v378_v57 = vpop.permute.xlu0 %377  ;;  %v388_v43 = vpop.permute.xlu1 %387 }
 0x141   : > { %v455_v34 = vadd.f32 %v378_v57, %v6333_v7  ;;  %v457_v42 = vadd.f32 %v388_v43, %v6331_v23 }
 0x143   : > { %v475_v59 = vadd.f32 %v5009_v53, %v455_v34  ;;  %v477_v0 = vadd.f32 %v5009_v53, %v457_v42 }
 0x144   : > { %v383_v51 = vpop.permute.xlu0 %382  ;;  %v393_v3 = vpop.permute.xlu1 %392 }
 0x145   : > { %v491_v2 = vmul.f32 1.442695, %v475_v59  ;;  %v456_v1 = vadd.f32 %v383_v51, %v6332_v6  ;;  %v458_v52 = vadd.f32 %v393_v3, %v6330_v24  ;;  %v495_v33 = vmul.f32 1.442695, %v477_v0 }
 0x147   : > { %v476_v56 = vadd.f32 %v5009_v53, %v456_v1  ;;  %v478_v28 = vadd.f32 %v5009_v53, %v458_v52  ;;  %4050 = vpow2.f32 %v491_v2 }
 0x148   : > { %v398_v27 = vpop.permute.xlu0 %397  ;;  %v403_v57 = vpop.permute.xlu1 %402  ;;  %4052 = vpow2.f32 %v495_v33 }
 0x149   : > { %v493_v43 = vmul.f32 1.442695, %v476_v56  ;;  %v459_v34 = vadd.f32 %v398_v27, %v6328_v48  ;;  %v460_v42 = vadd.f32 %v403_v57, %v6327_v49  ;;  %v497_v11 = vmul.f32 1.442695, %v478_v28 }
 0x14b   : > { %4054 = vpow2.f32 %v493_v43  ;;  %v479_v59 = vadd.f32 %v5009_v53, %v459_v34  ;;  %v480_v3 = vadd.f32 %v5009_v53, %v460_v42 }
 0x14c   : > { %v408_v0 = vpop.permute.xlu0 %407  ;;  %v413_v51 = vpop.permute.xlu1 %412  ;;  %4056 = vpow2.f32 %v497_v11 }
 0x14d   : > { %v499_v1 = vmul.f32 1.442695, %v479_v59  ;;  %v461_v52 = vadd.f32 %v408_v0, %v6326_v62  ;;  %v462_v9 = vadd.f32 %v413_v51, %v6325_v63  ;;  %v501_v56 = vmul.f32 1.442695, %v480_v3 }
 0x14f   : > { %4058 = vpow2.f32 %v499_v1  ;;  %v481_v27 = vadd.f32 %v5009_v53, %v461_v52  ;;  %v482_v33 = vadd.f32 %v5009_v53, %v462_v9 }
 0x150   : > { %v418_v28 = vpop.permute.xlu0 %417  ;;  %v423_v2 = vpop.permute.xlu1 %422  ;;  %4060 = vpow2.f32 %v501_v56 }
 0x151   : > { %v503_v57 = vmul.f32 1.442695, %v481_v27  ;;  %v463_v43 = vadd.f32 %v418_v28, %v4822_v19  ;;  %v464_v34 = vadd.f32 %v423_v2, %v4825_v20  ;;  %v505_v42 = vmul.f32 1.442695, %v482_v33 }
 0x153   : > { %4062 = vpow2.f32 %v503_v57  ;;  %v483_v59 = vadd.f32 %v5009_v53, %v463_v43  ;;  %v484_v11 = vadd.f32 %v5009_v53, %v464_v34 }
 0x154   : > { %v428_v3 = vpop.permute.xlu0 %427  ;;  %v433_v0 = vpop.permute.xlu1 %432  ;;  %4064 = vpow2.f32 %v505_v42  ;;  %v6337_v42 = vmov 1.0  }
 0x155   : > { %v4051_v51 = vpop.eup %4050  ;;  %v507_v1 = vmul.f32 1.442695, %v483_v59  ;;  %v465_v9 = vadd.f32 %v428_v3, %v4838_v46  ;;  %v466_v52 = vadd.f32 %v433_v0, %v4841_v47  ;;  %v509_v27 = vmul.f32 1.442695, %v484_v11 }
 0x156   : > { %3492 = vmatprep.mubr.f32.mxu0 %v4051_v51  ;;  %v4053_v28 = vpop.eup %4052 }
 0x157   : > { %4066 = vpow2.f32 %v507_v1  ;;  %v485_v56 = vadd.f32 %v5009_v53, %v465_v9  ;;  %v486_v33 = vadd.f32 %v5009_v53, %v466_v52 }
 0x158   : > { %v4055_v2 = vpop.eup %4054  ;;  %v438_v57 = vpop.permute.xlu0 %437  ;;  %4068 = vpow2.f32 %v509_v27 }
 0x159   : > { %v443_v43 = vpop.permute.xlu1 %442  ;;  %v511_v34 = vmul.f32 1.442695, %v485_v56  ;;  %v467_v55 = vadd.f32 %v438_v57, %v4850_v44  ;;  %3493 = vmatmul.mubr.f32.vlgmr.msra.gmra.mxu0 %v4055_v2  ;;  %v513_v3 = vmul.f32 1.442695, %v486_v33  ;;  %v4057_v11 = vpop.eup %4056 }
 0x15a   : > { %v468_v59 = vadd.f32 %v443_v43, %v4853_v58  ;;  %3495 = vmatprep.mubr.f32.mxu0 %v4053_v28  ;;  %3573 = vmatpush3.msk.msra.mxu0 %vm308_vm1, %v6337_v42 }
 0x15b   : > { %4070 = vpow2.f32 %v511_v34  ;;  %v487_v0 = vadd.f32 %v5009_v53, %v467_v55  ;;  %3574 = vmatprep.subr.mxu0 %v6337_v42 }
 0x15c   : > { %v488_v51 = vadd.f32 %v5009_v53, %v468_v59  ;;  %v4059_v1 = vpop.eup %4058  ;;  %v448_v9 = vpop.permute.xlu0 %447  ;;  %3575 = vmatpush3.msra.mxu0 %v6337_v42  ;;  %4072 = vpow2.f32 %v513_v3 }
 0x15d   : > { %v453_v52 = vpop.permute.xlu1 %452  ;;  %v515_v27 = vmul.f32 1.442695, %v487_v0  ;;  %v469_v28 = vadd.f32 %v448_v9, %v4860_v4  ;;  %3496 = vmatmul.mubr.f32.gmra.mxu0 %v4057_v11  ;;  %3576 = vmatprep.subr.mxu0 %v6337_v42  ;;  %v4061_v55 = vpop.eup %4060 }
 0x15e   : > { %v470_v56 = vadd.f32 %v453_v52, %v4863_v12  ;;  %v517_v33 = vmul.f32 1.442695, %v488_v51  ;;  %3498 = vmatprep.mubr.f32.mxu0 %v4059_v1  ;;  %3577 = vmatpush3.msra.mxu0 %v6337_v42 }
 0x15f   : > { %4074 = vpow2.f32 %v515_v27  ;;  %v489_v2 = vadd.f32 %v5009_v53, %v469_v28  ;;  %3578 = vmatprep.subr.mxu0 %v6337_v42 }
 0x160   : > { %v490_v57 = vadd.f32 %v5009_v53, %v470_v56  ;;  %v4063_v43 = vpop.eup %4062  ;;  %3579 = vmatpush3.msra.mxu0 %v6337_v42  ;;  %4076 = vpow2.f32 %v517_v33 }
 0x161   : > { %v519_v34 = vmul.f32 1.442695, %v489_v2  ;;  %3499 = vmatmul.mubr.f32.gmra.mxu0 %v4061_v55  ;;  %3580 = vmatprep.subr.mxu0 %v6337_v42  ;;  %v4065_v59 = vpop.eup %4064 }
 0x162   : > { %3501 = vmatprep.mubr.f32.mxu0 %v4063_v43  ;;  %3581 = vmatpush3.msra.mxu0 %v6337_v42  ;;  %v521_v3 = vmul.f32 1.442695, %v490_v57 }
 0x163   : > { %4078 = vpow2.f32 %v519_v34  ;;  %3582 = vmatprep.subr.mxu0 %v6337_v42 }
 0x164   : > { %v4067_v11 = vpop.eup %4066  ;;  %3583 = vmatpush3.msra.mxu0 %v6337_v42  ;;  %4080 = vpow2.f32 %v521_v3 }
 0x165   : > { %3502 = vmatmul.mubr.f32.gmra.mxu0 %v4065_v59  ;;  %3584 = vmatprep.subr.mxu0 %v6337_v42  ;;  %v4069_v0 = vpop.eup %4068 }
 0x166   : > { %3504 = vmatprep.mubr.f32.mxu0 %v4067_v11  ;;  %3585 = vmatpush3.msra.mxu0 %v6337_v42 }
 0x167   : > { %3586 = vmatprep.subr.mxu0 %v6337_v42 }
 0x168   : > { %v4071_v51 = vpop.eup %4070  ;;  %3587 = vmatpush3.msra.mxu0 %v6337_v42 }
 0x169   : > { %3505 = vmatmul.mubr.f32.gmra.mxu0 %v4069_v0  ;;  %3588 = vmatprep.subr.mxu0 %v6337_v42  ;;  %v4073_v1 = vpop.eup %4072 }
 0x16a   : > { %3507 = vmatprep.mubr.f32.mxu0 %v4071_v51  ;;  %3589 = vmatpush3.msra.mxu0 %v6337_v42 }
 0x16b   : > { %3590 = vmatprep.subr.mxu0 %v6337_v42 }
 0x16c   : > { %v4075_v9 = vpop.eup %4074  ;;  %3591 = vmatpush3.msra.mxu0 %v6337_v42 }
 0x16d   : > { %3508 = vmatmul.mubr.f32.gmra.mxu0 %v4073_v1  ;;  %3592 = vmatprep.subr.mxu0 %v6337_v42  ;;  %v4077_v52 = vpop.eup %4076 }
 0x16e   : > { %3510 = vmatprep.mubr.f32.mxu0 %v4075_v9  ;;  %3593 = vmatpush3.msra.mxu0 %v6337_v42 }
 0x16f   : > { %3594 = vmatprep.subr.mxu0 %v6337_v42 }
 0x170   : > { %v4079_v27 = vpop.eup %4078  ;;  %3595 = vmatpush3.msra.mxu0 %v6337_v42 }
 0x171   : > { %3511 = vmatmul.mubr.f32.gmra.mxu0 %v4077_v52  ;;  %3596 = vmatprep.subr.mxu0 %v6337_v42  ;;  %v4081_v28 = vpop.eup %4080 }
 0x172   : > { %3513 = vmatprep.mubr.f32.mxu0 %v4079_v27  ;;  %3597 = vmatpush3.msra.mxu0 %v6337_v42 }
 0x173   : > { %3678 = vmatprep.subr.msk.mxu0 %vm308_vm1, %v6337_v42 }
 0x175   : > { %3514 = vmatmul.mubr.f32.gmra.mxu0 %v4081_v28 }
 0x219   : > { %v5073_v56 = vpop.f32.mrf.mxu0 }
 0x21b   : > { %v5075_v33 = vpop.f32.mrf.mxu0 }
 0x21d   : > { %v3497_v55 = vpop.f32.mrf.mxu0 }
 0x21f   : > { %v599_v2 = vpop.f32.mrf.mxu0 }
 0x221   : > { %v3500_v57 = vpop.f32.mrf.mxu0 }
 0x223   : > { %v609_v43 = vpop.f32.mrf.mxu0 }
 0x224   : > { %v672_v45 = vmax.f32 %v609_v43, 1e-37 }
 0x225   : > { %v3503_v34 = vpop.f32.mrf.mxu0 }
 0x226   : > { %v675_v8 = vmax.f32 %v3503_v34, 1e-37 }
 0x227   : > { %v619_v59 = vpop.f32.mrf.mxu0 }
 0x229   : > { %v3506_v3 = vpop.f32.mrf.mxu0 }
 0x22a   : > { %v677_v60 = vmax.f32 %v3506_v3, 1e-37 }
 0x22b   : > { %v629_v11 = vpop.f32.mrf.mxu0 }
 0x22c   : > { %v676_v61 = vmax.f32 %v629_v11, 1e-37 }
 0x22d   : > { %v3509_v0 = vpop.f32.mrf.mxu0 }
 0x22e   : > { %v679_v29 = vmax.f32 %v3509_v0, 1e-37 }
 0x22f   : > { %v639_v51 = vpop.f32.mrf.mxu0 }
 0x230   : > { %v678_v15 = vmax.f32 %v639_v51, 1e-37 }
 0x231   : > { %v3512_v1 = vpop.f32.mrf.mxu0 }
 0x232   : > { %v681_v9 = vmax.f32 %v3512_v1, 1e-37  ;;  %v674_v1 = vmax.f32 %v619_v59, 1e-37 }
 0x233   : > { %v649_v52 = vpop.f32.mrf.mxu0 }
 0x234   : > { %4082 = vlog2.f32 %v681_v9  ;;  %v680_v27 = vmax.f32 %v649_v52, 1e-37  ;;  %v673_v52 = vmax.f32 %v3500_v57, 1e-37 }
 0x235   : > { %v3515_v28 = vpop.f32.mrf.mxu0 }
 0x236   : > { %4084 = vlog2.f32 %v680_v27  ;;  %v683_v54 = vmax.f32 %v3515_v28, 1e-37 }
 0x237   : > { %v659_v30 = vpop.f32.mrf.mxu0 }
 0x238   : > { %4086 = vlog2.f32 %v683_v54  ;;  %v682_v16 = vmax.f32 %v659_v30, 1e-37 }
 0x23a   : > { %4088 = vlog2.f32 %v682_v16  ;;  %v671_v16 = vmax.f32 %v3497_v55, 1e-37 }
 0x23b   : > { %4090 = vlog2.f32 %v679_v29 }
 0x23c   : > { %4092 = vlog2.f32 %v678_v15 }
 0x23d   : > { %4094 = vlog2.f32 %v677_v60  ;;  %v670_v60 = vmax.f32 %v599_v2, 1e-37 }
 0x23e   : > { %4096 = vlog2.f32 %v676_v61 }
 0x23f   : > { %4098 = vlog2.f32 %v675_v8  ;;  %v669_v8 = vmax.f32 %v5073_v56, 1e-37 }
 0x240   : > { %4100 = vlog2.f32 %v674_v1 }
 0x241   : > { %v4083_v37 = vpop.eup %4082  ;;  %4102 = vlog2.f32 %v673_v52 }
 0x242   : > { %v711_v27 = vmul.f32 0.6931472, %v4083_v37  ;;  %4104 = vlog2.f32 %v672_v45 }
 0x243   : > { %v4085_v9 = vpop.eup %4084  ;;  %4106 = vlog2.f32 %v671_v16 }
 0x244   : > { %v709_v54 = vmul.f32 0.6931472, %v4085_v9  ;;  %v729_v29 = vsub.f32 -4.6051693, %v711_v27  ;;  %v668_v9 = vmax.f32 %v5075_v33, 1e-37  ;;  %4108 = vlog2.f32 %v670_v60 }
 0x245   : > { %v4087_v28 = vpop.eup %4086  ;;  %4110 = vlog2.f32 %v669_v8 }
 0x246   : > { %v715_v30 = vmul.f32 0.6931472, %v4087_v28  ;;  %v728_v59 = vsub.f32 -4.6051693, %v709_v54  ;;  %v745_v43 = vmul.f32 0.0, %v729_v29  ;;  %4112 = vlog2.f32 %v668_v9 }
 0x247   : > { %v4089_v0 = vpop.eup %4088 }
 0x248   : > { %v731_v3 = vsub.f32 -4.6051693, %v715_v30  ;;  %v713_v15 = vmul.f32 0.6931472, %v4089_v0  ;;  %v4091_v34 = vpop.eup %4090  ;;  %v744_v45 = vmul.f32 %v4691_v13, %v728_v59 }
 0x249   : > { %v4093_v57 = vpop.eup %4092  ;;  %v707_v37 = vmul.f32 0.6931472, %v4091_v34 }
 0x24a   : > { %v747_v61 = vmul.f32 0.0, %v731_v3  ;;  %v730_v11 = vsub.f32 -4.6051693, %v713_v15  ;;  %v4095_v55 = vpop.eup %4094  ;;  %v705_v52 = vmul.f32 0.6931472, %v4093_v57  ;;  %v5093_v0 = vadd.f32 %v4580_v17, %v744_v45 }
 0x24b   : > { %v4097_v56 = vpop.eup %4096  ;;  %v703_v27 = vmul.f32 0.6931472, %v4095_v55  ;;  %v727_v28 = vsub.f32 -4.6051693, %v707_v37 }
 0x24c   : > { %v746_v51 = vmul.f32 0.0, %v730_v11  ;;  %v5079_v1 = vadd.f32 %v4568_v35, %v747_v61  ;;  %v5089_v35 = vadd.f32 %v4576_v36, %v745_v43  ;;  %v4099_v54 = vpop.eup %4098  ;;  %v701_v33 = vmul.f32 0.6931472, %v4097_v56 }
 0x24d   : > { %v726_v30 = vsub.f32 -4.6051693, %v705_v52  ;;  %v699_v16 = vmul.f32 0.6931472, %v4099_v54  ;;  %v725_v29 = vsub.f32 -4.6051693, %v703_v27  ;;  %v5097_v3 = vadd.f32 %v4584_v18, %v727_v28 }
 0x24e   : > { %841 = vperm.xlu0 %4048, %v5079_v1   ;;  %v5085_v2 = vadd.f32 %v4572_v14, %v746_v51  ;;  %v4101_v14 = vpop.eup %4100  ;;  %v724_v34 = vsub.f32 -4.6051693, %v701_v33 }
 0x24f   : > { %v4103_v15 = vpop.eup %4102  ;;  %v697_v36 = vmul.f32 0.6931472, %v4101_v14  ;;  %v5101_v60 = vadd.f32 %v4588_v21, %v726_v30  ;;  %v723_v11 = vsub.f32 -4.6051693, %v699_v16  ;;  %v5105_v57 = vadd.f32 %v4592_v22, %v725_v29 }
 0x250   : > { %836 = vperm.xlu1 %4049, %v5085_v2   ;;  %v4105_v59 = vpop.eup %4104  ;;  %v695_v17 = vmul.f32 0.6931472, %v4103_v15  ;;  %v5109_v37 = vadd.f32 %v4596_v25, %v724_v34 }
 0x251   : > { %v4107_v61 = vpop.eup %4106  ;;  %v693_v8 = vmul.f32 0.6931472, %v4105_v59  ;;  %v722_v18 = vsub.f32 -4.6051693, %v697_v36  ;;  %v5113_v55 = vadd.f32 %v4600_v26, %v723_v11 }
 0x252   : > { %831 = vperm.xlu0 %4048, %v5089_v35   ;;  %v4109_v43 = vpop.eup %4108  ;;  %v691_v51 = vmul.f32 0.6931472, %v4107_v61  ;;  %v721_v21 = vsub.f32 -4.6051693, %v695_v17 }
 0x253   : > { %v4111_v9 = vpop.eup %4110  ;;  %v689_v52 = vmul.f32 0.6931472, %v4109_v43  ;;  %v720_v45 = vsub.f32 -4.6051693, %v693_v8  ;;  %v5117_v22 = vadd.f32 %v4604_v40, %v722_v18 }
 0x254   : > { %826 = vperm.xlu1 %4049, %v5093_v0   ;;  %v4113_v56 = vpop.eup %4112  ;;  %v687_v27 = vmul.f32 0.6931472, %v4111_v9  ;;  %v719_v25 = vsub.f32 -4.6051693, %v691_v51  ;;  %v5121_v28 = vadd.f32 %v4608_v38, %v721_v21 }
 0x255   : > { %v685_v54 = vmul.f32 0.6931472, %v4113_v56  ;;  %v718_v33 = vsub.f32 -4.6051693, %v689_v52  ;;  %v5125_v26 = vadd.f32 %v4612_v31, %v720_v45 }
 0x256   : > { %821 = vperm.xlu0 %4048, %v5097_v3   ;;  %v717_v30 = vsub.f32 -4.6051693, %v687_v27  ;;  %v5129_v40 = vadd.f32 %v4616_v39, %v719_v25 }
 0x257   : > { %v716_v14 = vsub.f32 -4.6051693, %v685_v54  ;;  %v5133_v16 = vadd.f32 %v4620_v41, %v718_v33 }
 0x258   : > { %816 = vperm.xlu1 %4049, %v5101_v60   ;;  %v5137_v38 = vadd.f32 %v4624_v32, %v717_v30 }
 0x259   : > { %v5141_v31 = vadd.f32 %v4628_v50, %v716_v14 }
 0x25a   : > { %811 = vperm.xlu0 %4048, %v5105_v57  }
 0x25c   : > { %806 = vperm.xlu1 %4049, %v5109_v37  }
 0x25e   : > { %801 = vperm.xlu0 %4048, %v5113_v55  }
 0x260   : > { %796 = vperm.xlu1 %4049, %v5117_v22  }
 0x262   : > { %791 = vperm.xlu0 %4048, %v5121_v28  }
 0x264   : > { %786 = vperm.xlu1 %4049, %v5125_v26  }
 0x266   : > { %781 = vperm.xlu0 %4048, %v5129_v40  }
 0x268   : > { %776 = vperm.xlu1 %4049, %v5133_v16  }
 0x26a   : > { %771 = vperm.xlu0 %4048, %v5137_v38  }
 0x26c   : > { %766 = vperm.xlu1 %4049, %v5141_v31  }
 0x2c9   : > { %v842_v39 = vpop.permute.xlu0 %841 }
 0x2ca   : > { %v5145_v29 = vadd.f32 %v842_v39, %v4863_v12 }
 0x2cb   : > { %v837_v15 = vpop.permute.xlu1 %836 }
 0x2cc   : > { %v875_v41 = vadd.f32 %v5145_v29, %v5009_v53  ;;  %v5150_v36 = vadd.f32 %v837_v15, %v4860_v4 }
 0x2cd   : > { %v832_v32 = vpop.permute.xlu0 %831 }
 0x2ce   : > { %v906_v34 = vmul.f32 1.442695, %v875_v41  ;;  %v874_v59 = vadd.f32 %v5150_v36, %v5009_v53  ;;  %v5155_v50 = vadd.f32 %v832_v32, %v4853_v58 }
 0x2cf   : > { %v827_v61 = vpop.permute.xlu1 %826 }
 0x2d0   : > { %4114 = vpow2.f32 %v906_v34  ;;  %v904_v17 = vmul.f32 1.442695, %v874_v59  ;;  %v873_v11 = vadd.f32 %v5155_v50, %v5009_v53  ;;  %v5160_v8 = vadd.f32 %v827_v61, %v4850_v44 }
 0x2d1   : > { %v822_v18 = vpop.permute.xlu0 %821 }
 0x2d2   : > { %4116 = vpow2.f32 %v904_v17  ;;  %v902_v43 = vmul.f32 1.442695, %v873_v11  ;;  %v872_v51 = vadd.f32 %v5160_v8, %v5009_v53  ;;  %v5165_v21 = vadd.f32 %v822_v18, %v4841_v47 }
 0x2d3   : > { %v817_v9 = vpop.permute.xlu1 %816 }
 0x2d4   : > { %4118 = vpow2.f32 %v902_v43  ;;  %v900_v52 = vmul.f32 1.442695, %v872_v51  ;;  %v871_v45 = vadd.f32 %v5165_v21, %v5009_v53  ;;  %v5170_v56 = vadd.f32 %v817_v9, %v4838_v46 }
 0x2d5   : > { %v812_v27 = vpop.permute.xlu0 %811 }
 0x2d6   : > { %4120 = vpow2.f32 %v900_v52  ;;  %v898_v25 = vmul.f32 1.442695, %v871_v45  ;;  %v870_v54 = vadd.f32 %v5170_v56, %v5009_v53  ;;  %v5175_v33 = vadd.f32 %v812_v27, %v4825_v20 }
 0x2d7   : > { %v807_v30 = vpop.permute.xlu1 %806 }
 0x2d8   : > { %4122 = vpow2.f32 %v898_v25  ;;  %v896_v14 = vmul.f32 1.442695, %v870_v54  ;;  %v869_v39 = vadd.f32 %v5175_v33, %v5009_v53  ;;  %v5180_v15 = vadd.f32 %v807_v30, %v4822_v19 }
 0x2d9   : > { %v802_v41 = vpop.permute.xlu0 %801 }
 0x2da   : > { %4124 = vpow2.f32 %v896_v14  ;;  %v894_v32 = vmul.f32 1.442695, %v869_v39  ;;  %v868_v34 = vadd.f32 %v5180_v15, %v5009_v53  ;;  %v5185_v59 = vadd.f32 %v802_v41, %v6325_v63 }
 0x2db   : > { %v797_v61 = vpop.permute.xlu1 %796 }
 0x2dc   : > { %4126 = vpow2.f32 %v894_v32  ;;  %v892_v17 = vmul.f32 1.442695, %v868_v34  ;;  %v867_v11 = vadd.f32 %v5185_v59, %v5009_v53  ;;  %v5190_v18 = vadd.f32 %v797_v61, %v6326_v62 }
 0x2dd   : > { %v4115_v43 = vpop.eup %4114  ;;  %v792_v51 = vpop.permute.xlu0 %791 }
 0x2de   : > { %4128 = vpow2.f32 %v892_v17  ;;  %v890_v9 = vmul.f32 1.442695, %v867_v11  ;;  %v866_v52 = vadd.f32 %v5190_v18, %v5009_v53  ;;  %v5195_v45 = vadd.f32 %v792_v51, %v6327_v49  ;;  %3516 = vmatprep.subr.mxu1 %v4115_v43 }
 0x2df   : > { %v4117_v27 = vpop.eup %4116  ;;  %3517 = vmatpush3.msra.mxu1 %v4115_v43  ;;  %v787_v25 = vpop.permute.xlu1 %786 }
 0x2e0   : > { %4130 = vpow2.f32 %v890_v9  ;;  %v888_v54 = vmul.f32 1.442695, %v866_v52  ;;  %v865_v30 = vadd.f32 %v5195_v45, %v5009_v53  ;;  %v5200_v14 = vadd.f32 %v787_v25, %v6328_v48  ;;  %3518 = vmatprep.subr.mxu1 %v4117_v27 }
 0x2e1   : > { %v4119_v39 = vpop.eup %4118  ;;  %v782_v41 = vpop.permute.xlu0 %781  ;;  %3519 = vmatpush3.msra.mxu1 %v4117_v27 }
 0x2e2   : > { %4132 = vpow2.f32 %v888_v54  ;;  %v886_v32 = vmul.f32 1.442695, %v865_v30  ;;  %v864_v34 = vadd.f32 %v5200_v14, %v5009_v53  ;;  %v5205_v61 = vadd.f32 %v782_v41, %v6330_v24  ;;  %3520 = vmatprep.subr.mxu1 %v4119_v39 }
 0x2e3   : > { %v4121_v17 = vpop.eup %4120  ;;  %3521 = vmatpush3.msra.mxu1 %v4119_v39  ;;  %v777_v11 = vpop.permute.xlu1 %776 }
 0x2e4   : > { %4134 = vpow2.f32 %v886_v32  ;;  %v884_v43 = vmul.f32 1.442695, %v864_v34  ;;  %v863_v51 = vadd.f32 %v5205_v61, %v5009_v53  ;;  %v5210_v9 = vadd.f32 %v777_v11, %v6331_v23  ;;  %3522 = vmatprep.subr.mxu1 %v4121_v17 }
 0x2e5   : > { %v4123_v52 = vpop.eup %4122  ;;  %v772_v27 = vpop.permute.xlu0 %771  ;;  %3523 = vmatpush3.msra.mxu1 %v4121_v17 }
 0x2e6   : > { %4136 = vpow2.f32 %v884_v43  ;;  %v882_v25 = vmul.f32 1.442695, %v863_v51  ;;  %v862_v54 = vadd.f32 %v5210_v9, %v5009_v53  ;;  %v5215_v30 = vadd.f32 %v772_v27, %v6332_v6  ;;  %3524 = vmatprep.subr.mxu1 %v4123_v52 }
 0x2e7   : > { %v4125_v39 = vpop.eup %4124  ;;  %3525 = vmatpush3.msra.mxu1 %v4123_v52  ;;  %v767_v41 = vpop.permute.xlu1 %766 }
 0x2e8   : > { %4138 = vpow2.f32 %v882_v25  ;;  %v880_v32 = vmul.f32 1.442695, %v862_v54  ;;  %v861_v34 = vadd.f32 %v5215_v30, %v5009_v53  ;;  %v5220_v11 = vadd.f32 %v767_v41, %v6333_v7  ;;  %3526 = vmatprep.subr.mxu1 %v4125_v39 }
 0x2e9   : > { %v4127_v17 = vpop.eup %4126  ;;  %3527 = vmatpush3.msra.mxu1 %v4125_v39 }
 0x2ea   : > { %4140 = vpow2.f32 %v880_v32  ;;  %v878_v43 = vmul.f32 1.442695, %v861_v34  ;;  %v860_v51 = vadd.f32 %v5220_v11, %v5009_v53  ;;  %3528 = vmatprep.subr.mxu1 %v4127_v17 }
 0x2eb   : > { %v4129_v27 = vpop.eup %4128  ;;  %3529 = vmatpush3.msra.mxu1 %v4127_v17 }
 0x2ec   : > { %4142 = vpow2.f32 %v878_v43  ;;  %v876_v52 = vmul.f32 1.442695, %v860_v51  ;;  %3530 = vmatprep.subr.mxu1 %v4129_v27 }
 0x2ed   : > { %v4131_v25 = vpop.eup %4130  ;;  %3531 = vmatpush3.msra.mxu1 %v4129_v27 }
 0x2ee   : > { %4144 = vpow2.f32 %v876_v52  ;;  %3532 = vmatprep.subr.mxu1 %v4131_v25 }
 0x2ef   : > { %v4133_v54 = vpop.eup %4132  ;;  %3533 = vmatpush3.msra.mxu1 %v4131_v25 }
 0x2f0   : > { %3534 = vmatprep.subr.mxu1 %v4133_v54 }
 0x2f1   : > { %v4135_v41 = vpop.eup %4134  ;;  %3535 = vmatpush3.msra.mxu1 %v4133_v54 }
 0x2f2   : > { %3536 = vmatprep.subr.mxu1 %v4135_v41 }
 0x2f3   : > { %v4137_v39 = vpop.eup %4136  ;;  %3537 = vmatpush3.msra.mxu1 %v4135_v41 }
 0x2f4   : > { %3538 = vmatprep.subr.mxu1 %v4137_v39 }
 0x2f5   : > { %v4139_v53 = vpop.eup %4138  ;;  %3539 = vmatpush3.msra.mxu1 %v4137_v39 }
 0x2f6   : > { %3540 = vmatprep.subr.mxu1 %v4139_v53 }
 0x2f7   : > { %v4141_v32 = vpop.eup %4140  ;;  %3541 = vmatpush3.msra.mxu1 %v4139_v53 }
 0x2f8   : > { %3542 = vmatprep.subr.mxu1 %v4141_v32 }
 0x2f9   : > { %v4143_v34 = vpop.eup %4142  ;;  %3543 = vmatpush3.msra.mxu1 %v4141_v32 }
 0x2fa   : > { %3544 = vmatprep.subr.mxu1 %v4143_v34 }
 0x2fb   : > { %v4145_v17 = vpop.eup %4144  ;;  %3545 = vmatpush3.msra.mxu1 %v4143_v34 }
 0x2fc   : > { %3546 = vmatprep.subr.mxu1 %v4145_v17 }
 0x2fd   : > { %3547 = vmatpush3.msra.mxu1 %v4145_v17 }
 0x2fe   : > { %3549 = vmatmul.mubr.msk.f32.vlgmr.msra.gmra.mxu1 %vm346_vm0, %v6337_v42 }
 0x2ff   : > { %3551 = vmatprep.mubr.msk.f32.mxu1 %vm346_vm0, %v6337_v42 }
 0x302   : > { %3552 = vmatmul.mubr.msk.f32.gmra.mxu1 %vm346_vm0, %v6337_v42 }
 0x303   : > { %3554 = vmatprep.mubr.msk.f32.mxu1 %vm346_vm0, %v6337_v42 }
 0x306   : > { %3555 = vmatmul.mubr.msk.f32.gmra.mxu1 %vm346_vm0, %v6337_v42 }
 0x307   : > { %3557 = vmatprep.mubr.msk.f32.mxu1 %vm346_vm0, %v6337_v42 }
 0x30a   : > { %3558 = vmatmul.mubr.msk.f32.gmra.mxu1 %vm346_vm0, %v6337_v42 }
 0x30b   : > { %3560 = vmatprep.mubr.msk.f32.mxu1 %vm346_vm0, %v6337_v42 }
 0x30e   : > { %3561 = vmatmul.mubr.msk.f32.gmra.mxu1 %vm346_vm0, %v6337_v42 }
 0x30f   : > { %3563 = vmatprep.mubr.msk.f32.mxu1 %vm346_vm0, %v6337_v42 }
 0x312   : > { %3564 = vmatmul.mubr.msk.f32.gmra.mxu1 %vm346_vm0, %v6337_v42 }
 0x313   : > { %3566 = vmatprep.mubr.msk.f32.mxu1 %vm346_vm0, %v6337_v42 }
 0x316   : > { %3567 = vmatmul.mubr.msk.f32.gmra.mxu1 %vm346_vm0, %v6337_v42 }
 0x317   : > { %3569 = vmatprep.mubr.msk.f32.mxu1 %vm346_vm0, %v6337_v42 }
 0x31a   : > { %3570 = vmatmul.mubr.msk.f32.gmra.mxu1 %vm346_vm0, %v6337_v42 }
 0x31b   : > { %3654 = vmatprep.mubr.msk.f32.mxu1 %vm346_vm0, %v6337_v42 }
 0x3be   : > { %v3550_v43 = vpop.f32.mrf.mxu1 }
 0x3bf   : > { %v6338_v43 = vld [vmem:[#allocation32_spill] sm:$0xff] }
 0x3c0   : > { %v974_v51 = vpop.f32.mrf.mxu1 }
 0x3c1   : > { %v1038_v27 = vmax.f32 %v974_v51, 1e-37 }
 0x3c2   : > { %v3553_v52 = vpop.f32.mrf.mxu1 }
 0x3c3   : > { %4146 = vlog2.f32 %v1038_v27  ;;  %v6339_v27 = vld [vmem:[#allocation7_spill] sm:$0xff] }
 0x3c4   : > { %v983_v25 = vpop.f32.mrf.mxu1 }
 0x3c6   : > { %v3556_v54 = vpop.f32.mrf.mxu1 }
 0x3c8   : > { %v991_v41 = vpop.f32.mrf.mxu1 }
 0x3ca   : > { %v3559_v39 = vpop.f32.mrf.mxu1 }
 0x3cc   : > { %v999_v53 = vpop.f32.mrf.mxu1 }
 0x3ce   : > { %v3562_v32 = vpop.f32.mrf.mxu1 }
 0x3d0   : > { %v4147_v34 = vpop.eup %4146  ;;  %v1007_v17 = vpop.f32.mrf.mxu1 }
 0x3d1   : > { %v1040_v7 = vmul.f32 0.6931472, %v4147_v34 }
 0x3d2   : > { %v3565_v6 = vpop.f32.mrf.mxu1 }
 0x3d3   : > { %v1041_v23 = vsub.f32 -4.6051693, %v1040_v7 }
 0x3d4   : > { %v1015_v24 = vpop.f32.mrf.mxu1 }
 0x3d5   : > { %v1042_v5 = vmul.f32 %v4680_v10, %v1041_v23 }
 0x3d6   : > { %v3568_v48 = vpop.f32.mrf.mxu1 }
 0x3d7   : > { %v5274_v49 = vadd.f32 %v6338_v43, %v1042_v5 }
 0x3d8   : > { %v1023_v51 = vpop.f32.mrf.mxu1 }
 0x3d9   : > { %v5278_v52 = vrot.slane %v5274_v49, %v6339_v27 }
 0x3da   : > { %v3571_v25 = vpop.f32.mrf.mxu1 }
 0x3db   : > { %v1048_v54 = vadd.f32 %v5278_v52, %v5220_v11  ;;  %v1049_v6 = vadd.f32 %v5278_v52, %v5215_v30  ;;  %v1050_v7 = vadd.f32 %v5278_v52, %v5210_v9  ;;  %v1051_v5 = vadd.f32 %v5278_v52, %v5205_v61 }
 0x3dc   : > { %v1031_v23 = vpop.f32.mrf.mxu1  ;;  %v1052_v24 = vadd.f32 %v5278_v52, %v5200_v14  ;;  %v1053_v11 = vadd.f32 %v5278_v52, %v5195_v45  ;;  %v1054_v30 = vadd.f32 %v5278_v52, %v5190_v18  ;;  %v1055_v61 = vadd.f32 %v5278_v52, %v5185_v59 }
 0x3dd   : > { %v1064_v48 = vmul.f32 1.442695, %v1048_v54  ;;  %v1066_v41 = vmul.f32 1.442695, %v1049_v6  ;;  %v1068_v39 = vmul.f32 1.442695, %v1050_v7  ;;  %v1056_v14 = vadd.f32 %v5278_v52, %v5180_v15 }
 0x3de   : > { %v1070_v53 = vmul.f32 1.442695, %v1051_v5  ;;  %v1072_v9 = vmul.f32 1.442695, %v1052_v24  ;;  %v1074_v32 = vmul.f32 1.442695, %v1053_v11  ;;  %v1057_v45 = vadd.f32 %v5278_v52, %v5175_v33 }
 0x3df   : > { %4148 = vpow2.f32 %v1064_v48  ;;  %v1076_v34 = vmul.f32 1.442695, %v1054_v30  ;;  %v1078_v17 = vmul.f32 1.442695, %v1055_v61  ;;  %v1058_v18 = vadd.f32 %v5278_v52, %v5170_v56 }
 0x3e0   : > { %4150 = vpow2.f32 %v1066_v41  ;;  %v1080_v43 = vmul.f32 1.442695, %v1056_v14  ;;  %v1059_v59 = vadd.f32 %v5278_v52, %v5165_v21  ;;  %v1082_v25 = vmul.f32 1.442695, %v1057_v45 }
 0x3e1   : > { %4152 = vpow2.f32 %v1068_v39  ;;  %v1060_v15 = vadd.f32 %v5278_v52, %v5160_v8  ;;  %v1084_v6 = vmul.f32 1.442695, %v1058_v18  ;;  %v1061_v7 = vadd.f32 %v5278_v52, %v5155_v50 }
 0x3e2   : > { %4154 = vpow2.f32 %v1070_v53  ;;  %v1086_v21 = vmul.f32 1.442695, %v1059_v59  ;;  %v1062_v8 = vadd.f32 %v5278_v52, %v5150_v36  ;;  %v1063_v50 = vadd.f32 %v5278_v52, %v5145_v29 }
 0x3e3   : > { %4156 = vpow2.f32 %v1072_v9  ;;  %v1088_v5 = vmul.f32 1.442695, %v1060_v15  ;;  %v1090_v48 = vmul.f32 1.442695, %v1061_v7 }
 0x3e4   : > { %4158 = vpow2.f32 %v1074_v32  ;;  %v1092_v36 = vmul.f32 1.442695, %v1062_v8  ;;  %v1094_v11 = vmul.f32 1.442695, %v1063_v50 }
 0x3e5   : > { %4160 = vpow2.f32 %v1076_v34 }
 0x3e6   : > { %4162 = vpow2.f32 %v1078_v17 }
 0x3e7   : > { %4164 = vpow2.f32 %v1080_v43 }
 0x3e8   : > { %4166 = vpow2.f32 %v1082_v25 }
 0x3e9   : > { %4168 = vpow2.f32 %v1084_v6 }
 0x3ea   : > { %4170 = vpow2.f32 %v1086_v21 }
 0x3eb   : > { %4172 = vpow2.f32 %v1088_v5 }
 0x3ec   : > { %v4149_v51 = vpop.eup %4148  ;;  %4174 = vpow2.f32 %v1090_v48 }
 0x3ed   : > { %v4151_v54 = vpop.eup %4150  ;;  %3598 = vmatprep.mubr.f32.mxu0 %v4149_v51  ;;  %4176 = vpow2.f32 %v1092_v36 }
 0x3ee   : > { %v4153_v33 = vpop.eup %4152  ;;  %3599 = vmatmul.mubr.f32.vlgmr.msra.gmra.mxu0 %v4151_v54  ;;  %4178 = vpow2.f32 %v1094_v11 }
 0x3ef   : > { %3601 = vmatprep.mubr.f32.mxu0 %v4153_v33  ;;  %3679 = vmatpush3.msk.msra.mxu0 %vm308_vm1, %v6337_v42  ;;  %v4155_v23 = vpop.eup %4154 }
 0x3f0   : > { %3680 = vmatprep.subr.mxu0 %v6337_v42  ;;  %v4157_v24 = vpop.eup %4156 }
 0x3f1   : > { %3681 = vmatpush3.msra.mxu0 %v6337_v42  ;;  %v4159_v41 = vpop.eup %4158 }
 0x3f2   : > { %3602 = vmatmul.mubr.f32.gmra.mxu0 %v4155_v23  ;;  %3682 = vmatprep.subr.mxu0 %v6337_v42  ;;  %v4161_v39 = vpop.eup %4160 }
 0x3f3   : > { %3604 = vmatprep.mubr.f32.mxu0 %v4157_v24  ;;  %3683 = vmatpush3.msra.mxu0 %v6337_v42  ;;  %v4163_v29 = vpop.eup %4162 }
 0x3f4   : > { %3684 = vmatprep.subr.mxu0 %v6337_v42  ;;  %v4165_v53 = vpop.eup %4164 }
 0x3f5   : > { %3685 = vmatpush3.msra.mxu0 %v6337_v42  ;;  %v4167_v30 = vpop.eup %4166 }
 0x3f6   : > { %3605 = vmatmul.mubr.f32.gmra.mxu0 %v4159_v41  ;;  %3686 = vmatprep.subr.mxu0 %v6337_v42  ;;  %v4169_v9 = vpop.eup %4168 }
 0x3f7   : > { %3607 = vmatprep.mubr.f32.mxu0 %v4161_v39  ;;  %3687 = vmatpush3.msra.mxu0 %v6337_v42  ;;  %v4171_v61 = vpop.eup %4170 }
 0x3f8   : > { %3688 = vmatprep.subr.mxu0 %v6337_v42  ;;  %v4173_v32 = vpop.eup %4172 }
 0x3f9   : > { %3689 = vmatpush3.msra.mxu0 %v6337_v42  ;;  %v4175_v14 = vpop.eup %4174 }
 0x3fa   : > { %3608 = vmatmul.mubr.f32.gmra.mxu0 %v4163_v29  ;;  %3690 = vmatprep.subr.mxu0 %v6337_v42  ;;  %v4177_v34 = vpop.eup %4176 }
 0x3fb   : > { %3610 = vmatprep.mubr.f32.mxu0 %v4165_v53  ;;  %3691 = vmatpush3.msra.mxu0 %v6337_v42  ;;  %v4179_v45 = vpop.eup %4178 }
 0x3fc   : > { %3692 = vmatprep.subr.mxu0 %v6337_v42 }
 0x3fd   : > { %3693 = vmatpush3.msra.mxu0 %v6337_v42 }
 0x3fe   : > { %3611 = vmatmul.mubr.f32.gmra.mxu0 %v4167_v30  ;;  %3694 = vmatprep.subr.mxu0 %v6337_v42 }
 0x3ff   : > { %3613 = vmatprep.mubr.f32.mxu0 %v4169_v9  ;;  %3695 = vmatpush3.msra.mxu0 %v6337_v42 }
 0x400   : > { %3696 = vmatprep.subr.mxu0 %v6337_v42 }
 0x401   : > { %3697 = vmatpush3.msra.mxu0 %v6337_v42 }
 0x402   : > { %3614 = vmatmul.mubr.f32.gmra.mxu0 %v4171_v61  ;;  %3698 = vmatprep.subr.mxu0 %v6337_v42 }
 0x403   : > { %3616 = vmatprep.mubr.f32.mxu0 %v4173_v32  ;;  %3699 = vmatpush3.msra.mxu0 %v6337_v42 }
 0x404   : > { %3700 = vmatprep.subr.mxu0 %v6337_v42 }
 0x405   : > { %3701 = vmatpush3.msra.mxu0 %v6337_v42 }
 0x406   : > { %3617 = vmatmul.mubr.f32.gmra.mxu0 %v4175_v14  ;;  %3702 = vmatprep.subr.mxu0 %v6337_v42 }
 0x407   : > { %3619 = vmatprep.mubr.f32.mxu0 %v4177_v34  ;;  %3703 = vmatpush3.msra.mxu0 %v6337_v42 }
 0x408   : > { %3784 = vmatprep.subr.msk.mxu0 %vm308_vm1, %v6337_v42 }
 0x40a   : > { %3620 = vmatmul.mubr.f32.gmra.mxu0 %v4179_v45 }
 0x4ae   : > { %v5342_v17 = vpop.f32.mrf.mxu0 }
 0x4b0   : > { %v5344_v18 = vpop.f32.mrf.mxu0 }
 0x4b2   : > { %v3603_v43 = vpop.f32.mrf.mxu0 }
 0x4b4   : > { %v1172_v51 = vpop.f32.mrf.mxu0 }
 0x4b6   : > { %v3606_v59 = vpop.f32.mrf.mxu0 }
 0x4b7   : > { %v1246_v14 = vmax.f32 %v3606_v59, 1e-37 }
 0x4b8   : > { %v1182_v25 = vpop.f32.mrf.mxu0 }
 0x4ba   : > { %v3609_v54 = vpop.f32.mrf.mxu0 }
 0x4bb   : > { %v1248_v30 = vmax.f32 %v3609_v54, 1e-37 }
 0x4bc   : > { %v1192_v15 = vpop.f32.mrf.mxu0 }
 0x4bd   : > { %v1247_v61 = vmax.f32 %v1192_v15, 1e-37 }
 0x4be   : > { %v3612_v6 = vpop.f32.mrf.mxu0 }
 0x4bf   : > { %v1250_v29 = vmax.f32 %v3612_v6, 1e-37 }
 0x4c0   : > { %v1202_v33 = vpop.f32.mrf.mxu0 }
 0x4c1   : > { %v1249_v53 = vmax.f32 %v1202_v33, 1e-37 }
 0x4c2   : > { %v3615_v7 = vpop.f32.mrf.mxu0 }
 0x4c3   : > { %v1252_v36 = vmax.f32 %v3615_v7, 1e-37 }
 0x4c4   : > { %v1212_v21 = vpop.f32.mrf.mxu0 }
 0x4c5   : > { %v1251_v11 = vmax.f32 %v1212_v21, 1e-37 }
 0x4c6   : > { %v3618_v23 = vpop.f32.mrf.mxu0 }
 0x4c7   : > { %v1254_v8 = vmax.f32 %v3618_v23, 1e-37  ;;  %v1245_v23 = vmax.f32 %v1182_v25, 1e-37 }
 0x4c8   : > { %v1222_v5 = vpop.f32.mrf.mxu0 }
 0x4c9   : > { %4180 = vlog2.f32 %v1254_v8  ;;  %v1253_v24 = vmax.f32 %v1222_v5, 1e-37  ;;  %v1244_v5 = vmax.f32 %v3603_v43, 1e-37 }
 0x4ca   : > { %v3621_v50 = vpop.f32.mrf.mxu0 }
 0x4cb   : > { %4182 = vlog2.f32 %v1253_v24  ;;  %v1256_v48 = vmax.f32 %v3621_v50, 1e-37  ;;  %v1243_v50 = vmax.f32 %v1172_v51, 1e-37 }
 0x4cc   : > { %v1232_v41 = vpop.f32.mrf.mxu0 }
 0x4cd   : > { %4184 = vlog2.f32 %v1256_v48  ;;  %v1255_v39 = vmax.f32 %v1232_v41, 1e-37 }
 0x4cf   : > { %4186 = vlog2.f32 %v1255_v39 }
 0x4d0   : > { %4188 = vlog2.f32 %v1252_v36  ;;  %v1242_v36 = vmax.f32 %v5342_v17, 1e-37 }
 0x4d1   : > { %4190 = vlog2.f32 %v1251_v11 }
 0x4d2   : > { %4192 = vlog2.f32 %v1250_v29 }
 0x4d3   : > { %4194 = vlog2.f32 %v1249_v53  ;;  %v1241_v53 = vmax.f32 %v5344_v18, 1e-37 }
 0x4d4   : > { %4196 = vlog2.f32 %v1248_v30 }
 0x4d5   : > { %4198 = vlog2.f32 %v1247_v61 }
 0x4d6   : > { %v4181_v9 = vpop.eup %4180  ;;  %4200 = vlog2.f32 %v1246_v14 }
 0x4d7   : > { %v1284_v34 = vmul.f32 0.6931472, %v4181_v9  ;;  %4202 = vlog2.f32 %v1245_v23 }
 0x4d8   : > { %v4183_v32 = vpop.eup %4182  ;;  %4204 = vlog2.f32 %v1244_v5 }
 0x4d9   : > { %v1282_v7 = vmul.f32 0.6931472, %v4183_v32  ;;  %v1302_v6 = vsub.f32 -4.6051693, %v1284_v34  ;;  %4206 = vlog2.f32 %v1243_v50 }
 0x4da   : > { %v4185_v45 = vpop.eup %4184  ;;  %4208 = vlog2.f32 %v1242_v36 }
 0x4db   : > { %v1288_v8 = vmul.f32 0.6931472, %v4185_v45  ;;  %v1301_v15 = vsub.f32 -4.6051693, %v1282_v7  ;;  %v1318_v39 = vmul.f32 0.0, %v1302_v6  ;;  %4210 = vlog2.f32 %v1241_v53 }
 0x4dc   : > { %v4187_v21 = vpop.eup %4186 }
 0x4dd   : > { %v1304_v33 = vsub.f32 -4.6051693, %v1288_v8  ;;  %v1286_v24 = vmul.f32 0.6931472, %v4187_v21  ;;  %v4189_v54 = vpop.eup %4188  ;;  %v1317_v51 = vmul.f32 %v4691_v13, %v1301_v15 }
 0x4de   : > { %v4191_v59 = vpop.eup %4190  ;;  %v1280_v25 = vmul.f32 0.6931472, %v4189_v54 }
 0x4df   : > { %v1320_v48 = vmul.f32 0.0, %v1304_v33  ;;  %v1303_v41 = vsub.f32 -4.6051693, %v1286_v24  ;;  %v4193_v43 = vpop.eup %4192  ;;  %v1278_v30 = vmul.f32 0.6931472, %v4191_v59  ;;  %v5362_v45 = vadd.f32 %v1317_v51, %v5093_v0 }
 0x4e0   : > { %v4195_v17 = vpop.eup %4194  ;;  %v1276_v61 = vmul.f32 0.6931472, %v4193_v43  ;;  %v1300_v32 = vsub.f32 -4.6051693, %v1280_v25 }
 0x4e1   : > { %v1319_v11 = vmul.f32 0.0, %v1303_v41  ;;  %v5348_v29 = vadd.f32 %v1320_v48, %v5079_v1  ;;  %v5358_v1 = vadd.f32 %v1318_v39, %v5089_v35  ;;  %v4197_v14 = vpop.eup %4196  ;;  %v1274_v18 = vmul.f32 0.6931472, %v4195_v17 }
 0x4e2   : > { %v1299_v34 = vsub.f32 -4.6051693, %v1278_v30  ;;  %v1272_v23 = vmul.f32 0.6931472, %v4197_v14  ;;  %v1298_v7 = vsub.f32 -4.6051693, %v1276_v61  ;;  %v5366_v8 = vadd.f32 %v1300_v32, %v5097_v3 }
 0x4e3   : > { %1414 = vperm.xlu0 %4048, %v5348_v29   ;;  %v5354_v9 = vadd.f32 %v1319_v11, %v5085_v2  ;;  %v4199_v2 = vpop.eup %4198  ;;  %v1297_v5 = vsub.f32 -4.6051693, %v1274_v18 }
 0x4e4   : > { %v4201_v21 = vpop.eup %4200  ;;  %v1270_v35 = vmul.f32 0.6931472, %v4199_v2  ;;  %v5370_v6 = vadd.f32 %v1299_v34, %v5101_v60  ;;  %v1296_v54 = vsub.f32 -4.6051693, %v1272_v23  ;;  %v5374_v50 = vadd.f32 %v1298_v7, %v5105_v57 }
 0x4e5   : > { %1409 = vperm.xlu1 %4049, %v5354_v9   ;;  %v4203_v33 = vpop.eup %4202  ;;  %v1268_v0 = vmul.f32 0.6931472, %v4201_v21  ;;  %v5378_v48 = vadd.f32 %v1297_v5, %v5109_v37 }
 0x4e6   : > { %v4205_v24 = vpop.eup %4204  ;;  %v1266_v15 = vmul.f32 0.6931472, %v4203_v33  ;;  %v1295_v3 = vsub.f32 -4.6051693, %v1270_v35  ;;  %v5382_v36 = vadd.f32 %v1296_v54, %v5113_v55 }
 0x4e7   : > { %1404 = vperm.xlu0 %4048, %v5358_v1   ;;  %v4207_v41 = vpop.eup %4206  ;;  %v1264_v59 = vmul.f32 0.6931472, %v4205_v24  ;;  %v1294_v60 = vsub.f32 -4.6051693, %v1268_v0 }
 0x4e8   : > { %v4209_v25 = vpop.eup %4208  ;;  %v1262_v39 = vmul.f32 0.6931472, %v4207_v41  ;;  %v1293_v11 = vsub.f32 -4.6051693, %v1266_v15  ;;  %v5386_v57 = vadd.f32 %v1295_v3, %v5117_v22 }
 0x4e9   : > { %1399 = vperm.xlu1 %4049, %v5362_v45   ;;  %v4211_v43 = vpop.eup %4210  ;;  %v1260_v53 = vmul.f32 0.6931472, %v4209_v25  ;;  %v1292_v37 = vsub.f32 -4.6051693, %v1264_v59  ;;  %v5390_v30 = vadd.f32 %v1294_v60, %v5121_v28 }
 0x4ea   : > { %v1258_v51 = vmul.f32 0.6931472, %v4211_v43  ;;  %v1291_v17 = vsub.f32 -4.6051693, %v1262_v39  ;;  %v5394_v55 = vadd.f32 %v1293_v11, %v5125_v26 }
 0x4eb   : > { %1394 = vperm.xlu0 %4048, %v5366_v8   ;;  %v1290_v61 = vsub.f32 -4.6051693, %v1260_v53  ;;  %v5398_v22 = vadd.f32 %v1292_v37, %v5129_v40 }
 0x4ec   : > { %v1289_v32 = vsub.f32 -4.6051693, %v1258_v51  ;;  %v5402_v14 = vadd.f32 %v1291_v17, %v5133_v16 }
 0x4ed   : > { %1389 = vperm.xlu1 %4049, %v5370_v6   ;;  %v5406_v28 = vadd.f32 %v1290_v61, %v5137_v38 }
 0x4ee   : > { %v5410_v26 = vadd.f32 %v1289_v32, %v5141_v31 }
 0x4ef   : > { %1384 = vperm.xlu0 %4048, %v5374_v50  }
 0x4f1   : > { %1379 = vperm.xlu1 %4049, %v5378_v48  }
 0x4f3   : > { %1374 = vperm.xlu0 %4048, %v5382_v36  }
 0x4f5   : > { %1369 = vperm.xlu1 %4049, %v5386_v57  }
 0x4f7   : > { %1364 = vperm.xlu0 %4048, %v5390_v30  }
 0x4f9   : > { %1359 = vperm.xlu1 %4049, %v5394_v55  }
 0x4fb   : > { %1354 = vperm.xlu0 %4048, %v5398_v22  }
 0x4fd   : > { %1349 = vperm.xlu1 %4049, %v5402_v14  }
 0x4ff   : > { %1344 = vperm.xlu0 %4048, %v5406_v28  }
 0x501   : > { %1339 = vperm.xlu1 %4049, %v5410_v26  }
 0x55e   : > { %v1415_v40 = vpop.permute.xlu0 %1414 }
 0x55f   : > { %v5414_v18 = vadd.f32 %v1415_v40, %v4863_v12 }
 0x560   : > { %v1410_v34 = vpop.permute.xlu1 %1409 }
 0x561   : > { %v1448_v16 = vadd.f32 %v5414_v18, %v5278_v52  ;;  %v5419_v2 = vadd.f32 %v1410_v34, %v4860_v4 }
 0x562   : > { %v1405_v38 = vpop.permute.xlu0 %1404 }
 0x563   : > { %v1479_v23 = vmul.f32 1.442695, %v1448_v16  ;;  %v1447_v7 = vadd.f32 %v5419_v2, %v5278_v52  ;;  %v5424_v31 = vadd.f32 %v1405_v38, %v4853_v58 }
 0x564   : > { %v1400_v21 = vpop.permute.xlu1 %1399 }
 0x565   : > { %4212 = vpow2.f32 %v1479_v23  ;;  %v1477_v35 = vmul.f32 1.442695, %v1447_v7  ;;  %v1446_v5 = vadd.f32 %v5424_v31, %v5278_v52  ;;  %v5429_v33 = vadd.f32 %v1400_v21, %v4850_v44 }
 0x566   : > { %v1395_v24 = vpop.permute.xlu0 %1394 }
 0x567   : > { %4214 = vpow2.f32 %v1477_v35  ;;  %v1475_v0 = vmul.f32 1.442695, %v1446_v5  ;;  %v1445_v54 = vadd.f32 %v5429_v33, %v5278_v52  ;;  %v5434_v15 = vadd.f32 %v1395_v24, %v4841_v47 }
 0x568   : > { %v1390_v3 = vpop.permute.xlu1 %1389 }
 0x569   : > { %4216 = vpow2.f32 %v1475_v0  ;;  %v1473_v41 = vmul.f32 1.442695, %v1445_v54  ;;  %v1444_v59 = vadd.f32 %v5434_v15, %v5278_v52  ;;  %v5439_v60 = vadd.f32 %v1390_v3, %v4838_v46  ;;  %v6341_v0 = vld [vmem:[#allocation19_spill] sm:$0xff] }
 0x56a   : > { %v1385_v25 = vpop.permute.xlu0 %1384 }
 0x56b   : > { %4218 = vpow2.f32 %v1473_v41  ;;  %v1471_v39 = vmul.f32 1.442695, %v1444_v59  ;;  %v1443_v11 = vadd.f32 %v5439_v60, %v5278_v52  ;;  %v5444_v43 = vadd.f32 %v1385_v25, %v4825_v20 }
 0x56c   : > { %v1380_v53 = vpop.permute.xlu1 %1379 }
 0x56d   : > { %4220 = vpow2.f32 %v1471_v39  ;;  %v1469_v37 = vmul.f32 1.442695, %v1443_v11  ;;  %v1442_v51 = vadd.f32 %v5444_v43, %v5278_v52  ;;  %v5449_v17 = vadd.f32 %v1380_v53, %v4822_v19  ;;  %v6342_v39 = vld [vmem:[#allocation18_spill] sm:$0xff] }
 0x56e   : > { %v1375_v61 = vpop.permute.xlu0 %1374 }
 0x56f   : > { %4222 = vpow2.f32 %v1469_v37  ;;  %v1467_v32 = vmul.f32 1.442695, %v1442_v51  ;;  %v1441_v40 = vadd.f32 %v5449_v17, %v5278_v52  ;;  %v5454_v34 = vadd.f32 %v1375_v61, %v6325_v63 }
 0x570   : > { %v1370_v16 = vpop.permute.xlu1 %1369 }
 0x571   : > { %4224 = vpow2.f32 %v1467_v32  ;;  %v1465_v38 = vmul.f32 1.442695, %v1441_v40  ;;  %v1440_v23 = vadd.f32 %v5454_v34, %v5278_v52  ;;  %v5459_v7 = vadd.f32 %v1370_v16, %v6326_v62  ;;  %v6343_v32 = vld [vmem:[#allocation15_spill] sm:$0xff] }
 0x572   : > { %v4213_v21 = vpop.eup %4212  ;;  %v1365_v35 = vpop.permute.xlu0 %1364 }
 0x573   : > { %4226 = vpow2.f32 %v1465_v38  ;;  %v1463_v5 = vmul.f32 1.442695, %v1440_v23  ;;  %v1439_v24 = vadd.f32 %v5459_v7, %v5278_v52  ;;  %v5464_v54 = vadd.f32 %v1365_v35, %v6341_v0  ;;  %3622 = vmatprep.subr.mxu1 %v4213_v21  ;;  %v6344_v35 = vld [vmem:[#allocation14_spill] sm:$0xff] }
 0x574   : > { %v4215_v3 = vpop.eup %4214  ;;  %3623 = vmatpush3.msra.mxu1 %v4213_v21  ;;  %v1360_v41 = vpop.permute.xlu1 %1359 }
 0x575   : > { %4228 = vpow2.f32 %v1463_v5  ;;  %v1461_v59 = vmul.f32 1.442695, %v1439_v24  ;;  %v1438_v25 = vadd.f32 %v5464_v54, %v5278_v52  ;;  %v5469_v11 = vadd.f32 %v1360_v41, %v6342_v39  ;;  %3624 = vmatprep.subr.mxu1 %v4215_v3 }
 0x576   : > { %v4217_v53 = vpop.eup %4216  ;;  %v1355_v37 = vpop.permute.xlu0 %1354  ;;  %3625 = vmatpush3.msra.mxu1 %v4215_v3 }
 0x577   : > { %4230 = vpow2.f32 %v1461_v59  ;;  %v1459_v51 = vmul.f32 1.442695, %v1438_v25  ;;  %v1437_v61 = vadd.f32 %v5469_v11, %v5278_v52  ;;  %v5474_v40 = vadd.f32 %v1355_v37, %v6343_v32  ;;  %3626 = vmatprep.subr.mxu1 %v4217_v53  ;;  %v6345_v25 = vld [vmem:[#allocation10_spill] sm:$0xff] }
 0x578   : > { %v4219_v16 = vpop.eup %4218  ;;  %3627 = vmatpush3.msra.mxu1 %v4217_v53  ;;  %v1350_v38 = vpop.permute.xlu1 %1349 }
 0x579   : > { %4232 = vpow2.f32 %v1459_v51  ;;  %v1457_v23 = vmul.f32 1.442695, %v1437_v61  ;;  %v1436_v21 = vadd.f32 %v5474_v40, %v5278_v52  ;;  %v5479_v5 = vadd.f32 %v1350_v38, %v6344_v35  ;;  %3628 = vmatprep.subr.mxu1 %v4219_v16  ;;  %v6346_v35 = vld [vmem:[#allocation11_spill] sm:$0xff] }
 0x57a   : > { %v4221_v24 = vpop.eup %4220  ;;  %v1345_v3 = vpop.permute.xlu0 %1344  ;;  %3629 = vmatpush3.msra.mxu1 %v4219_v16 }
 0x57b   : > { %4234 = vpow2.f32 %v1457_v23  ;;  %v1455_v41 = vmul.f32 1.442695, %v1436_v21  ;;  %v1435_v59 = vadd.f32 %v5479_v5, %v5278_v52  ;;  %v5484_v53 = vadd.f32 %v1345_v3, %v6345_v25  ;;  %3630 = vmatprep.subr.mxu1 %v4221_v24 }
 0x57c   : > { %v4223_v37 = vpop.eup %4222  ;;  %3631 = vmatpush3.msra.mxu1 %v4221_v24  ;;  %v1340_v51 = vpop.permute.xlu1 %1339 }
 0x57d   : > { %4236 = vpow2.f32 %v1455_v41  ;;  %v1453_v61 = vmul.f32 1.442695, %v1435_v59  ;;  %v1434_v38 = vadd.f32 %v5484_v53, %v5278_v52  ;;  %v5489_v32 = vadd.f32 %v1340_v51, %v6346_v35  ;;  %3632 = vmatprep.subr.mxu1 %v4223_v37 }
 0x57e   : > { %v4225_v16 = vpop.eup %4224  ;;  %3633 = vmatpush3.msra.mxu1 %v4223_v37 }
 0x57f   : > { %4238 = vpow2.f32 %v1453_v61  ;;  %v1451_v23 = vmul.f32 1.442695, %v1434_v38  ;;  %v1433_v21 = vadd.f32 %v5489_v32, %v5278_v52  ;;  %3634 = vmatprep.subr.mxu1 %v4225_v16 }
 0x580   : > { %v4227_v3 = vpop.eup %4226  ;;  %3635 = vmatpush3.msra.mxu1 %v4225_v16 }
 0x581   : > { %4240 = vpow2.f32 %v1451_v23  ;;  %v1449_v24 = vmul.f32 1.442695, %v1433_v21  ;;  %3636 = vmatprep.subr.mxu1 %v4227_v3 }
 0x582   : > { %v4229_v41 = vpop.eup %4228  ;;  %3637 = vmatpush3.msra.mxu1 %v4227_v3 }
 0x583   : > { %4242 = vpow2.f32 %v1449_v24  ;;  %3638 = vmatprep.subr.mxu1 %v4229_v41 }
 0x584   : > { %v4231_v59 = vpop.eup %4230  ;;  %3639 = vmatpush3.msra.mxu1 %v4229_v41 }
 0x585   : > { %3640 = vmatprep.subr.mxu1 %v4231_v59 }
 0x586   : > { %v4233_v51 = vpop.eup %4232  ;;  %3641 = vmatpush3.msra.mxu1 %v4231_v59 }
 0x587   : > { %3642 = vmatprep.subr.mxu1 %v4233_v51 }
 0x588   : > { %v4235_v37 = vpop.eup %4234  ;;  %3643 = vmatpush3.msra.mxu1 %v4233_v51 }
 0x589   : > { %3644 = vmatprep.subr.mxu1 %v4235_v37 }
 0x58a   : > { %v4237_v52 = vpop.eup %4236  ;;  %3645 = vmatpush3.msra.mxu1 %v4235_v37 }
 0x58b   : > { %3646 = vmatprep.subr.mxu1 %v4237_v52 }
 0x58c   : > { %v4239_v61 = vpop.eup %4238  ;;  %3647 = vmatpush3.msra.mxu1 %v4237_v52 }
 0x58d   : > { %3648 = vmatprep.subr.mxu1 %v4239_v61 }
 0x58e   : > { %v4241_v38 = vpop.eup %4240  ;;  %3649 = vmatpush3.msra.mxu1 %v4239_v61 }
 0x58f   : > { %3650 = vmatprep.subr.mxu1 %v4241_v38 }
 0x590   : > { %v4243_v16 = vpop.eup %4242  ;;  %3651 = vmatpush3.msra.mxu1 %v4241_v38 }
 0x591   : > { %3652 = vmatprep.subr.mxu1 %v4243_v16 }
 0x592   : > { %3653 = vmatpush3.msra.mxu1 %v4243_v16 }
 0x593   : > { %3655 = vmatmul.mubr.msk.f32.vlgmr.msra.gmra.mxu1 %vm346_vm0, %v6337_v42 }
 0x594   : > { %3657 = vmatprep.mubr.msk.f32.mxu1 %vm346_vm0, %v6337_v42 }
 0x597   : > { %3658 = vmatmul.mubr.msk.f32.gmra.mxu1 %vm346_vm0, %v6337_v42 }
 0x598   : > { %3660 = vmatprep.mubr.msk.f32.mxu1 %vm346_vm0, %v6337_v42 }
 0x59b   : > { %3661 = vmatmul.mubr.msk.f32.gmra.mxu1 %vm346_vm0, %v6337_v42 }
 0x59c   : > { %3663 = vmatprep.mubr.msk.f32.mxu1 %vm346_vm0, %v6337_v42 }
 0x59f   : > { %3664 = vmatmul.mubr.msk.f32.gmra.mxu1 %vm346_vm0, %v6337_v42 }
 0x5a0   : > { %3666 = vmatprep.mubr.msk.f32.mxu1 %vm346_vm0, %v6337_v42 }
 0x5a3   : > { %3667 = vmatmul.mubr.msk.f32.gmra.mxu1 %vm346_vm0, %v6337_v42 }
 0x5a4   : > { %3669 = vmatprep.mubr.msk.f32.mxu1 %vm346_vm0, %v6337_v42 }
 0x5a7   : > { %3670 = vmatmul.mubr.msk.f32.gmra.mxu1 %vm346_vm0, %v6337_v42 }
 0x5a8   : > { %3672 = vmatprep.mubr.msk.f32.mxu1 %vm346_vm0, %v6337_v42 }
 0x5ab   : > { %3673 = vmatmul.mubr.msk.f32.gmra.mxu1 %vm346_vm0, %v6337_v42 }
 0x5ac   : > { %3675 = vmatprep.mubr.msk.f32.mxu1 %vm346_vm0, %v6337_v42 }
 0x5af   : > { %3676 = vmatmul.mubr.msk.f32.gmra.mxu1 %vm346_vm0, %v6337_v42 }
 0x5b0   : > { %3760 = vmatprep.mubr.msk.f32.mxu1 %vm346_vm0, %v6337_v42 }
 0x653   : > { %v3656_v21 = vpop.f32.mrf.mxu1 }
 0x655   : > { %v1547_v3 = vpop.f32.mrf.mxu1 }
 0x656   : > { %v1611_v24 = vmax.f32 %v1547_v3, 1e-37 }
 0x657   : > { %v3659_v41 = vpop.f32.mrf.mxu1 }
 0x658   : > { %4244 = vlog2.f32 %v1611_v24 }
 0x659   : > { %v1556_v59 = vpop.f32.mrf.mxu1 }
 0x65b   : > { %v3662_v51 = vpop.f32.mrf.mxu1 }
 0x65d   : > { %v1564_v37 = vpop.f32.mrf.mxu1 }
 0x65f   : > { %v3665_v52 = vpop.f32.mrf.mxu1 }
 0x661   : > { %v1572_v61 = vpop.f32.mrf.mxu1 }
 0x663   : > { %v3668_v38 = vpop.f32.mrf.mxu1 }
 0x665   : > { %v4245_v16 = vpop.eup %4244  ;;  %v1580_v35 = vpop.f32.mrf.mxu1 }
 0x666   : > { %v1613_v25 = vmul.f32 0.6931472, %v4245_v16 }
 0x667   : > { %v3671_v39 = vpop.f32.mrf.mxu1 }
 0x668   : > { %v1614_v0 = vsub.f32 -4.6051693, %v1613_v25 }
 0x669   : > { %v1588_v62 = vpop.f32.mrf.mxu1 }
 0x66a   : > { %v1615_v23 = vmul.f32 %v4680_v10, %v1614_v0 }
 0x66b   : > { %v3674_v63 = vpop.f32.mrf.mxu1 }
 0x66c   : > { %v5543_v21 = vadd.f32 %v1615_v23, %v5274_v49 }
 0x66d   : > { %v1596_v3 = vpop.f32.mrf.mxu1 }
 0x66e   : > { %v5547_v24 = vrot.slane %v5543_v21, %v6339_v27 }
 0x66f   : > { %v3677_v41 = vpop.f32.mrf.mxu1 }
 0x670   : > { %v1621_v59 = vadd.f32 %v5547_v24, %v5489_v32  ;;  %v1622_v39 = vadd.f32 %v5547_v24, %v5484_v53  ;;  %v1623_v62 = vadd.f32 %v5547_v24, %v5479_v5  ;;  %v1624_v49 = vadd.f32 %v5547_v24, %v5474_v40 }
 0x671   : > { %v1604_v0 = vpop.f32.mrf.mxu1  ;;  %v1625_v63 = vadd.f32 %v5547_v24, %v5469_v11  ;;  %v1626_v32 = vadd.f32 %v5547_v24, %v5464_v54  ;;  %v1627_v53 = vadd.f32 %v5547_v24, %v5459_v7  ;;  %v1628_v40 = vadd.f32 %v5547_v24, %v5454_v34 }
 0x672   : > { %v1637_v35 = vmul.f32 1.442695, %v1621_v59  ;;  %v1639_v25 = vmul.f32 1.442695, %v1622_v39  ;;  %v1641_v23 = vmul.f32 1.442695, %v1623_v62  ;;  %v1629_v11 = vadd.f32 %v5547_v24, %v5449_v17 }
 0x673   : > { %v1643_v51 = vmul.f32 1.442695, %v1624_v49  ;;  %v1645_v5 = vmul.f32 1.442695, %v1625_v63  ;;  %v1647_v37 = vmul.f32 1.442695, %v1626_v32  ;;  %v1630_v54 = vadd.f32 %v5547_v24, %v5444_v43 }
 0x674   : > { %4246 = vpow2.f32 %v1637_v35  ;;  %v1649_v52 = vmul.f32 1.442695, %v1627_v53  ;;  %v1651_v61 = vmul.f32 1.442695, %v1628_v40  ;;  %v1631_v7 = vadd.f32 %v5547_v24, %v5439_v60 }
 0x675   : > { %4248 = vpow2.f32 %v1639_v25  ;;  %v1653_v38 = vmul.f32 1.442695, %v1629_v11  ;;  %v1632_v34 = vadd.f32 %v5547_v24, %v5434_v15  ;;  %v1655_v3 = vmul.f32 1.442695, %v1630_v54 }
 0x676   : > { %4250 = vpow2.f32 %v1641_v23  ;;  %v1633_v17 = vadd.f32 %v5547_v24, %v5429_v33  ;;  %v1657_v59 = vmul.f32 1.442695, %v1631_v7  ;;  %v1634_v60 = vadd.f32 %v5547_v24, %v5424_v31 }
 0x677   : > { %4252 = vpow2.f32 %v1643_v51  ;;  %v1659_v15 = vmul.f32 1.442695, %v1632_v34  ;;  %v1635_v33 = vadd.f32 %v5547_v24, %v5419_v2  ;;  %v1636_v56 = vadd.f32 %v5547_v24, %v5414_v18 }
 0x678   : > { %4254 = vpow2.f32 %v1645_v5  ;;  %v1661_v62 = vmul.f32 1.442695, %v1633_v17  ;;  %v1663_v31 = vmul.f32 1.442695, %v1634_v60 }
 0x679   : > { %4256 = vpow2.f32 %v1647_v37  ;;  %v1665_v2 = vmul.f32 1.442695, %v1635_v33  ;;  %v1667_v35 = vmul.f32 1.442695, %v1636_v56 }
 0x67a   : > { %4258 = vpow2.f32 %v1649_v52 }
 0x67b   : > { %4260 = vpow2.f32 %v1651_v61 }
 0x67c   : > { %4262 = vpow2.f32 %v1653_v38 }
 0x67d   : > { %4264 = vpow2.f32 %v1655_v3 }
 0x67e   : > { %4266 = vpow2.f32 %v1657_v59 }
 0x67f   : > { %4268 = vpow2.f32 %v1659_v15 }
 0x680   : > { %4270 = vpow2.f32 %v1661_v62 }
 0x681   : > { %v4247_v16 = vpop.eup %4246  ;;  %4272 = vpow2.f32 %v1663_v31 }
 0x682   : > { %v4249_v41 = vpop.eup %4248  ;;  %3704 = vmatprep.mubr.f32.mxu0 %v4247_v16  ;;  %4274 = vpow2.f32 %v1665_v2 }
 0x683   : > { %v4251_v43 = vpop.eup %4250  ;;  %3705 = vmatmul.mubr.f32.vlgmr.msra.gmra.mxu0 %v4249_v41  ;;  %4276 = vpow2.f32 %v1667_v35 }
 0x684   : > { %3707 = vmatprep.mubr.f32.mxu0 %v4251_v43  ;;  %3785 = vmatpush3.msk.msra.mxu0 %vm308_vm1, %v6337_v42  ;;  %v4253_v39 = vpop.eup %4252 }
 0x685   : > { %3786 = vmatprep.subr.mxu0 %v6337_v42  ;;  %v4255_v0 = vpop.eup %4254 }
 0x686   : > { %3787 = vmatpush3.msra.mxu0 %v6337_v42  ;;  %v4257_v49 = vpop.eup %4256 }
 0x687   : > { %3708 = vmatmul.mubr.f32.gmra.mxu0 %v4253_v39  ;;  %3788 = vmatprep.subr.mxu0 %v6337_v42  ;;  %v4259_v63 = vpop.eup %4258 }
 0x688   : > { %3710 = vmatprep.mubr.f32.mxu0 %v4255_v0  ;;  %3789 = vmatpush3.msra.mxu0 %v6337_v42  ;;  %v4261_v18 = vpop.eup %4260 }
 0x689   : > { %3790 = vmatprep.subr.mxu0 %v6337_v42  ;;  %v4263_v25 = vpop.eup %4262 }
 0x68a   : > { %3791 = vmatpush3.msra.mxu0 %v6337_v42  ;;  %v4265_v23 = vpop.eup %4264 }
 0x68b   : > { %3711 = vmatmul.mubr.f32.gmra.mxu0 %v4257_v49  ;;  %3792 = vmatprep.subr.mxu0 %v6337_v42  ;;  %v4267_v32 = vpop.eup %4266 }
 0x68c   : > { %3713 = vmatprep.mubr.f32.mxu0 %v4259_v63  ;;  %3793 = vmatpush3.msra.mxu0 %v6337_v42  ;;  %v4269_v51 = vpop.eup %4268 }
 0x68d   : > { %3794 = vmatprep.subr.mxu0 %v6337_v42  ;;  %v4271_v53 = vpop.eup %4270 }
 0x68e   : > { %3795 = vmatpush3.msra.mxu0 %v6337_v42  ;;  %v4273_v5 = vpop.eup %4272 }
 0x68f   : > { %3714 = vmatmul.mubr.f32.gmra.mxu0 %v4261_v18  ;;  %3796 = vmatprep.subr.mxu0 %v6337_v42  ;;  %v4275_v40 = vpop.eup %4274 }
 0x690   : > { %3716 = vmatprep.mubr.f32.mxu0 %v4263_v25  ;;  %3797 = vmatpush3.msra.mxu0 %v6337_v42  ;;  %v4277_v37 = vpop.eup %4276 }
 0x691   : > { %3798 = vmatprep.subr.mxu0 %v6337_v42 }
 0x692   : > { %3799 = vmatpush3.msra.mxu0 %v6337_v42 }
 0x693   : > { %3717 = vmatmul.mubr.f32.gmra.mxu0 %v4265_v23  ;;  %3800 = vmatprep.subr.mxu0 %v6337_v42 }
 0x694   : > { %3719 = vmatprep.mubr.f32.mxu0 %v4267_v32  ;;  %3801 = vmatpush3.msra.mxu0 %v6337_v42 }
 0x695   : > { %3802 = vmatprep.subr.mxu0 %v6337_v42 }
 0x696   : > { %3803 = vmatpush3.msra.mxu0 %v6337_v42 }
 0x697   : > { %3720 = vmatmul.mubr.f32.gmra.mxu0 %v4269_v51  ;;  %3804 = vmatprep.subr.mxu0 %v6337_v42 }
 0x698   : > { %3722 = vmatprep.mubr.f32.mxu0 %v4271_v53  ;;  %3805 = vmatpush3.msra.mxu0 %v6337_v42 }
 0x699   : > { %3806 = vmatprep.subr.mxu0 %v6337_v42 }
 0x69a   : > { %3807 = vmatpush3.msra.mxu0 %v6337_v42 }
 0x69b   : > { %3723 = vmatmul.mubr.f32.gmra.mxu0 %v4273_v5  ;;  %3808 = vmatprep.subr.mxu0 %v6337_v42 }
 0x69c   : > { %3725 = vmatprep.mubr.f32.mxu0 %v4275_v40  ;;  %3809 = vmatpush3.msra.mxu0 %v6337_v42 }
 0x69f   : > { %3726 = vmatmul.mubr.f32.gmra.mxu0 %v4277_v37 }
 0x743   : > { %v5608_v11 = vpop.f32.mrf.mxu0 }
 0x745   : > { %v5610_v52 = vpop.f32.mrf.mxu0 }
 0x747   : > { %v3709_v54 = vpop.f32.mrf.mxu0 }
 0x749   : > { %v1745_v61 = vpop.f32.mrf.mxu0 }
 0x74b   : > { %v3712_v7 = vpop.f32.mrf.mxu0 }
 0x74c   : > { %v1819_v32 = vmax.f32 %v3712_v7, 1e-37 }
 0x74d   : > { %v1755_v38 = vpop.f32.mrf.mxu0 }
 0x74e   : > { %v1818_v5 = vmax.f32 %v1755_v38, 1e-37 }
 0x74f   : > { %v3715_v16 = vpop.f32.mrf.mxu0 }
 0x750   : > { %v1821_v35 = vmax.f32 %v3715_v16, 1e-37 }
 0x751   : > { %v1765_v34 = vpop.f32.mrf.mxu0 }
 0x752   : > { %v1820_v25 = vmax.f32 %v1765_v34, 1e-37 }
 0x753   : > { %v3718_v3 = vpop.f32.mrf.mxu0 }
 0x754   : > { %v1823_v2 = vmax.f32 %v3718_v3, 1e-37 }
 0x755   : > { %v1775_v41 = vpop.f32.mrf.mxu0 }
 0x756   : > { %v1822_v63 = vmax.f32 %v1775_v41, 1e-37 }
 0x757   : > { %v3721_v17 = vpop.f32.mrf.mxu0 }
 0x758   : > { %v1825_v56 = vmax.f32 %v3721_v17, 1e-37 }
 0x759   : > { %v1785_v59 = vpop.f32.mrf.mxu0 }
 0x75a   : > { %v1824_v49 = vmax.f32 %v1785_v59, 1e-37  ;;  %v1817_v59 = vmax.f32 %v3709_v54, 1e-37 }
 0x75b   : > { %v3724_v43 = vpop.f32.mrf.mxu0 }
 0x75c   : > { %v1827_v60 = vmax.f32 %v3724_v43, 1e-37 }
 0x75d   : > { %v1795_v15 = vpop.f32.mrf.mxu0 }
 0x75e   : > { %4278 = vlog2.f32 %v1827_v60  ;;  %v1826_v39 = vmax.f32 %v1795_v15, 1e-37  ;;  %v1816_v60 = vmax.f32 %v1745_v61, 1e-37 }
 0x75f   : > { %v3727_v33 = vpop.f32.mrf.mxu0 }
 0x760   : > { %4280 = vlog2.f32 %v1826_v39  ;;  %v1829_v62 = vmax.f32 %v3727_v33, 1e-37  ;;  %v1815_v33 = vmax.f32 %v5608_v11, 1e-37 }
 0x761   : > { %v1805_v0 = vpop.f32.mrf.mxu0 }
 0x762   : > { %4282 = vlog2.f32 %v1829_v62  ;;  %v1828_v31 = vmax.f32 %v1805_v0, 1e-37 }
 0x764   : > { %4284 = vlog2.f32 %v1828_v31  ;;  %v1814_v31 = vmax.f32 %v5610_v52, 1e-37 }
 0x765   : > { %4286 = vlog2.f32 %v1825_v56 }
 0x766   : > { %4288 = vlog2.f32 %v1824_v49 }
 0x767   : > { %4290 = vlog2.f32 %v1823_v2 }
 0x768   : > { %4292 = vlog2.f32 %v1822_v63 }
 0x769   : > { %4294 = vlog2.f32 %v1821_v35 }
 0x76a   : > { %4296 = vlog2.f32 %v1820_v25 }
 0x76b   : > { %v4279_v18 = vpop.eup %4278  ;;  %4298 = vlog2.f32 %v1819_v32 }
 0x76c   : > { %v1857_v51 = vmul.f32 0.6931472, %v4279_v18  ;;  %4300 = vlog2.f32 %v1818_v5 }
 0x76d   : > { %v4281_v23 = vpop.eup %4280  ;;  %4302 = vlog2.f32 %v1817_v59 }
 0x76e   : > { %v1855_v40 = vmul.f32 0.6931472, %v4281_v23  ;;  %v1875_v3 = vsub.f32 -4.6051693, %v1857_v51  ;;  %4304 = vlog2.f32 %v1816_v60 }
 0x76f   : > { %v4283_v53 = vpop.eup %4282  ;;  %4306 = vlog2.f32 %v1815_v33 }
 0x770   : > { %v1861_v37 = vmul.f32 0.6931472, %v4283_v53  ;;  %v1874_v34 = vsub.f32 -4.6051693, %v1855_v40  ;;  %v1891_v62 = vmul.f32 0.0, %v1875_v3  ;;  %4308 = vlog2.f32 %v1814_v31 }
 0x771   : > { %v4285_v17 = vpop.eup %4284 }
 0x772   : > { %v1877_v41 = vsub.f32 -4.6051693, %v1861_v37  ;;  %v1859_v43 = vmul.f32 0.6931472, %v4285_v17  ;;  %v4287_v16 = vpop.eup %4286  ;;  %v1890_v61 = vmul.f32 %v4691_v13, %v1874_v34 }
 0x773   : > { %v4289_v7 = vpop.eup %4288  ;;  %v1853_v38 = vmul.f32 0.6931472, %v4287_v16 }
 0x774   : > { %v1893_v15 = vmul.f32 0.0, %v1877_v41  ;;  %v1876_v39 = vsub.f32 -4.6051693, %v1859_v43  ;;  %v4291_v54 = vpop.eup %4290  ;;  %v1851_v49 = vmul.f32 0.6931472, %v4289_v7  ;;  %v5628_v23 = vadd.f32 %v1890_v61, %v5362_v45 }
 0x775   : > { %v4293_v11 = vpop.eup %4292  ;;  %v1849_v63 = vmul.f32 0.6931472, %v4291_v54  ;;  %v1873_v35 = vsub.f32 -4.6051693, %v1853_v38 }
 0x776   : > { %v1892_v0 = vmul.f32 0.0, %v1876_v39  ;;  %v5614_v56 = vadd.f32 %v1893_v15, %v5348_v29  ;;  %v5624_v29 = vadd.f32 %v1891_v62, %v5358_v1  ;;  %v4295_v18 = vpop.eup %4294  ;;  %v1847_v52 = vmul.f32 0.6931472, %v4293_v11 }
 0x777   : > { %v1872_v25 = vsub.f32 -4.6051693, %v1851_v49  ;;  %v1845_v32 = vmul.f32 0.6931472, %v4295_v18  ;;  %v1871_v51 = vsub.f32 -4.6051693, %v1849_v63  ;;  %v5632_v53 = vadd.f32 %v1873_v35, %v5366_v8 }
 0x778   : > { %1987 = vperm.xlu0 %4048, %v5614_v56   ;;  %v5620_v2 = vadd.f32 %v1892_v0, %v5354_v9  ;;  %v4297_v9 = vpop.eup %4296  ;;  %v1870_v40 = vsub.f32 -4.6051693, %v1847_v52 }
 0x779   : > { %v4299_v5 = vpop.eup %4298  ;;  %v1843_v1 = vmul.f32 0.6931472, %v4297_v9  ;;  %v5636_v37 = vadd.f32 %v1872_v25, %v5370_v6  ;;  %v1869_v3 = vsub.f32 -4.6051693, %v1845_v32  ;;  %v5640_v41 = vadd.f32 %v1871_v51, %v5374_v50 }
 0x77a   : > { %1982 = vperm.xlu1 %4049, %v5620_v2   ;;  %v4301_v17 = vpop.eup %4300  ;;  %v1841_v45 = vmul.f32 0.6931472, %v4299_v5  ;;  %v5644_v16 = vadd.f32 %v1870_v40, %v5378_v48 }
 0x77b   : > { %v4303_v59 = vpop.eup %4302  ;;  %v1839_v43 = vmul.f32 0.6931472, %v4301_v17  ;;  %v1868_v8 = vsub.f32 -4.6051693, %v1843_v1  ;;  %v5648_v15 = vadd.f32 %v1869_v3, %v5382_v36 }
 0x77c   : > { %1977 = vperm.xlu0 %4048, %v5624_v29   ;;  %v4305_v60 = vpop.eup %4304  ;;  %v1837_v34 = vmul.f32 0.6931472, %v4303_v59  ;;  %v1867_v6 = vsub.f32 -4.6051693, %v1841_v45 }
 0x77d   : > { %v4307_v39 = vpop.eup %4306  ;;  %v1835_v7 = vmul.f32 0.6931472, %v4305_v60  ;;  %v1866_v33 = vsub.f32 -4.6051693, %v1839_v43  ;;  %v5652_v50 = vadd.f32 %v1868_v8, %v5386_v57 }
 0x77e   : > { %1972 = vperm.xlu1 %4049, %v5628_v23   ;;  %v4309_v38 = vpop.eup %4308  ;;  %v1833_v62 = vmul.f32 0.6931472, %v4307_v39  ;;  %v1865_v48 = vsub.f32 -4.6051693, %v1837_v34  ;;  %v5656_v0 = vadd.f32 %v1867_v6, %v5390_v30 }
 0x77f   : > { %v1831_v54 = vmul.f32 0.6931472, %v4309_v38  ;;  %v1864_v31 = vsub.f32 -4.6051693, %v1835_v7  ;;  %v5660_v36 = vadd.f32 %v1866_v33, %v5394_v55 }
 0x780   : > { %1967 = vperm.xlu0 %4048, %v5632_v53   ;;  %v1863_v49 = vsub.f32 -4.6051693, %v1833_v62  ;;  %v5664_v57 = vadd.f32 %v1865_v48, %v5398_v22 }
 0x781   : > { %v1862_v61 = vsub.f32 -4.6051693, %v1831_v54  ;;  %v5668_v11 = vadd.f32 %v1864_v31, %v5402_v14 }
 0x782   : > { %1962 = vperm.xlu1 %4049, %v5636_v37   ;;  %v5672_v30 = vadd.f32 %v1863_v49, %v5406_v28  ;;  %v6348_v49 = vld [vmem:[#allocation23_spill] sm:$0xff] }
 0x783   : > { %v5676_v55 = vadd.f32 %v1862_v61, %v5410_v26 }
 0x784   : > { %1957 = vperm.xlu0 %4048, %v5640_v41  }
 0x786   : > { %1952 = vperm.xlu1 %4049, %v5644_v16  }
 0x788   : > { %1947 = vperm.xlu0 %4048, %v5648_v15  }
 0x78a   : > { %1942 = vperm.xlu1 %4049, %v5652_v50  }
 0x78c   : > { %1937 = vperm.xlu0 %4048, %v5656_v0  }
 0x78e   : > { %1932 = vperm.xlu1 %4049, %v5660_v36  }
 0x790   : > { %1927 = vperm.xlu0 %4048, %v5664_v57  }
 0x792   : > { %1922 = vperm.xlu1 %4049, %v5668_v11  }
 0x794   : > { %1917 = vperm.xlu0 %4048, %v5672_v30  }
 0x796   : > { %1912 = vperm.xlu1 %4049, %v5676_v55  }
 0x7f3   : > { %v1988_v22 = vpop.permute.xlu0 %1987 }
 0x7f4   : > { %v5680_v63 = vadd.f32 %v1988_v22, %v4863_v12 }
 0x7f5   : > { %v1983_v35 = vpop.permute.xlu1 %1982 }
 0x7f6   : > { %v2021_v14 = vadd.f32 %v5680_v63, %v5547_v24  ;;  %v5685_v18 = vadd.f32 %v1983_v35, %v4860_v4 }
 0x7f7   : > { %v1978_v28 = vpop.permute.xlu0 %1977 }
 0x7f8   : > { %v2052_v52 = vmul.f32 1.442695, %v2021_v14  ;;  %v2020_v25 = vadd.f32 %v5685_v18, %v5547_v24  ;;  %v5690_v26 = vadd.f32 %v1978_v28, %v4853_v58  ;;  %v6349_v28 = vld [vmem:[#allocation22_spill] sm:$0xff] }
 0x7f9   : > { %v1973_v9 = vpop.permute.xlu1 %1972 }
 0x7fa   : > { %4310 = vpow2.f32 %v2052_v52  ;;  %v2050_v32 = vmul.f32 1.442695, %v2020_v25  ;;  %v2019_v51 = vadd.f32 %v5690_v26, %v5547_v24  ;;  %v5695_v5 = vadd.f32 %v1973_v9, %v4850_v44 }
 0x7fb   : > { %v1968_v1 = vpop.permute.xlu0 %1967 }
 0x7fc   : > { %4312 = vpow2.f32 %v2050_v32  ;;  %v2048_v40 = vmul.f32 1.442695, %v2019_v51  ;;  %v2018_v17 = vadd.f32 %v5695_v5, %v5547_v24  ;;  %v5700_v59 = vadd.f32 %v1968_v1, %v4841_v47  ;;  %v6350_v1 = vld [vmem:[#allocation19_spill] sm:$0xff] }
 0x7fd   : > { %v1963_v45 = vpop.permute.xlu1 %1962 }
 0x7fe   : > { %4314 = vpow2.f32 %v2048_v40  ;;  %v2046_v3 = vmul.f32 1.442695, %v2018_v17  ;;  %v2017_v43 = vadd.f32 %v5700_v59, %v5547_v24  ;;  %v5705_v8 = vadd.f32 %v1963_v45, %v4838_v46 }
 0x7ff   : > { %v1958_v60 = vpop.permute.xlu0 %1957 }
 0x800   : > { %4316 = vpow2.f32 %v2046_v3  ;;  %v2044_v34 = vmul.f32 1.442695, %v2017_v43  ;;  %v2016_v6 = vadd.f32 %v5705_v8, %v5547_v24  ;;  %v5710_v39 = vadd.f32 %v1958_v60, %v4825_v20  ;;  %v6351_v60 = vld [vmem:[#allocation18_spill] sm:$0xff] }
 0x801   : > { %v1953_v7 = vpop.permute.xlu1 %1952 }
 0x802   : > { %4318 = vpow2.f32 %v2044_v34  ;;  %v2042_v33 = vmul.f32 1.442695, %v2016_v6  ;;  %v2015_v38 = vadd.f32 %v5710_v39, %v5547_v24  ;;  %v5715_v62 = vadd.f32 %v1953_v7, %v4822_v19 }
 0x803   : > { %v1948_v48 = vpop.permute.xlu0 %1947 }
 0x804   : > { %4320 = vpow2.f32 %v2042_v33  ;;  %v2040_v54 = vmul.f32 1.442695, %v2015_v38  ;;  %v2014_v31 = vadd.f32 %v5715_v62, %v5547_v24  ;;  %v5720_v61 = vadd.f32 %v1948_v48, %v6348_v49  ;;  %v6352_v48 = vld [vmem:[#allocation15_spill] sm:$0xff] }
 0x805   : > { %v1943_v22 = vpop.permute.xlu1 %1942 }
 0x806   : > { %4322 = vpow2.f32 %v2040_v54  ;;  %v2038_v35 = vmul.f32 1.442695, %v2014_v31  ;;  %v2013_v14 = vadd.f32 %v5720_v61, %v5547_v24  ;;  %v5725_v52 = vadd.f32 %v1943_v22, %v6349_v28 }
 0x807   : > { %v4311_v25 = vpop.eup %4310  ;;  %v1938_v9 = vpop.permute.xlu0 %1937 }
 0x808   : > { %4324 = vpow2.f32 %v2038_v35  ;;  %v2036_v32 = vmul.f32 1.442695, %v2013_v14  ;;  %v2012_v51 = vadd.f32 %v5725_v52, %v5547_v24  ;;  %v5730_v40 = vadd.f32 %v1938_v9, %v6350_v1  ;;  %3728 = vmatprep.subr.mxu1 %v4311_v25 }
 0x809   : > { %v4313_v17 = vpop.eup %4312  ;;  %3729 = vmatpush3.msra.mxu1 %v4311_v25  ;;  %v1933_v45 = vpop.permute.xlu1 %1932  ;;  %v6353_v25 = vld [vmem:[#allocation14_spill] sm:$0xff] }
 0x80a   : > { %4326 = vpow2.f32 %v2036_v32  ;;  %v2034_v3 = vmul.f32 1.442695, %v2012_v51  ;;  %v2011_v43 = vadd.f32 %v5730_v40, %v5547_v24  ;;  %v5735_v34 = vadd.f32 %v1933_v45, %v6351_v60  ;;  %3730 = vmatprep.subr.mxu1 %v4313_v17 }
 0x80b   : > { %v4315_v6 = vpop.eup %4314  ;;  %v1928_v7 = vpop.permute.xlu0 %1927  ;;  %3731 = vmatpush3.msra.mxu1 %v4313_v17 }
 0x80c   : > { %4328 = vpow2.f32 %v2034_v3  ;;  %v2032_v33 = vmul.f32 1.442695, %v2011_v43  ;;  %v2010_v38 = vadd.f32 %v5735_v34, %v5547_v24  ;;  %v5740_v54 = vadd.f32 %v1928_v7, %v6352_v48  ;;  %3732 = vmatprep.subr.mxu1 %v4315_v6  ;;  %v6354_v3 = vld [vmem:[#allocation10_spill] sm:$0xff] }
 0x80d   : > { %v4317_v31 = vpop.eup %4316  ;;  %3733 = vmatpush3.msra.mxu1 %v4315_v6  ;;  %v1923_v22 = vpop.permute.xlu1 %1922 }
 0x80e   : > { %4330 = vpow2.f32 %v2032_v33  ;;  %v2030_v35 = vmul.f32 1.442695, %v2010_v38  ;;  %v2009_v14 = vadd.f32 %v5740_v54, %v5547_v24  ;;  %v5745_v9 = vadd.f32 %v1923_v22, %v6353_v25  ;;  %3734 = vmatprep.subr.mxu1 %v4317_v31  ;;  %v6355_v22 = vld [vmem:[#allocation11_spill] sm:$0xff] }
 0x80f   : > { %v4319_v32 = vpop.eup %4318  ;;  %v1918_v51 = vpop.permute.xlu0 %1917  ;;  %3735 = vmatpush3.msra.mxu1 %v4317_v31 }
 0x810   : > { %4332 = vpow2.f32 %v2030_v35  ;;  %v2028_v17 = vmul.f32 1.442695, %v2009_v14  ;;  %v2008_v45 = vadd.f32 %v5745_v9, %v5547_v24  ;;  %v5750_v43 = vadd.f32 %v1918_v51, %v6354_v3  ;;  %3736 = vmatprep.subr.mxu1 %v4319_v32 }
 0x811   : > { %v4321_v6 = vpop.eup %4320  ;;  %3737 = vmatpush3.msra.mxu1 %v4319_v32  ;;  %v1913_v7 = vpop.permute.xlu1 %1912 }
 0x812   : > { %4334 = vpow2.f32 %v2028_v17  ;;  %v2026_v33 = vmul.f32 1.442695, %v2008_v45  ;;  %v2007_v38 = vadd.f32 %v5750_v43, %v5547_v24  ;;  %v5755_v25 = vadd.f32 %v1913_v7, %v6355_v22  ;;  %3738 = vmatprep.subr.mxu1 %v4321_v6 }
 0x813   : > { %v4323_v31 = vpop.eup %4322  ;;  %3739 = vmatpush3.msra.mxu1 %v4321_v6 }
 0x814   : > { %4336 = vpow2.f32 %v2026_v33  ;;  %v2024_v35 = vmul.f32 1.442695, %v2007_v38  ;;  %v2006_v14 = vadd.f32 %v5755_v25, %v5547_v24  ;;  %3740 = vmatprep.subr.mxu1 %v4323_v31 }
 0x815   : > { %v4325_v51 = vpop.eup %4324  ;;  %3741 = vmatpush3.msra.mxu1 %v4323_v31 }
 0x816   : > { %4338 = vpow2.f32 %v2024_v35  ;;  %v2022_v32 = vmul.f32 1.442695, %v2006_v14  ;;  %3742 = vmatprep.subr.mxu1 %v4325_v51 }
 0x817   : > { %v4327_v17 = vpop.eup %4326  ;;  %3743 = vmatpush3.msra.mxu1 %v4325_v51 }
 0x818   : > { %4340 = vpow2.f32 %v2022_v32  ;;  %3744 = vmatprep.subr.mxu1 %v4327_v17 }
 0x819   : > { %v4329_v45 = vpop.eup %4328  ;;  %3745 = vmatpush3.msra.mxu1 %v4327_v17 }
 0x81a   : > { %3746 = vmatprep.subr.mxu1 %v4329_v45 }
 0x81b   : > { %v4331_v7 = vpop.eup %4330  ;;  %3747 = vmatpush3.msra.mxu1 %v4329_v45 }
 0x81c   : > { %3748 = vmatprep.subr.mxu1 %v4331_v7 }
 0x81d   : > { %v4333_v6 = vpop.eup %4332  ;;  %3749 = vmatpush3.msra.mxu1 %v4331_v7 }
 0x81e   : > { %3750 = vmatprep.subr.mxu1 %v4333_v6 }
 0x81f   : > { %v4335_v24 = vpop.eup %4334  ;;  %3751 = vmatpush3.msra.mxu1 %v4333_v6 }
 0x820   : > { %3752 = vmatprep.subr.mxu1 %v4335_v24 }
 0x821   : > { %v4337_v33 = vpop.eup %4336  ;;  %3753 = vmatpush3.msra.mxu1 %v4335_v24 }
 0x822   : > { %3754 = vmatprep.subr.mxu1 %v4337_v33 }
 0x823   : > { %v4339_v38 = vpop.eup %4338  ;;  %3755 = vmatpush3.msra.mxu1 %v4337_v33 }
 0x824   : > { %3756 = vmatprep.subr.mxu1 %v4339_v38 }
 0x825   : > { %v4341_v31 = vpop.eup %4340  ;;  %3757 = vmatpush3.msra.mxu1 %v4339_v38 }
 0x826   : > { %3758 = vmatprep.subr.mxu1 %v4341_v31 }
 0x827   : > { %3759 = vmatpush3.msra.mxu1 %v4341_v31 }
 0x828   : > { %3761 = vmatmul.mubr.msk.f32.vlgmr.msra.gmra.mxu1 %vm346_vm0, %v6337_v42 }
 0x829   : > { %3763 = vmatprep.mubr.msk.f32.mxu1 %vm346_vm0, %v6337_v42 }
 0x82c   : > { %3764 = vmatmul.mubr.msk.f32.gmra.mxu1 %vm346_vm0, %v6337_v42 }
 0x82d   : > { %3766 = vmatprep.mubr.msk.f32.mxu1 %vm346_vm0, %v6337_v42 }
 0x830   : > { %3767 = vmatmul.mubr.msk.f32.gmra.mxu1 %vm346_vm0, %v6337_v42 }
 0x831   : > { %3769 = vmatprep.mubr.msk.f32.mxu1 %vm346_vm0, %v6337_v42 }
 0x834   : > { %3770 = vmatmul.mubr.msk.f32.gmra.mxu1 %vm346_vm0, %v6337_v42 }
 0x835   : > { %3772 = vmatprep.mubr.msk.f32.mxu1 %vm346_vm0, %v6337_v42 }
 0x838   : > { %3773 = vmatmul.mubr.msk.f32.gmra.mxu1 %vm346_vm0, %v6337_v42 }
 0x839   : > { %3775 = vmatprep.mubr.msk.f32.mxu1 %vm346_vm0, %v6337_v42 }
 0x83c   : > { %3776 = vmatmul.mubr.msk.f32.gmra.mxu1 %vm346_vm0, %v6337_v42 }
 0x83d   : > { %3778 = vmatprep.mubr.msk.f32.mxu1 %vm346_vm0, %v6337_v42 }
 0x840   : > { %3779 = vmatmul.mubr.msk.f32.gmra.mxu1 %vm346_vm0, %v6337_v42 }
 0x841   : > { %3781 = vmatprep.mubr.msk.f32.mxu1 %vm346_vm0, %v6337_v42 }
 0x844   : > { %3782 = vmatmul.mubr.msk.f32.gmra.mxu1 %vm346_vm0, %v6337_v42 }
 0x845   : > { %3866 = vmatprep.mubr.msk.f32.mxu1 %vm346_vm0, %v6337_v42 }
 0x8e8   : > { %v3762_v14 = vpop.f32.mrf.mxu1 }
 0x8ea   : > { %v2120_v51 = vpop.f32.mrf.mxu1 }
 0x8eb   : > { %v2184_v32 = vmax.f32 %v2120_v51, 1e-37 }
 0x8ec   : > { %v3765_v17 = vpop.f32.mrf.mxu1 }
 0x8ed   : > { %4342 = vlog2.f32 %v2184_v32 }
 0x8ee   : > { %v2129_v45 = vpop.f32.mrf.mxu1 }
 0x8f0   : > { %v3768_v7 = vpop.f32.mrf.mxu1 }
 0x8f2   : > { %v2137_v6 = vpop.f32.mrf.mxu1 }
 0x8f4   : > { %v3771_v24 = vpop.f32.mrf.mxu1 }
 0x8f6   : > { %v2145_v33 = vpop.f32.mrf.mxu1 }
 0x8f8   : > { %v3774_v38 = vpop.f32.mrf.mxu1 }
 0x8fa   : > { %v4343_v31 = vpop.eup %4342  ;;  %v2153_v22 = vpop.f32.mrf.mxu1 }
 0x8fb   : > { %v2186_v3 = vmul.f32 0.6931472, %v4343_v31 }
 0x8fc   : > { %v3777_v48 = vpop.f32.mrf.mxu1 }
 0x8fd   : > { %v2187_v60 = vsub.f32 -4.6051693, %v2186_v3 }
 0x8fe   : > { %v2161_v1 = vpop.f32.mrf.mxu1 }
 0x8ff   : > { %v2188_v35 = vmul.f32 %v4680_v10, %v2187_v60 }
 0x900   : > { %v3780_v42 = vpop.f32.mrf.mxu1 }
 0x901   : > { %v5809_v14 = vadd.f32 %v2188_v35, %v5543_v21 }
 0x902   : > { %v2169_v51 = vpop.f32.mrf.mxu1 }
 0x903   : > { %v5813_v32 = vrot.slane %v5809_v14, %v6339_v27 }
 0x904   : > { %v3783_v17 = vpop.f32.mrf.mxu1 }
 0x905   : > { %v2194_v45 = vadd.f32 %v5813_v32, %v5755_v25  ;;  %v2195_v48 = vadd.f32 %v5813_v32, %v5750_v43  ;;  %v2196_v1 = vadd.f32 %v5813_v32, %v5745_v9  ;;  %v2197_v42 = vadd.f32 %v5813_v32, %v5740_v54 }
 0x906   : > { %v2177_v60 = vpop.f32.mrf.mxu1  ;;  %v2198_v21 = vadd.f32 %v5813_v32, %v5735_v34  ;;  %v2199_v25 = vadd.f32 %v5813_v32, %v5730_v40  ;;  %v2200_v43 = vadd.f32 %v5813_v32, %v5725_v52  ;;  %v2201_v54 = vadd.f32 %v5813_v32, %v5720_v61 }
 0x907   : > { %v2210_v3 = vmul.f32 1.442695, %v2194_v45  ;;  %v2212_v27 = vmul.f32 1.442695, %v2195_v48  ;;  %v2214_v22 = vmul.f32 1.442695, %v2196_v1  ;;  %v2202_v34 = vadd.f32 %v5813_v32, %v5715_v62 }
 0x908   : > { %v2216_v35 = vmul.f32 1.442695, %v2197_v42  ;;  %v2218_v9 = vmul.f32 1.442695, %v2198_v21  ;;  %v2220_v7 = vmul.f32 1.442695, %v2199_v25  ;;  %v2203_v40 = vadd.f32 %v5813_v32, %v5710_v39 }
 0x909   : > { %4344 = vpow2.f32 %v2210_v3  ;;  %v2222_v6 = vmul.f32 1.442695, %v2200_v43  ;;  %v2224_v24 = vmul.f32 1.442695, %v2201_v54  ;;  %v2204_v52 = vadd.f32 %v5813_v32, %v5705_v8 }
 0x90a   : > { %4346 = vpow2.f32 %v2212_v27  ;;  %v2226_v33 = vmul.f32 1.442695, %v2202_v34  ;;  %v2205_v61 = vadd.f32 %v5813_v32, %v5700_v59  ;;  %v2228_v31 = vmul.f32 1.442695, %v2203_v40 }
 0x90b   : > { %4348 = vpow2.f32 %v2214_v22  ;;  %v2206_v62 = vadd.f32 %v5813_v32, %v5695_v5  ;;  %v2230_v17 = vmul.f32 1.442695, %v2204_v52  ;;  %v2207_v8 = vadd.f32 %v5813_v32, %v5690_v26 }
 0x90c   : > { %4350 = vpow2.f32 %v2216_v35  ;;  %v2232_v45 = vmul.f32 1.442695, %v2205_v61  ;;  %v2208_v59 = vadd.f32 %v5813_v32, %v5685_v18  ;;  %v2209_v5 = vadd.f32 %v5813_v32, %v5680_v63 }
 0x90d   : > { %4352 = vpow2.f32 %v2218_v9  ;;  %v2234_v1 = vmul.f32 1.442695, %v2206_v62  ;;  %v2236_v42 = vmul.f32 1.442695, %v2207_v8 }
 0x90e   : > { %4354 = vpow2.f32 %v2220_v7  ;;  %v2238_v3 = vmul.f32 1.442695, %v2208_v59  ;;  %v2240_v27 = vmul.f32 1.442695, %v2209_v5 }
 0x90f   : > { %4356 = vpow2.f32 %v2222_v6 }
 0x910   : > { %4358 = vpow2.f32 %v2224_v24 }
 0x911   : > { %4360 = vpow2.f32 %v2226_v33 }
 0x912   : > { %4362 = vpow2.f32 %v2228_v31 }
 0x913   : > { %4364 = vpow2.f32 %v2230_v17 }
 0x914   : > { %4366 = vpow2.f32 %v2232_v45 }
 0x915   : > { %4368 = vpow2.f32 %v2234_v1 }
 0x916   : > { %v4345_v38 = vpop.eup %4344  ;;  %4370 = vpow2.f32 %v2236_v42 }
 0x917   : > { %v4347_v51 = vpop.eup %4346  ;;  %3810 = vmatprep.mubr.f32.mxu0 %v4345_v38  ;;  %4372 = vpow2.f32 %v2238_v3 }
 0x918   : > { %v4349_v39 = vpop.eup %4348  ;;  %3811 = vmatmul.mubr.f32.vlgmr.msra.gmra.mxu0 %v4347_v51  ;;  %4374 = vpow2.f32 %v2240_v27 }
 0x919   : > { %3813 = vmatprep.mubr.f32.mxu0 %v4349_v39  ;;  %v4351_v48 = vpop.eup %4350 }
 0x91a   : > { %v4353_v60 = vpop.eup %4352 }
 0x91b   : > { %v4355_v21 = vpop.eup %4354 }
 0x91c   : > { %3814 = vmatmul.mubr.f32.gmra.mxu0 %v4351_v48  ;;  %v4357_v26 = vpop.eup %4356 }
 0x91d   : > { %3816 = vmatprep.mubr.f32.mxu0 %v4353_v60  ;;  %v4359_v22 = vpop.eup %4358 }
 0x91e   : > { %v4361_v18 = vpop.eup %4360 }
 0x91f   : > { %v4363_v25 = vpop.eup %4362 }
 0x920   : > { %3817 = vmatmul.mubr.f32.gmra.mxu0 %v4355_v21  ;;  %v4365_v35 = vpop.eup %4364 }
 0x921   : > { %3819 = vmatprep.mubr.f32.mxu0 %v4357_v26  ;;  %v4367_v63 = vpop.eup %4366 }
 0x922   : > { %v4369_v43 = vpop.eup %4368 }
 0x923   : > { %v4371_v9 = vpop.eup %4370 }
 0x924   : > { %3820 = vmatmul.mubr.f32.gmra.mxu0 %v4359_v22  ;;  %v4373_v54 = vpop.eup %4372 }
 0x925   : > { %3822 = vmatprep.mubr.f32.mxu0 %v4361_v18  ;;  %v4375_v7 = vpop.eup %4374 }
 0x928   : > { %3823 = vmatmul.mubr.f32.gmra.mxu0 %v4363_v25 }
 0x929   : > { %3825 = vmatprep.mubr.f32.mxu0 %v4365_v35 }
 0x92c   : > { %3826 = vmatmul.mubr.f32.gmra.mxu0 %v4367_v63 }
 0x92d   : > { %3828 = vmatprep.mubr.f32.mxu0 %v4369_v43 }
 0x930   : > { %3829 = vmatmul.mubr.f32.gmra.mxu0 %v4371_v9 }
 0x931   : > { %3831 = vmatprep.mubr.f32.mxu0 %v4373_v54 }
 0x934   : > { %3832 = vmatmul.mubr.f32.gmra.mxu0 %v4375_v7 }
 0x9d8   : > { %v3812_v34 = vpop.f32.mrf.mxu0 }
 0x9d9   : > { %v2388_v51 = vmax.f32 %v3812_v34, 1e-37 }
 0x9da   : > { %v2308_v6 = vpop.f32.mrf.mxu0 }
 0x9db   : > { %v2387_v61 = vmax.f32 %v2308_v6, 1e-37 }
 0x9dc   : > { %v3815_v40 = vpop.f32.mrf.mxu0 }
 0x9dd   : > { %4376 = vlog2.f32 %v2387_v61  ;;  %v2390_v45 = vmax.f32 %v3815_v40, 1e-37 }
 0x9de   : > { %v2318_v24 = vpop.f32.mrf.mxu0  ;;  %4378 = vlog2.f32 %v2388_v51 }
 0x9df   : > { %v2389_v17 = vmax.f32 %v2318_v24, 1e-37 }
 0x9e0   : > { %v3818_v52 = vpop.f32.mrf.mxu0 }
 0x9e1   : > { %4380 = vlog2.f32 %v2389_v17  ;;  %v2392_v26 = vmax.f32 %v3818_v52, 1e-37 }
 0x9e2   : > { %v2328_v33 = vpop.f32.mrf.mxu0  ;;  %4382 = vlog2.f32 %v2390_v45 }
 0x9e3   : > { %v2391_v59 = vmax.f32 %v2328_v33, 1e-37 }
 0x9e4   : > { %v3821_v38 = vpop.f32.mrf.mxu0 }
 0x9e5   : > { %v2394_v52 = vmax.f32 %v3821_v38, 1e-37 }
 0x9e6   : > { %v2338_v31 = vpop.f32.mrf.mxu0 }
 0x9e7   : > { %v2393_v35 = vmax.f32 %v2338_v31, 1e-37 }
 0x9e8   : > { %v3824_v62 = vpop.f32.mrf.mxu0 }
 0x9e9   : > { %v2396_v7 = vmax.f32 %v3824_v62, 1e-37 }
 0x9ea   : > { %v2348_v39 = vpop.f32.mrf.mxu0  ;;  %v4377_v22 = vpop.eup %4376 }
 0x9eb   : > { %v4379_v63 = vpop.eup %4378  ;;  %v2404_v54 = vmul.f32 0.6931472, %v4377_v22  ;;  %v2395_v40 = vmax.f32 %v2348_v39, 1e-37 }
 0x9ec   : > { %v3827_v8 = vpop.f32.mrf.mxu0  ;;  %v2406_v34 = vmul.f32 0.6931472, %v4379_v63 }
 0x9ed   : > { %v2398_v18 = vmax.f32 %v3827_v8, 1e-37  ;;  %v2435_v24 = vsub.f32 -4.6051693, %v2404_v54 }
 0x9ee   : > { %v2358_v48 = vpop.f32.mrf.mxu0  ;;  %v4381_v9 = vpop.eup %4380  ;;  %v2436_v51 = vsub.f32 -4.6051693, %v2406_v34 }
 0x9ef   : > { %v2397_v43 = vmax.f32 %v2358_v48, 1e-37  ;;  %v2408_v6 = vmul.f32 0.6931472, %v4381_v9  ;;  %v4383_v33 = vpop.eup %4382  ;;  %v5848_v62 = vadd.f32 %v2435_v24, %v5676_v55  }
 0x9f0   : > { %v3830_v1 = vpop.f32.mrf.mxu0  ;;  %v2410_v45 = vmul.f32 0.6931472, %v4383_v33  ;;  %v5851_v39 = vadd.f32 %v2436_v51, %v5672_v30  }
 0x9f1   : > { %v2400_v60 = vmax.f32 %v3830_v1, 1e-37  ;;  %v2437_v17 = vsub.f32 -4.6051693, %v2408_v6 }
 0x9f2   : > { %v2368_v5 = vpop.f32.mrf.mxu0 }
 0x9f3   : > { %4384 = vlog2.f32 %v2400_v60  ;;  %v2399_v42 = vmax.f32 %v2368_v5, 1e-37  ;;  %v6357_v60 = vmov %v5851_v39 }
 0x9f4   : > { %4386 = vlog2.f32 %v2391_v59  ;;  %v3833_v21 = vpop.f32.mrf.mxu0 }
 0x9f5   : > { %4388 = vlog2.f32 %v2399_v42  ;;  %v2402_v3 = vmax.f32 %v3833_v21, 1e-37  ;;  %v5854_v42 = vadd.f32 %v2437_v17, %v5668_v11  }
 0x9f6   : > { %v2378_v27 = vpop.f32.mrf.mxu0 }
 0x9f7   : > { %4390 = vlog2.f32 %v2402_v3  ;;  %v2401_v25 = vmax.f32 %v2378_v27, 1e-37  ;;  %v2438_v3 = vsub.f32 -4.6051693, %v2410_v45  ;;  %v2765_v6 = vsub.f32 %v5854_v42, %v5668_v11 }
 0x9f9   : > { %4392 = vlog2.f32 %v2401_v25  ;;  %v5863_v39 = vadd.f32 %v2438_v3, %v5664_v57  }
 0x9fa   : > { %4394 = vlog2.f32 %v2392_v26  ;;  %v2763_v26 = vsub.f32 %v5848_v62, %v5676_v55 }
 0x9fb   : > { %4396 = vlog2.f32 %v2398_v18  ;;  %v6358_v55 = vmov %v5863_v39  ;;  %v2781_v39 = vand.u32 2147483647, %v2765_v6 }
 0x9fc   : > { %4398 = vlog2.f32 %v2393_v35 }
 0x9fd   : > { %4400 = vlog2.f32 %v2397_v43  ;;  %v2764_v43 = vsub.f32 %v6357_v60, %v5672_v30 }
 0x9fe   : > { %4402 = vlog2.f32 %v2396_v7 }
 0x9ff   : > { %4404 = vlog2.f32 %v2395_v40  ;;  %v2780_v45 = vand.u32 2147483647, %v2764_v43 }
 0xa00   : > { %v4385_v61 = vpop.eup %4384  ;;  %4406 = vlog2.f32 %v2394_v52  ;;  %v2779_v52 = vand.u32 2147483647, %v2763_v26 }
 0xa01   : > { %v4387_v31 = vpop.eup %4386  ;;  %v2430_v48 = vmul.f32 0.6931472, %v4385_v61  ;;  %v2797_v43 = vsel %vm2795_vm2, %v2780_v45, 0.0 }
 0xa02   : > { %v4389_v8 = vpop.eup %4388  ;;  %v2412_v1 = vmul.f32 0.6931472, %v4387_v31 }
 0xa03   : > { %v2428_v38 = vmul.f32 0.6931472, %v4389_v8  ;;  %v2448_v22 = vsub.f32 -4.6051693, %v2430_v48 }
 0xa04   : > { %v4391_v59 = vpop.eup %4390  ;;  %v2439_v63 = vsub.f32 -4.6051693, %v2412_v1 }
 0xa05   : > { %v2434_v5 = vmul.f32 0.6931472, %v4391_v59  ;;  %v2447_v54 = vsub.f32 -4.6051693, %v2428_v38  ;;  %v2464_v61 = vmul.f32 0.0, %v2448_v22 }
 0xa06   : > { %v4393_v21 = vpop.eup %4392  ;;  %v5869_v17 = vadd.f32 %v2439_v63, %v5660_v36  }
 0xa07   : > { %v4395_v27 = vpop.eup %4394  ;;  %v2450_v18 = vsub.f32 -4.6051693, %v2434_v5  ;;  %v2432_v25 = vmul.f32 0.6931472, %v4393_v21  ;;  %v2463_v59 = vmul.f32 %v4691_v13, %v2447_v54  ;;  %v2766_v21 = vsub.f32 %v6358_v55, %v5664_v57 }
 0xa08   : > { %v4397_v35 = vpop.eup %4396  ;;  %v2414_v24 = vmul.f32 0.6931472, %v4395_v27  ;;  %v6360_v48 = vmov %v5869_v17  ;;  %v5880_v22 = vadd.f32 %v2464_v61, %v5624_v29  }
 0xa09   : > { %v4399_v9 = vpop.eup %4398  ;;  %v2466_v7 = vmul.f32 0.0, %v2450_v18  ;;  %v2449_v34 = vsub.f32 -4.6051693, %v2432_v25  ;;  %v2426_v33 = vmul.f32 0.6931472, %v4397_v35  ;;  %v2796_v18 = vsel %vm2795_vm2, %v2779_v52, 0.0 }
 0xa0a   : > { %v4401_v40 = vpop.eup %4400  ;;  %v2416_v31 = vmul.f32 0.6931472, %v4399_v9  ;;  %v2440_v5 = vsub.f32 -4.6051693, %v2414_v24  ;;  %v6361_v63 = vmov %v5880_v22  ;;  %v5888_v17 = vadd.f32 %v2463_v59, %v5628_v23  }
 0xa0b   : > { %v2465_v51 = vmul.f32 0.0, %v2449_v34  ;;  %v5866_v35 = vadd.f32 %v2466_v7, %v5614_v56   ;;  %v4403_v30 = vpop.eup %4402  ;;  %v2424_v11 = vmul.f32 0.6931472, %v4401_v40  ;;  %v2446_v27 = vsub.f32 -4.6051693, %v2426_v33 }
 0xa0c   : > { %v4405_v38 = vpop.eup %4404  ;;  %v2422_v26 = vmul.f32 0.6931472, %v4403_v30  ;;  %v2441_v25 = vsub.f32 -4.6051693, %v2416_v31  ;;  %v6362_v57 = vmov %v5888_v17  ;;  %v2799_v7 = vsel %vm2795_vm2, %v2781_v39, 0.0 }
 0xa0d   : > { %v6359_v8 = vmov %v5866_v35  ;;  %v5874_v1 = vadd.f32 %v2465_v51, %v5620_v2   ;;  %v4407_v3 = vpop.eup %4406  ;;  %v2767_v35 = vsub.f32 %v6360_v48, %v5660_v36  ;;  %v2420_v9 = vmul.f32 0.6931472, %v4405_v38 }
 0xa0e   : > { %2560 = vperm.xlu0 %4048, %v6359_v8   ;;  %v2445_v54 = vsub.f32 -4.6051693, %v2424_v11  ;;  %v2418_v34 = vmul.f32 0.6931472, %v4407_v3  ;;  %v2798_v6 = vadd.f32 %v2797_v43, %v2796_v18  ;;  %v2444_v40 = vsub.f32 -4.6051693, %v2422_v26 }
 0xa0f   : > { %2555 = vperm.xlu1 %4049, %v5874_v1   ;;  %v5893_v18 = vadd.f32 %v2446_v27, %v5632_v53   ;;  %v5896_v38 = vadd.f32 %v2440_v5, %v5656_v0   ;;  %v2782_v36 = vand.u32 2147483647, %v2766_v21  ;;  %v2443_v61 = vsub.f32 -4.6051693, %v2420_v9 }
 0xa10   : > { %v2800_v33 = vadd.f32 %v2799_v7, %v2798_v6  ;;  %v5900_v21 = vadd.f32 %v2445_v54, %v5636_v37   ;;  %v5903_v30 = vadd.f32 %v2441_v25, %v5652_v50   ;;  %v2783_v31 = vand.u32 2147483647, %v2767_v35 }
 0xa11   : > { %v6363_v24 = vmov %v5893_v18  ;;  %v6364_v52 = vmov %v5896_v38  ;;  %v2442_v17 = vsub.f32 -4.6051693, %v2418_v34  ;;  %v5907_v22 = vadd.f32 %v2444_v40, %v5640_v41  }
 0xa12   : > { %2550 = vperm.xlu0 %4048, %v6361_v63   ;;  %v6365_v51 = vmov %v5900_v21  ;;  %v2768_v45 = vsub.f32 %v6364_v52, %v5656_v0  ;;  %v2801_v59 = vsel %vm2795_vm2, %v2782_v36, 0.0  ;;  %v5914_v25 = vadd.f32 %v2443_v61, %v5644_v16  }
 0xa13   : > { %2545 = vperm.xlu1 %4049, %v6362_v57   ;;  %v6366_v11 = vmov %v5907_v22  ;;  %v2802_v39 = vadd.f32 %v2801_v59, %v2800_v33  ;;  %v2769_v38 = vsub.f32 %v5903_v30, %v5652_v50  ;;  %v2803_v21 = vsel %vm2795_vm2, %v2783_v31, 0.0 }
 0xa14   : > { %v6367_v5 = vmov %v5914_v25  ;;  %v5921_v26 = vadd.f32 %v2442_v17, %v5648_v15   ;;  %v2784_v27 = vand.u32 2147483647, %v2768_v45  ;;  %v2774_v61 = vsub.f32 %v6363_v24, %v5632_v53 }
 0xa15   : > { %v2804_v0 = vadd.f32 %v2803_v21, %v2802_v39  ;;  %v2785_v22 = vand.u32 2147483647, %v2769_v38  ;;  %v2771_v35 = vsub.f32 %v6367_v5, %v5644_v16  ;;  %v2773_v16 = vsub.f32 %v6365_v51, %v5636_v37 }
 0xa16   : > { %2540 = vperm.xlu0 %4048, %v6363_v24   ;;  %v6368_v3 = vmov %v5921_v26  ;;  %v2805_v25 = vsel %vm2795_vm2, %v2784_v27, 0.0  ;;  %v2790_v59 = vand.u32 2147483647, %v2774_v61  ;;  %v2776_v38 = vsub.f32 %v6361_v63, %v5624_v29 }
 0xa17   : > { %2535 = vperm.xlu1 %4049, %v6365_v51   ;;  %v2770_v18 = vsub.f32 %v6368_v3, %v5648_v15  ;;  %v2806_v50 = vadd.f32 %v2805_v25, %v2804_v0  ;;  %v2807_v43 = vsel %vm2795_vm2, %v2785_v22, 0.0  ;;  %v2787_v54 = vand.u32 2147483647, %v2771_v35 }
 0xa18   : > { %v2772_v15 = vsub.f32 %v6366_v11, %v5640_v41  ;;  %v2789_v33 = vand.u32 2147483647, %v2773_v16  ;;  %v2775_v41 = vsub.f32 %v6362_v57, %v5628_v23  ;;  %v2777_v21 = vsub.f32 %v5874_v1, %v5620_v2 }
 0xa19   : > { %v2786_v26 = vand.u32 2147483647, %v2770_v18  ;;  %v2808_v9 = vadd.f32 %v2807_v43, %v2806_v50  ;;  %v2811_v6 = vsel %vm2795_vm2, %v2787_v54, 0.0  ;;  %v2817_v27 = vsel %vm2795_vm2, %v2790_v59, 0.0 }
 0xa1a   : > { %2530 = vperm.xlu0 %4048, %v6366_v11   ;;  %v2788_v40 = vand.u32 2147483647, %v2772_v15  ;;  %v2815_v37 = vsel %vm2795_vm2, %v2789_v33, 0.0  ;;  %v2791_v45 = vand.u32 2147483647, %v2775_v41  ;;  %v2778_v25 = vsub.f32 %v6359_v8, %v5614_v56 }
 0xa1b   : > { %2525 = vperm.xlu1 %4049, %v6367_v5   ;;  %v2809_v7 = vsel %vm2795_vm2, %v2786_v26, 0.0  ;;  %v2792_v53 = vand.u32 2147483647, %v2776_v38  ;;  %v2793_v18 = vand.u32 2147483647, %v2777_v21 }
 0xa1c   : > { %v2810_v34 = vadd.f32 %v2809_v7, %v2808_v9  ;;  %v2813_v31 = vsel %vm2795_vm2, %v2788_v40, 0.0  ;;  %v2819_v23 = vsel %vm2795_vm2, %v2791_v45, 0.0  ;;  %v2794_v29 = vand.u32 2147483647, %v2778_v25 }
 0xa1d   : > { %v2821_v50 = vsel %vm2795_vm2, %v2792_v53, 0.0  ;;  %v2823_v43 = vsel %vm2795_vm2, %v2793_v18, 0.0 }
 0xa1e   : > { %2520 = vperm.xlu0 %4048, %v6368_v3   ;;  %v2812_v36 = vadd.f32 %v2811_v6, %v2810_v34  ;;  %v2825_v2 = vsel %vm2795_vm2, %v2794_v29, 0.0 }
 0xa1f   : > { %2515 = vperm.xlu1 %4049, %v5903_v30  }
 0xa20   : > { %v2814_v17 = vadd.f32 %v2813_v31, %v2812_v36 }
 0xa22   : > { %2510 = vperm.xlu0 %4048, %v6364_v52   ;;  %v2816_v39 = vadd.f32 %v2815_v37, %v2814_v17 }
 0xa23   : > { %2505 = vperm.xlu1 %4049, %v6360_v48  }
 0xa24   : > { %v2818_v0 = vadd.f32 %v2817_v27, %v2816_v39 }
 0xa26   : > { %2500 = vperm.xlu0 %4048, %v6358_v55   ;;  %v2820_v22 = vadd.f32 %v2819_v23, %v2818_v0 }
 0xa27   : > { %2495 = vperm.xlu1 %4049, %v5854_v42  }
 0xa28   : > { %v2822_v35 = vadd.f32 %v2821_v50, %v2820_v22 }
 0xa2a   : > { %2490 = vperm.xlu0 %4048, %v6357_v60   ;;  %v2824_v26 = vadd.f32 %v2823_v43, %v2822_v35 }
 0xa2b   : > { %2485 = vperm.xlu1 %4049, %v5848_v62  }
 0xa2c   : > { %v2826_v9 = vadd.f32 %v2825_v2, %v2824_v26 }
 0xa49   : > { %2827 = vadd.xlane.f32.xlu0 %v2826_v9 }
 0xa89   : > { %v2561_v54 = vpop.permute.xlu0 %2560 }
 0xa8a   : > { %v2578_v15 = vadd.f32 %v2561_v54, %v4863_v12  ;;  %v2556_v7 = vpop.permute.xlu1 %2555 }
 0xa8b   : > { %v2577_v16 = vadd.f32 %v2556_v7, %v4860_v4 }
 0xa8c   : > { %v2594_v34 = vadd.f32 %v2578_v15, %v5813_v32 }
 0xa8d   : > { %v2551_v56 = vpop.permute.xlu0 %2550  ;;  %v2593_v40 = vadd.f32 %v2577_v16, %v5813_v32 }
 0xa8e   : > { %v2625_v6 = vmul.f32 1.442695, %v2594_v34  ;;  %v2576_v36 = vadd.f32 %v2551_v56, %v4853_v58  ;;  %v2546_v33 = vpop.permute.xlu1 %2545 }
 0xa8f   : > { %v2623_v41 = vmul.f32 1.442695, %v2593_v40  ;;  %v2575_v31 = vadd.f32 %v2546_v33, %v4850_v44  ;;  %v6369_v40 = vld [vmem:[#allocation19_spill] sm:$0xff] }
 0xa90   : > { %4408 = vpow2.f32 %v2625_v6  ;;  %v2592_v61 = vadd.f32 %v2576_v36, %v5813_v32 }
 0xa91   : > { %v2541_v17 = vpop.permute.xlu0 %2540  ;;  %4410 = vpow2.f32 %v2623_v41  ;;  %v2591_v45 = vadd.f32 %v2575_v31, %v5813_v32  ;;  %v6370_v31 = vld [vmem:[#allocation18_spill] sm:$0xff] }
 0xa92   : > { %v2621_v37 = vmul.f32 1.442695, %v2592_v61  ;;  %v2574_v59 = vadd.f32 %v2541_v17, %v4841_v47  ;;  %v2536_v39 = vpop.permute.xlu1 %2535 }
 0xa93   : > { %v2619_v38 = vmul.f32 1.442695, %v2591_v45  ;;  %v2573_v27 = vadd.f32 %v2536_v39, %v4838_v46  ;;  %v6371_v39 = vld [vmem:[#allocation15_spill] sm:$0xff] }
 0xa94   : > { %4412 = vpow2.f32 %v2621_v37  ;;  %v2590_v21 = vadd.f32 %v2574_v59, %v5813_v32 }
 0xa95   : > { %v2531_v23 = vpop.permute.xlu0 %2530  ;;  %4414 = vpow2.f32 %v2619_v38  ;;  %v2589_v53 = vadd.f32 %v2573_v27, %v5813_v32 }
 0xa96   : > { %v2617_v0 = vmul.f32 1.442695, %v2590_v21  ;;  %v2572_v22 = vadd.f32 %v2531_v23, %v4825_v20  ;;  %v2526_v18 = vpop.permute.xlu1 %2525 }
 0xa97   : > { %v2615_v25 = vmul.f32 1.442695, %v2589_v53  ;;  %v2571_v35 = vadd.f32 %v2526_v18, %v4822_v19  ;;  %v6372_v53 = vld [vmem:[#allocation14_spill] sm:$0xff] }
 0xa98   : > { %4416 = vpow2.f32 %v2617_v0  ;;  %v2588_v50 = vadd.f32 %v2572_v22, %v5813_v32 }
 0xa99   : > { %v2521_v43 = vpop.permute.xlu0 %2520  ;;  %4418 = vpow2.f32 %v2615_v25  ;;  %v2587_v26 = vadd.f32 %v2571_v35, %v5813_v32 }
 0xa9a   : > { %v2613_v29 = vmul.f32 1.442695, %v2588_v50  ;;  %v2570_v2 = vadd.f32 %v2521_v43, %v6348_v49  ;;  %v2516_v9 = vpop.permute.xlu1 %2515  ;;  %v6373_v43 = vld [vmem:[#allocation10_spill] sm:$0xff] }
 0xa9b   : > { %v2611_v54 = vmul.f32 1.442695, %v2587_v26  ;;  %v2569_v7 = vadd.f32 %v2516_v9, %v6349_v28 }
 0xa9c   : > { %4420 = vpow2.f32 %v2613_v29  ;;  %v2586_v15 = vadd.f32 %v2570_v2, %v5813_v32 }
 0xa9d   : > { %v4409_v34 = vpop.eup %4408  ;;  %v2511_v16 = vpop.permute.xlu0 %2510  ;;  %4422 = vpow2.f32 %v2611_v54  ;;  %v2585_v6 = vadd.f32 %v2569_v7, %v5813_v32 }
 0xa9e   : > { %v2609_v56 = vmul.f32 1.442695, %v2586_v15  ;;  %v2568_v36 = vadd.f32 %v2511_v16, %v6369_v40  ;;  %3834 = vmatprep.subr.mxu1 %v4409_v34  ;;  %v4411_v33 = vpop.eup %4410  ;;  %v2506_v41 = vpop.permute.xlu1 %2505  ;;  %v6374_v15 = vld [vmem:[#allocation11_spill] sm:$0xff] }
 0xa9f   : > { %3835 = vmatpush3.msra.mxu1 %v4409_v34  ;;  %v2607_v49 = vmul.f32 1.442695, %v2585_v6  ;;  %v2567_v17 = vadd.f32 %v2506_v41, %v6370_v31 }
 0xaa0   : > { %4424 = vpow2.f32 %v2609_v56  ;;  %v2584_v61 = vadd.f32 %v2568_v36, %v5813_v32  ;;  %3836 = vmatprep.subr.mxu1 %v4411_v33 }
 0xaa1   : > { %v4413_v28 = vpop.eup %4412  ;;  %v2501_v37 = vpop.permute.xlu0 %2500  ;;  %3837 = vmatpush3.msra.mxu1 %v4411_v33  ;;  %4426 = vpow2.f32 %v2607_v49  ;;  %v2583_v59 = vadd.f32 %v2567_v17, %v5813_v32 }
 0xaa2   : > { %v2605_v45 = vmul.f32 1.442695, %v2584_v61  ;;  %v2566_v38 = vadd.f32 %v2501_v37, %v6371_v39  ;;  %3838 = vmatprep.subr.mxu1 %v4413_v28  ;;  %v4415_v21 = vpop.eup %4414  ;;  %v2496_v27 = vpop.permute.xlu1 %2495 }
 0xaa3   : > { %3839 = vmatpush3.msra.mxu1 %v4413_v28  ;;  %v2603_v23 = vmul.f32 1.442695, %v2583_v59  ;;  %v2565_v22 = vadd.f32 %v2496_v27, %v6372_v53  ;;  %v6375_v28 = vmov 1.0  }
 0xaa4   : > { %4428 = vpow2.f32 %v2605_v45  ;;  %v2582_v0 = vadd.f32 %v2566_v38, %v5813_v32  ;;  %3840 = vmatprep.subr.mxu1 %v4415_v21 }
 0xaa5   : > { %v4417_v18 = vpop.eup %4416  ;;  %v2491_v25 = vpop.permute.xlu0 %2490  ;;  %3841 = vmatpush3.msra.mxu1 %v4415_v21  ;;  %4430 = vpow2.f32 %v2603_v23  ;;  %v2581_v35 = vadd.f32 %v2565_v22, %v5813_v32 }
 0xaa6   : > { %v2601_v50 = vmul.f32 1.442695, %v2582_v0  ;;  %v2564_v29 = vadd.f32 %v2491_v25, %v6373_v43  ;;  %3842 = vmatprep.subr.mxu1 %v4417_v18  ;;  %v4419_v26 = vpop.eup %4418  ;;  %v2486_v2 = vpop.permute.xlu1 %2485 }
 0xaa7   : > { %3843 = vmatpush3.msra.mxu1 %v4417_v18  ;;  %v2599_v9 = vmul.f32 1.442695, %v2581_v35  ;;  %v2563_v7 = vadd.f32 %v2486_v2, %v6374_v15 }
 0xaa8   : > { %4432 = vpow2.f32 %v2601_v50  ;;  %v2580_v54 = vadd.f32 %v2564_v29, %v5813_v32  ;;  %3844 = vmatprep.subr.mxu1 %v4419_v26 }
 0xaa9   : > { %v4421_v34 = vpop.eup %4420  ;;  %3845 = vmatpush3.msra.mxu1 %v4419_v26  ;;  %4434 = vpow2.f32 %v2599_v9  ;;  %v2579_v56 = vadd.f32 %v2563_v7, %v5813_v32 }
 0xaaa   : > { %v2597_v16 = vmul.f32 1.442695, %v2580_v54  ;;  %3846 = vmatprep.subr.mxu1 %v4421_v34  ;;  %v4423_v6 = vpop.eup %4422 }
 0xaab   : > { %3847 = vmatpush3.msra.mxu1 %v4421_v34  ;;  %v2595_v40 = vmul.f32 1.442695, %v2579_v56 }
 0xaac   : > { %4436 = vpow2.f32 %v2597_v16  ;;  %3848 = vmatprep.subr.mxu1 %v4423_v6 }
 0xaad   : > { %v4425_v36 = vpop.eup %4424  ;;  %3849 = vmatpush3.msra.mxu1 %v4423_v6  ;;  %4438 = vpow2.f32 %v2595_v40 }
 0xaae   : > { %3850 = vmatprep.subr.mxu1 %v4425_v36  ;;  %v4427_v33 = vpop.eup %4426 }
 0xaaf   : > { %3851 = vmatpush3.msra.mxu1 %v4425_v36 }
 0xab0   : > { %3852 = vmatprep.subr.mxu1 %v4427_v33 }
 0xab1   : > { %v4429_v41 = vpop.eup %4428  ;;  %3853 = vmatpush3.msra.mxu1 %v4427_v33 }
 0xab2   : > { %3854 = vmatprep.subr.mxu1 %v4429_v41  ;;  %v4431_v49 = vpop.eup %4430 }
 0xab3   : > { %3855 = vmatpush3.msra.mxu1 %v4429_v41  ;;  %v6393_v41 = vmov %v5854_v42 }
 0xab4   : > { %3856 = vmatprep.subr.mxu1 %v4431_v49 }
 0xab5   : > { %v4433_v32 = vpop.eup %4432  ;;  %3857 = vmatpush3.msra.mxu1 %v4431_v49 }
 0xab6   : > { %3858 = vmatprep.subr.mxu1 %v4433_v32  ;;  %v4435_v61 = vpop.eup %4434 }
 0xab7   : > { %3859 = vmatpush3.msra.mxu1 %v4433_v32  ;;  %v6394_v32 = vmov %v6357_v60 }
 0xab8   : > { %3860 = vmatprep.subr.mxu1 %v4435_v61 }
 0xab9   : > { %v4437_v31 = vpop.eup %4436  ;;  %3861 = vmatpush3.msra.mxu1 %v4435_v61 }
 0xaba   : > { %3862 = vmatprep.subr.mxu1 %v4437_v31  ;;  %v4439_v17 = vpop.eup %4438 }
 0xabb   : > { %3863 = vmatpush3.msra.mxu1 %v4437_v31  ;;  %v6391_v31 = vmov %v6360_v48 }
 0xabc   : > { %3864 = vmatprep.subr.mxu1 %v4439_v17 }
 0xabd   : > { %3865 = vmatpush3.msra.mxu1 %v4439_v17  ;;  %v6383_v17 = vmov %v6362_v57 }
 0xabe   : > { %3867 = vmatmul.mubr.msk.f32.vlgmr.msra.gmra.mxu1 %vm346_vm0, %v6375_v28 }
 0xabf   : > { %3869 = vmatprep.mubr.msk.f32.mxu1 %vm346_vm0, %v6375_v28 }
 0xac2   : > { %3870 = vmatmul.mubr.msk.f32.gmra.mxu1 %vm346_vm0, %v6375_v28 }
 0xac3   : > { %3872 = vmatprep.mubr.msk.f32.mxu1 %vm346_vm0, %v6375_v28 }
 0xac6   : > { %3873 = vmatmul.mubr.msk.f32.gmra.mxu1 %vm346_vm0, %v6375_v28 }
 0xac7   : > { %3875 = vmatprep.mubr.msk.f32.mxu1 %vm346_vm0, %v6375_v28 }
 0xaca   : > { %3876 = vmatmul.mubr.msk.f32.gmra.mxu1 %vm346_vm0, %v6375_v28 }
 0xacb   : > { %3878 = vmatprep.mubr.msk.f32.mxu1 %vm346_vm0, %v6375_v28 }
 0xace   : > { %3879 = vmatmul.mubr.msk.f32.gmra.mxu1 %vm346_vm0, %v6375_v28 }
 0xacf   : > { %3881 = vmatprep.mubr.msk.f32.mxu1 %vm346_vm0, %v6375_v28 }
 0xad2   : > { %3882 = vmatmul.mubr.msk.f32.gmra.mxu1 %vm346_vm0, %v6375_v28  ;;  %v2828_v45 = vpop.xlane.xlu0 %2827 }
 0xad3   : > { %v2829_v59 = vrot.slane %v2828_v45, 4  ;;  %3884 = vmatprep.mubr.msk.f32.mxu1 %vm346_vm0, %v6375_v28 }
 0xad5   : > { %v2830_v39 = vadd.f32 %v2829_v59, %v2828_v45 }
 0xad6   : > { %3885 = vmatmul.mubr.msk.f32.gmra.mxu1 %vm346_vm0, %v6375_v28 }
 0xad7   : > { %v2831_v38 = vrot.slane %v2830_v39, 2  ;;  %3887 = vmatprep.mubr.msk.f32.mxu1 %vm346_vm0, %v6375_v28 }
 0xad9   : > { %v2832_v21 = vadd.f32 %v2831_v38, %v2830_v39  ;;  %v6390_v38 = vmov %v6364_v52  ;;  %v6392_v39 = vmov %v6358_v55 }
 0xada   : > { %3888 = vmatmul.mubr.msk.f32.gmra.mxu1 %vm346_vm0, %v6375_v28 }
 0xadb   : > { %v2833_v27 = vrot.slane %v2832_v21, 1 }
 0xadd   : > { %v2834_v23 = vadd.f32 %v2833_v27, %v2832_v21  ;;  %v6385_v21 = vmov %v6365_v51 }
 0xadf   : > { %3890 = vpush %v2834_v23 }
 0xb10   : > { %s3891_s18 = spop %3890 }
 0xb11   : > { %s2836_s19 = smul.f32 0.1, %s3891_s18 }
 0xb13   : > { %p6044_p1 = scmp.ge.f32.partialorder %s2836_s19, 0.1 }
 0xb15   : > { %p371_p2 = pnand %p6044_p1, %p6040_p0 }
 0xb16   :  { %v6396_v49 = vmov (%p371_p2), 0   ;;  %v6403_v39 = vld [vmem:[#allocation18_spill] sm:$0xff] (%p371_p2)  ;;  %s4635_s26 = smov (%p371_p2), [#allocation2]  }
 0xb17   :  { %4443 = vset.pattern.permute.xlu1 (%p371_p2), %v6396_v49  ;;  %4442 = vset.pattern.permute.xlu0 (%p371_p2), %v6396_v49 }
 0xb18   :  { %2850 = vperm.xlu1 (%p371_p2), %4443, %v5854_v42   ;;  %2840 = vperm.xlu0 (%p371_p2), %4442, %v5848_v62  }
 0xb1c   :  { %2855 = vperm.xlu1 (%p371_p2), %4443, %v6358_v55   ;;  %2845 = vperm.xlu0 (%p371_p2), %4442, %v6357_v60   ;;  %v6398_v55 = vld [vmem:[#allocation14_spill] sm:$0xff] (%p371_p2) }
 0xb20   :  { %2865 = vperm.xlu1 (%p371_p2), %4443, %v6364_v52   ;;  %2860 = vperm.xlu0 (%p371_p2), %4442, %v6360_v48   ;;  %v6399_v52 = vld [vmem:[#allocation11_spill] sm:$0xff] (%p371_p2) }
 0xb24   :  { %2875 = vperm.xlu1 (%p371_p2), %4443, %v6368_v3   ;;  %2870 = vperm.xlu0 (%p371_p2), %4442, %v5903_v30  }
 0xb28   :  { %2885 = vperm.xlu1 (%p371_p2), %4443, %v6366_v11   ;;  %2880 = vperm.xlu0 (%p371_p2), %4442, %v6367_v5  }
 0xb2c   :  { %2895 = vperm.xlu1 (%p371_p2), %4443, %v6363_v24   ;;  %2890 = vperm.xlu0 (%p371_p2), %4442, %v6365_v51  }
 0xb30   :  { %2905 = vperm.xlu1 (%p371_p2), %4443, %v6361_v63   ;;  %2900 = vperm.xlu0 (%p371_p2), %4442, %v6362_v57  }
 0xb34   :  { %2915 = vperm.xlu1 (%p371_p2), %4443, %v6359_v8   ;;  %2910 = vperm.xlu0 (%p371_p2), %4442, %v5874_v1  }
 0xb7e   : > { %v3868_v0 = vpop.f32.mrf.mxu1 }
 0xb80   : > { %v2693_v53 = vpop.f32.mrf.mxu1 }
 0xb81   : > { %v2757_v22 = vmax.f32 %v2693_v53, 1e-37 }
 0xb82   : > { %v3871_v18 = vpop.f32.mrf.mxu1 }
 0xb83   : > { %4440 = vlog2.f32 %v2757_v22  ;;  %v6384_v18 = vmov %v6363_v24  ;;  %v6386_v22 = vmov %v6366_v11 }
 0xb84   : > { %v2702_v25 = vpop.f32.mrf.mxu1  ;;  %v6404_v18 = vld [vmem:[#allocation23_spill] sm:$0xff] (%p371_p2) }
 0xb85   : > { %v6387_v25 = vmov %v6367_v5 }
 0xb86   : > { %v3874_v50 = vpop.f32.mrf.mxu1 }
 0xb87   : > { %v6395_v50 = vmov %v5848_v62 }
 0xb88   : > { %v2710_v35 = vpop.f32.mrf.mxu1  ;;  %v6405_v50 = vld [vmem:[#allocation22_spill] sm:$0xff] (%p371_p2) }
 0xb89   : > { %v6380_v35 = vmov %v6359_v8  ;;  %v6400_v8 = vld [vmem:[#allocation15_spill] sm:$0xff] (%p371_p2) }
 0xb8a   : > { %v3877_v43 = vpop.f32.mrf.mxu1 }
 0xb8c   : > { %v2718_v29 = vpop.f32.mrf.mxu1 }
 0xb8e   : > { %v3880_v26 = vpop.f32.mrf.mxu1 }
 0xb8f   : > { %v6388_v26 = vmov %v6368_v3 }
 0xb90   : > { %v4441_v2 = vpop.eup %4440  ;;  %v2726_v9 = vpop.f32.mrf.mxu1 }
 0xb91   : > { %v2759_v54 = vmul.f32 0.6931472, %v4441_v2 }
 0xb92   : > { %v3883_v15 = vpop.f32.mrf.mxu1 }
 0xb93   : > { %v2760_v7 = vsub.f32 -4.6051693, %v2759_v54  ;;  %v2851_v60 = vpop.permute.xlu1 (%p371_p2), %2850  ;;  %v2841_v42 = vpop.permute.xlu0 (%p371_p2), %2840 }
 0xb94   : > { %v2734_v34 = vpop.f32.mrf.mxu1  ;;  %v2920_v48 = vadd.f32 (%p371_p2), %v2851_v60, %v6398_v55 }
 0xb95   : > { %v2761_v16 = vmul.f32 %v4680_v10, %v2760_v7 }
 0xb96   : > { %v3886_v56 = vpop.f32.mrf.mxu1 }
 0xb97   : > { %v2762_v6 = vadd.f32 %v2761_v16, %v5809_v14   ;;  %v6381_v14 = vmov %v5874_v1  ;;  %v2846_v11 = vpop.permute.xlu0 (%p371_p2), %2845  ;;  %v6401_v1 = vld [vmem:[#allocation10_spill] sm:$0xff] (%p371_p2) }
 0xb98   : > { %v2742_v40 = vpop.f32.mrf.mxu1  ;;  %374 = sbr.rel (!%p371_p2) target bundleno = 195 (0xc3), region = 44  ;;  %v6397_v14 = vld [vmem:[#allocation7_spill] sm:$0xff] (%p371_p2)  ;;  %v2919_v41 = vadd.f32 (%p371_p2), %v2846_v11, %v6401_v1  ;;  %v6406_v1 = vld [vmem:[#allocation9_spill] sm:$0xff] (%p371_p2) }
 0xb99   : > { %v6379_v45 = vmov %v2762_v6  ;;  %v6389_v40 = vmov %v5903_v30  ;;  %v6128_v62 = vrot.slane (%p371_p2), %v2762_v6, %v6397_v14  ;;  %v2918_v30 = vadd.f32 (%p371_p2), %v2841_v42, %v6399_v52 }
 0xb9a   : > { %v3889_v36 = vpop.f32.mrf.mxu1  ;;  %v6402_v45 = vld [vmem:[#allocation19_spill] sm:$0xff] (%p371_p2) }
 0xb9b   : > { %v6382_v36 = vmov %v6361_v63  ;;  %v2940_v24 = vadd.f32 (%p371_p2), %v6128_v62, %v2920_v48  ;;  %v2938_v51 = vadd.f32 (%p371_p2), %v6128_v62, %v2918_v30  ;;  %v2856_v63 = vpop.permute.xlu1 (%p371_p2), %2855  ;;  %v2939_v61 = vadd.f32 (%p371_p2), %v6128_v62, %v2919_v41  ;;  %v2861_v17 = vpop.permute.xlu0 (%p371_p2), %2860 }
 0xb9c   : > { %v2750_v33 = vpop.f32.mrf.mxu1  ;;  %v2921_v3 = vadd.f32 (%p371_p2), %v2856_v63, %v6400_v8  ;;  %v2922_v38 = vadd.f32 (%p371_p2), %v2861_v17, %v6403_v39 }
 0xb9d   :  { %v2958_v57 = vmul.f32 1.442695, %v2940_v24  ;;  %v2954_v5 = vmul.f32 1.442695, %v2938_v51  ;;  %v2956_v37 = vmul.f32 1.442695, %v2939_v61 }
 0xb9e   :  { %v2941_v32 = vadd.f32 %v6128_v62, %v2921_v3  ;;  %v2942_v27 = vadd.f32 %v6128_v62, %v2922_v38 }
 0xb9f   :  { %4444 = vpow2.f32 %v2958_v57  ;;  %v2866_v31 = vpop.permute.xlu1 %2865  ;;  %v2871_v0 = vpop.permute.xlu0 %2870 }
 0xba0   :  { %4446 = vpow2.f32 %v2954_v5  ;;  %v2960_v28 = vmul.f32 1.442695, %v2941_v32  ;;  %v2923_v59 = vadd.f32 %v2866_v31, %v6402_v45  ;;  %v2962_v22 = vmul.f32 1.442695, %v2942_v27 }
 0xba1   :  { %v2924_v35 = vadd.f32 %v2871_v0, %v6405_v50 }
 0xba2   :  { %4448 = vpow2.f32 %v2960_v28  ;;  %v2943_v21 = vadd.f32 %v6128_v62, %v2923_v59  ;;  %v6408_v59 = vld [vmem:[#allocation12_spill] sm:$0xff] }
 0xba3   :  { %4450 = vpow2.f32 %v2956_v37  ;;  %v2876_v23 = vpop.permute.xlu1 %2875  ;;  %v2944_v29 = vadd.f32 %v6128_v62, %v2924_v35  ;;  %v2881_v2 = vpop.permute.xlu0 %2880  ;;  %v6410_v35 = vld [vmem:[#allocation16_spill] sm:$0xff] }
 0xba4   :  { %v2964_v53 = vmul.f32 1.442695, %v2943_v21  ;;  %v2925_v25 = vadd.f32 %v2876_v23, %v6404_v18  ;;  %v2926_v7 = vadd.f32 %v2881_v2, %v4822_v19 }
 0xba5   :  { %v2966_v54 = vmul.f32 1.442695, %v2944_v29 }
 0xba6   :  { %4452 = vpow2.f32 %v2964_v53  ;;  %v2945_v43 = vadd.f32 %v6128_v62, %v2925_v25  ;;  %v2946_v16 = vadd.f32 %v6128_v62, %v2926_v7  ;;  %v6409_v53 = vld [vmem:[#allocation13_spill] sm:$0xff] }
 0xba7   :  { %4454 = vpow2.f32 %v2962_v22  ;;  %v2886_v26 = vpop.permute.xlu1 %2885  ;;  %v2891_v40 = vpop.permute.xlu0 %2890 }
 0xba8   :  { %v2968_v9 = vmul.f32 1.442695, %v2945_v43  ;;  %v2927_v15 = vadd.f32 %v2886_v26, %v4825_v20  ;;  %v2970_v14 = vmul.f32 1.442695, %v2946_v16  ;;  %v2928_v19 = vadd.f32 %v2891_v40, %v4838_v46  ;;  %v6412_v16 = vld [vmem:[#allocation20_spill] sm:$0xff] }
 0xbaa   :  { %4456 = vpow2.f32 %v2968_v9  ;;  %v2947_v34 = vadd.f32 %v6128_v62, %v2927_v15  ;;  %v2948_v48 = vadd.f32 %v6128_v62, %v2928_v19  ;;  %v6414_v19 = vld [vmem:[#allocation24_spill] sm:$0xff] }
 0xbab   :  { %4458 = vpow2.f32 %v2966_v54  ;;  %v2896_v6 = vpop.permute.xlu1 %2895  ;;  %v2901_v52 = vpop.permute.xlu0 %2900  ;;  %v6411_v54 = vld [vmem:[#allocation17_spill] sm:$0xff] }
 0xbac   :  { %v4445_v56 = vpop.eup %4444  ;;  %v2972_v49 = vmul.f32 1.442695, %v2947_v34  ;;  %v2929_v60 = vadd.f32 %v2896_v6, %v4841_v47  ;;  %v2930_v63 = vadd.f32 %v2901_v52, %v4850_v44  ;;  %v2974_v57 = vmul.f32 1.442695, %v2948_v48  ;;  %v6407_v44 = vld [vmem:[#allocation8_spill] sm:$0xff]  ;;  %v6415_v52 = vld [vmem:[#allocation25_spill] sm:$0xff] }
 0xbad   :  { %v4447_v36 = vpop.eup %4446  ;;  %v3004_v33 = vmul.f32 %v4445_v56, %v4680_v10 }
 0xbae   :  { %v3002_v20 = vmul.f32 %v4447_v36, %v4680_v10  ;;  %4460 = vpow2.f32 %v2972_v49  ;;  %v2949_v42 = vadd.f32 %v6128_v62, %v2929_v60  ;;  %v2950_v8 = vadd.f32 %v6128_v62, %v2930_v63  ;;  %v6416_v63 = vld [vmem:[#allocation26_spill] sm:$0xff] }
 0xbaf   :  { %3020 = vst [vmem:[%s6249_s3 + $0x10] sm:$0xff] %v3004_v33  ;;  %v4449_v55 = vpop.eup %4448  ;;  %4462 = vpow2.f32 %v2970_v14  ;;  %v2906_v47 = vpop.permute.xlu1 %2905  ;;  %v3036_v39 = vmul.f32 %v3004_v33, %v6408_v59  ;;  %v6413_v33 = vld [vmem:[#allocation21_spill] sm:$0xff] }
 0xbb0   :  { %3018 = vst [vmem:[%s6249_s3] sm:$0xff] %v3002_v20  ;;  %v4451_v30 = vpop.eup %4450  ;;  %v3005_v46 = vmul.f32 %v4449_v55, %v4680_v10  ;;  %v2976_v24 = vmul.f32 1.442695, %v2949_v42  ;;  %v2931_v51 = vadd.f32 %v2906_v47, %v4853_v58  ;;  %v3034_v41 = vmul.f32 %v3002_v20, %v6406_v1  ;;  %v2911_v61 = vpop.permute.xlu0 %2910  ;;  %v6417_v1 = vld [vmem:[#allocation27_spill] sm:$0xff]  ;;  %v6419_v59 = vld [vmem:[#allocation29_spill] sm:$0xff] }
 0xbb1   :  { %v3003_v11 = vmul.f32 %v4451_v30, %v4680_v10  ;;  %v2978_v37 = vmul.f32 1.442695, %v2950_v8  ;;  %v2932_v27 = vadd.f32 %v2911_v61, %v4860_v4 }
 0xbb2   :  { %3021 = vst [vmem:[%s6249_s3 + $0x18] sm:$0xff] %v3005_v46  ;;  %4464 = vpow2.f32 %v2976_v24  ;;  %v2951_v5 = vadd.f32 %v6128_v62, %v2931_v51  ;;  %v3037_v22 = vmul.f32 %v3005_v46, %v6409_v53 }
 0xbb3   :  { %v4453_v3 = vpop.eup %4452  ;;  %3019 = vst [vmem:[%s6249_s3 + $0x8] sm:$0xff] %v3003_v11  ;;  %v3035_v58 = vmul.f32 %v3003_v11, %v6407_v44  ;;  %4466 = vpow2.f32 %v2974_v57  ;;  %v2916_v32 = vpop.permute.xlu1 %2915 }
 0xbb4   :  { %v4455_v31 = vpop.eup %4454  ;;  %v3007_v17 = vmul.f32 %v4453_v3, %v4680_v10  ;;  %v2980_v28 = vmul.f32 1.442695, %v2951_v5  ;;  %v2933_v45 = vadd.f32 %v2916_v32, %v4863_v12  ;;  %v2952_v12 = vadd.f32 %v6128_v62, %v2932_v27 }
 0xbb5   :  { %v3050_v38 = vadd.f32 %v3035_v58, %v3034_v41  ;;  %v3006_v21 = vmul.f32 %v4455_v31, %v4680_v10 }
 0xbb6   :  { %3023 = vst [vmem:[%s6249_s3 + $0x28] sm:$0xff] %v3007_v17  ;;  %4468 = vpow2.f32 %v2980_v28  ;;  %v2953_v23 = vadd.f32 %v6128_v62, %v2933_v45  ;;  %v2982_v2 = vmul.f32 1.442695, %v2952_v12  ;;  %v3039_v15 = vmul.f32 %v3007_v17, %v6411_v54 }
 0xbb7   :  { %v4457_v0 = vpop.eup %4456  ;;  %v3051_v18 = vadd.f32 %v3050_v38, %v3036_v39  ;;  %3022 = vst [vmem:[%s6249_s3 + $0x20] sm:$0xff] %v3006_v21  ;;  %4470 = vpow2.f32 %v2978_v37  ;;  %v3038_v43 = vmul.f32 %v3006_v21, %v6410_v35  ;;  %v6420_v21 = vld [vmem:[#allocation30_spill] sm:$0xff] }
 0xbb8   :  { %v4459_v25 = vpop.eup %4458  ;;  %v3009_v4 = vmul.f32 %v4457_v0, %v4680_v10  ;;  %v2984_v50 = vmul.f32 1.442695, %v2953_v23  ;;  %v6421_v0 = vld [vmem:[#allocation31_spill] sm:$0xff] }
 0xbb9   :  { %v3052_v29 = vadd.f32 %v3051_v18, %v3037_v22  ;;  %v3008_v26 = vmul.f32 %v4459_v25, %v4680_v10 }
 0xbba   :  { %3025 = vst [vmem:[%s6249_s3 + $0x38] sm:$0xff] %v3009_v4  ;;  %4472 = vpow2.f32 %v2984_v50  ;;  %v3041_v49 = vmul.f32 %v3009_v4, %v6413_v33 }
 0xbbb   :  { %v4461_v9 = vpop.eup %4460  ;;  %v3053_v7 = vadd.f32 %v3052_v29, %v3038_v43  ;;  %3024 = vst [vmem:[%s6249_s3 + $0x30] sm:$0xff] %v3008_v26  ;;  %4474 = vpow2.f32 %v2982_v2  ;;  %v3040_v56 = vmul.f32 %v3008_v26, %v6412_v16 }
 0xbbc   :  { %v4463_v62 = vpop.eup %4462  ;;  %v3011_v34 = vmul.f32 %v4461_v9, %v4680_v10 }
 0xbbd   :  { %v3054_v6 = vadd.f32 %v3053_v7, %v3039_v15  ;;  %v3010_v40 = vmul.f32 %v4463_v62, %v4680_v10 }
 0xbbe   :  { %3027 = vst [vmem:[%s6249_s3 + $0x48] sm:$0xff] %v3011_v34  ;;  %v3043_v30 = vmul.f32 %v3011_v34, %v6415_v52 }
 0xbbf   :  { %v4465_v36 = vpop.eup %4464  ;;  %v3055_v14 = vadd.f32 %v3054_v6, %v3040_v56  ;;  %3026 = vst [vmem:[%s6249_s3 + $0x40] sm:$0xff] %v3010_v40  ;;  %v3042_v42 = vmul.f32 %v3010_v40, %v6414_v19 }
 0xbc0   :  { %v4467_v60 = vpop.eup %4466  ;;  %v3013_v20 = vmul.f32 %v4465_v36, %v4680_v10 }
 0xbc1   :  { %v3056_v55 = vadd.f32 %v3055_v14, %v3041_v49  ;;  %v3012_v48 = vmul.f32 %v4467_v60, %v4680_v10 }
 0xbc2   :  { %3029 = vst [vmem:[%s6249_s3 + $0x58] sm:$0xff] %v3013_v20  ;;  %v3045_v41 = vmul.f32 %v3013_v20, %v6417_v1 }
 0xbc3   :  { %v4469_v47 = vpop.eup %4468  ;;  %v3057_v46 = vadd.f32 %v3056_v55, %v3042_v42  ;;  %3028 = vst [vmem:[%s6249_s3 + $0x50] sm:$0xff] %v3012_v48  ;;  %v3044_v11 = vmul.f32 %v3012_v48, %v6416_v63 }
 0xbc4   :  { %v4471_v24 = vpop.eup %4470  ;;  %v2999_v51 = vmul.f32 0.0, %v4469_v47 }
 0xbc5   :  { %v3058_v57 = vadd.f32 %v3057_v46, %v3043_v30  ;;  %v2998_v5 = vmul.f32 %v4471_v24, %v4691_v13  ;;  %v6418_v13 = vld [vmem:[#allocation28_spill] sm:$0xff] }
 0xbc6   :  { %v3015_v8 = vmul.f32 %v4680_v10, %v2999_v51 }
 0xbc7   :  { %v4473_v3 = vpop.eup %4472  ;;  %v3059_v44 = vadd.f32 %v3058_v57, %v3044_v11  ;;  %v3014_v58 = vmul.f32 %v4680_v10, %v2998_v5 }
 0xbc8   :  { %v4475_v32 = vpop.eup %4474  ;;  %3031 = vst [vmem:[%s6249_s3 + $0x68] sm:$0xff] %v3015_v8  ;;  %v3001_v61 = vmul.f32 0.0, %v4473_v3  ;;  %v3047_v39 = vmul.f32 %v3015_v8, %v6419_v59 }
 0xbc9   :  { %3030 = vst [vmem:[%s6249_s3 + $0x60] sm:$0xff] %v3014_v58  ;;  %v3000_v31 = vmul.f32 0.0, %v4475_v32  ;;  %v3046_v17 = vmul.f32 %v3014_v58, %v6418_v13  ;;  %v3060_v28 = vadd.f32 %v3059_v44, %v3045_v41 }
 0xbca   :  { %v3017_v37 = vmul.f32 %v4680_v10, %v3001_v61 }
 0xbcb   :  { %v3016_v45 = vmul.f32 %v4680_v10, %v3000_v31  ;;  %v3061_v38 = vadd.f32 %v3060_v28, %v3046_v17 }
 0xbcc   :  { %3033 = vst [vmem:[%s6249_s3 + $0x78] sm:$0xff] %v3017_v37  ;;  %v3049_v53 = vmul.f32 %v3017_v37, %v6421_v0 }
 0xbcd   :  { %3032 = vst [vmem:[%s6249_s3 + $0x70] sm:$0xff] %v3016_v45  ;;  %v3048_v27 = vmul.f32 %v3016_v45, %v6420_v21  ;;  %v3062_v23 = vadd.f32 %v3061_v38, %v3047_v39 }
 0xbcf   :  { %v3063_v22 = vadd.f32 %v3062_v23, %v3048_v27 }
 0xbd1   :  { %v3064_v18 = vadd.f32 %v3063_v22, %v3049_v53 }
 0xbd3   :  { %3065 = vadd.xlane.f32.xlu0 %v3064_v18 }
 0xc5c   :  { %v3066_v10 = vpop.xlane.xlu0 %3065 }
 0xc5d   :  { %v3067_v12 = vrot.slane %v3066_v10, 4 }
 0xc5f   :  { %v3068_v25 = vadd.f32 %v3067_v12, %v3066_v10 }
 0xc61   :  { %v3069_v4 = vrot.slane %v3068_v25, 2 }
 0xc63   :  { %v3070_v50 = vadd.f32 %v3069_v4, %v3068_v25 }
 0xc65   :  { %v3071_v35 = vrot.slane %v3070_v50, 1 }
 0xc67   :  { %v3072_v43 = vadd.f32 %v3071_v35, %v3070_v50 }
 0xc69   :  { %3892 = vpush %v3072_v43 }
 0xc9a   :  { %s3893_s25 = spop %3892 }
 0xc9b   :  { %3075 = sst [smem:[#allocation2]] %s3893_s25 }
 0xc9c   :  { %3083 = dma.smem_to_hbm %s4635_s26, 16, %s6248_s2, [#allocation3]  }
 0xc9d   :  { %4556 = dma.done.wait [#allocation3], 16  }
 0xc9e   :  { %4557 = vsyncadd [#allocation3], 4294967280 }
 0xc9f   :  { %3091 = sfence }
 0xca0   :  { %3092 = vsyncpa [#allocation3], 1 }

</bundles_post_ra>
